<compile_context>
chip_gen: v6e
topology: v6e:2x2x1
jax: 0.10.0
libtpu: 0.0.40
codegen_flags: <defaults>
</compile_context>

<pallas_src>
import functools

import jax
import jax.numpy as jnp
from jax.experimental import pallas as pl
from jax.experimental.pallas import tpu as pltpu

LANES = 128  # channel / lane padding width


def _round_up(x, m):
    return (x + m - 1) // m * m


def _pick_k_rows(total_rows, max_rows=32):
    """Largest divisor of total_rows that is <= max_rows (K tile = rows*128)."""
    for d in range(min(total_rows, max_rows), 0, -1):
        if total_rows % d == 0:
            return d
    return 1


# --------------------------- Kernel A: fused conv stack ---------------------------

def _conv_stack_kernel(x_ref, w1_ref, b1_ref, w2_ref, b2_ref, w3_ref, b3_ref,
                       o_ref, a1_ref, a2_ref, *, offsets, rows):
    """Three 2x2 valid convs + ReLU for one batch sample per grid step.

    Layout: rows are spatial p = h*W + w, channels live in (zero-padded) lanes.
    Each conv = sum of 4 row-shifted (rows,128)x(128,128) MXU matmuls + bias + ReLU.

    x_ref  : (rows_in, 128) f32   input (zero-padded rows & lanes)
    w*_ref : (4, 128, 128)  f32   w[k, cin, cout], k = dh*2 + dw
    b*_ref : (1, 128)       f32
    o_ref  : (rows3, 128)   bf16  conv3 output (fed straight into FC1)
    a1/a2  : VMEM f32 scratch (ping-pong, no aliased in-place update)
    """
    def conv(src_ref, w_ref, b_ref, nrows):
        acc = jnp.dot(src_ref[pl.ds(offsets[0], nrows), :], w_ref[0],
                      preferred_element_type=jnp.float32)
        for k in range(1, len(offsets)):
            acc = acc + jnp.dot(src_ref[pl.ds(offsets[k], nrows), :], w_ref[k],
                                preferred_element_type=jnp.float32)
        return jnp.maximum(acc + b_ref[...], 0.0)          # f32 epilogue (v5e safe)

    a1_ref[...] = conv(x_ref, w1_ref, b1_ref, rows[0])
    a2_ref[...] = conv(a1_ref, w2_ref, b2_ref, rows[1])
    o_ref[...] = conv(a2_ref, w3_ref, b3_ref, rows[2]).astype(o_ref.dtype)


# --------------------------- Kernel B: fused, K-tiled FC stack --------------------

def _fc_stack_kernel(x_ref, w1_ref, b1_ref, w2_ref, b2_ref, w3_ref, b3_ref,
                     w4_ref, b4_ref, o_ref, acc_ref):
    """FC1 accumulated over K tiles (bf16 x bf16 -> f32); FC2-4 on the last tile."""
    k = pl.program_id(0)

    @pl.when(k == 0)
    def _():
        acc_ref[...] = jnp.zeros_like(acc_ref)

    acc_ref[...] += jnp.dot(x_ref[...], w1_ref[...],
                            preferred_element_type=jnp.float32)

    @pl.when(k == pl.num_programs(0) - 1)
    def _():
        h = jnp.maximum(acc_ref[...] + b1_ref[...], 0.0)                  # f32
        h = jnp.tanh(jnp.dot(h, w2_ref[...],
                             preferred_element_type=jnp.float32) + b2_ref[...])
        h = jnp.tanh(jnp.dot(h, w3_ref[...],
                             preferred_element_type=jnp.float32) + b3_ref[...])
        o_ref[...] = (jnp.dot(h, w4_ref[...],
                              preferred_element_type=jnp.float32) + b4_ref[...])


# ------------------------------ Parameter packing ---------------------------------

def pack_params(params, in_hw):
    """One-time conversion of PyTorch-layout params into kernel-friendly layouts."""
    H = W = in_hw
    Hf = H - 3                                   # spatial size after three 2x2 convs
    rows3 = _round_up(Hf * W, 8)                 # conv3 output rows kept by Kernel A

    def pack_conv(w, b):
        cout, cin, kh, kw = w.shape
        assert cin <= LANES and cout <= LANES
        wr = jnp.transpose(w, (2, 3, 1, 0)).reshape(kh * kw, cin, cout)
        wk = jnp.zeros((kh * kw, LANES, LANES), jnp.float32)
        wk = wk.at[:, :cin, :cout].set(wr.astype(jnp.float32))
        bk = jnp.zeros((1, LANES), jnp.float32).at[0, :cout].set(b.astype(jnp.float32))
        return wk, bk

    def pack_fc(w, b, in_pad=None, out_pad=None):
        out_f, in_f = w.shape
        ip = in_f if in_pad is None else in_pad
        op = out_f if out_pad is None else out_pad
        wk = jnp.zeros((ip, op), jnp.float32).at[:in_f, :out_f].set(
            w.T.astype(jnp.float32))
        bk = jnp.zeros((1, op), jnp.float32).at[0, :out_f].set(b.astype(jnp.float32))
        return wk, bk

    def pack_fc1(w, b):
        # Fold PyTorch Flatten order (c, h, w) AND Kernel A's (row = h*W + w,
        # lane = c) layout into the weight row order.  Garbage rows (w >= Hf,
        # h >= Hf) and padded lanes (c >= c3_out) get zero weights, so Kernel A's
        # wrapped/padded outputs contribute nothing.
        hidden, flat = w.shape
        c3_out = flat // (Hf * Hf)
        wt = w.T.astype(jnp.float32).reshape(c3_out, Hf, Hf, hidden)   # (c, h, w, j)
        wp = jnp.zeros((Hf, W, LANES, hidden), jnp.float32)
        wp = wp.at[:, :Hf, :c3_out, :].set(jnp.transpose(wt, (1, 2, 0, 3)))
        wp = wp.reshape(Hf * W, LANES, hidden)
        if rows3 > Hf * W:
            wp = jnp.concatenate(
                [wp, jnp.zeros((rows3 - Hf * W, LANES, hidden), jnp.float32)], axis=0)
        wp = wp.reshape(rows3 * LANES, hidden).astype(jnp.bfloat16)    # bf16 weight
        bk = jnp.zeros((1, hidden), jnp.float32).at[0, :].set(b.astype(jnp.float32))
        return wp, bk

    packed = {}
    packed["c1_w"], packed["c1_b"] = pack_conv(params["c1_w"], params["c1_b"])
    packed["c2_w"], packed["c2_b"] = pack_conv(params["c2_w"], params["c2_b"])
    packed["c3_w"], packed["c3_b"] = pack_conv(params["c3_w"], params["c3_b"])
    packed["fc1_w"], packed["fc1_b"] = pack_fc1(params["l1_w"], params["l1_b"])
    packed["fc2_w"], packed["fc2_b"] = pack_fc(params["l2_w"], params["l2_b"],
                                               out_pad=LANES)
    packed["fc3_w"], packed["fc3_b"] = pack_fc(params["l3_w"], params["l3_b"],
                                               in_pad=LANES, out_pad=LANES)
    packed["fc4_w"], packed["fc4_b"] = pack_fc(params["l4_w"], params["l4_b"],
                                               in_pad=LANES, out_pad=LANES)
    return packed


# ------------------------------ Forward pass ---------------------------------------

@functools.partial(jax.jit, static_argnames=("action_space",))
def cnn_policy_forward(packed, x, *, action_space):
    N, C, H, W = x.shape
    assert H == W and C <= LANES
    KH = KW = 2
    Hf = H - 3
    hidden = packed["fc1_w"].shape[1]
    rows3 = packed["fc1_w"].shape[0] // LANES
    assert rows3 == _round_up(Hf * W, 8)

    offsets = (0, 1, W, W + 1)                   # 2x2 window taps in row index p=h*W+w
    rows2 = _round_up(rows3 + W + 1, 8)          # conv2 output rows kept
    rows1 = _round_up(rows2 + W + 1, 8)          # conv1 output rows kept
    rows_in = _round_up(rows1 + W + 1, 8)        # padded input rows (>= rows1 + W + 1)

    # --- tiny input prep: NCHW -> (p = h*W + w, channel) zero-padded to lane width ---
    xt = jnp.transpose(x, (0, 2, 3, 1)).reshape(N, H * W, C).astype(jnp.float32)
    x_pad = jnp.zeros((N, rows_in, LANES), jnp.float32).at[:, :H * W, :C].set(xt)

    conv_out = pl.pallas_call(
        functools.partial(_conv_stack_kernel, offsets=offsets,
                          rows=(rows1, rows2, rows3)),
        out_shape=jax.ShapeDtypeStruct((N, rows3, LANES), jnp.bfloat16),
        grid=(N,),
        in_specs=[
            pl.BlockSpec((None, rows_in, LANES), lambda n: (n, 0, 0)),
            pl.BlockSpec((KH * KW, LANES, LANES), lambda n: (0, 0, 0)),
            pl.BlockSpec((1, LANES), lambda n: (0, 0)),
            pl.BlockSpec((KH * KW, LANES, LANES), lambda n: (0, 0, 0)),
            pl.BlockSpec((1, LANES), lambda n: (0, 0)),
            pl.BlockSpec((KH * KW, LANES, LANES), lambda n: (0, 0, 0)),
            pl.BlockSpec((1, LANES), lambda n: (0, 0)),
        ],
        out_specs=pl.BlockSpec((None, rows3, LANES), lambda n: (n, 0, 0)),
        scratch_shapes=[pltpu.VMEM((rows1, LANES), jnp.float32),
                        pltpu.VMEM((rows2, LANES), jnp.float32)],
        compiler_params=pltpu.CompilerParams(
            dimension_semantics=("parallel",),
            vmem_limit_bytes=8 << 20),
    )(x_pad, packed["c1_w"], packed["c1_b"], packed["c2_w"], packed["c2_b"],
      packed["c3_w"], packed["c3_b"])

    # Flatten permutation is folded into fc1_w's rows -> this reshape is free.
    flat = conv_out.reshape(N, rows3 * LANES)

    # K-tiled FC stack: grid over K chunks of fc1_w so the bf16 weight DMA pipelines.
    tk_rows = _pick_k_rows(rows3)
    tk = tk_rows * LANES
    num_k = rows3 // tk_rows

    out_pad = pl.pallas_call(
        _fc_stack_kernel,
        out_shape=jax.ShapeDtypeStruct((N, LANES), jnp.float32),
        grid=(num_k,),
        in_specs=[
            pl.BlockSpec((N, tk), lambda k: (0, k)),          # flat conv acts (bf16)
            pl.BlockSpec((tk, hidden), lambda k: (k, 0)),     # fc1_w K tile (bf16)
            pl.BlockSpec((1, hidden), lambda k: (0, 0)),
            pl.BlockSpec((hidden, LANES), lambda k: (0, 0)),  # fc2_w (f32, tiny)
            pl.BlockSpec((1, LANES), lambda k: (0, 0)),
            pl.BlockSpec((LANES, LANES), lambda k: (0, 0)),   # fc3_w
            pl.BlockSpec((1, LANES), lambda k: (0, 0)),
            pl.BlockSpec((LANES, LANES), lambda k: (0, 0)),   # fc4_w (out padded to 128)
            pl.BlockSpec((1, LANES), lambda k: (0, 0)),
        ],
        out_specs=pl.BlockSpec((N, LANES), lambda k: (0, 0)),
        scratch_shapes=[pltpu.VMEM((N, hidden), jnp.float32)],
        compiler_params=pltpu.CompilerParams(
            dimension_semantics=("arbitrary",),
            vmem_limit_bytes=8 << 20),
    )(flat, packed["fc1_w"], packed["fc1_b"], packed["fc2_w"], packed["fc2_b"],
      packed["fc3_w"], packed["fc3_b"], packed["fc4_w"], packed["fc4_b"])

    return out_pad[:, :action_space]             # lane-dense store, slice outside


# ------------------------------ Parameters -----------------------------------------

def _uniform(key, shape, fan_in):
    bound = 1.0 / jnp.sqrt(jnp.float32(fan_in))
    return jax.random.uniform(key, shape, jnp.float32, -bound, bound)


def init_params(key, n_channels, action_space, hidden=128, in_hw=16):
    flat_dim = 64 * (in_hw - 3) * (in_hw - 3)   # three 2x2 valid convs: H -> H-3
    keys = jax.random.split(key, 14)
    p = {}
    p["c1_w"] = _uniform(keys[0], (16, n_channels, 2, 2), n_channels * 4)
    p["c1_b"] = _uniform(keys[1], (16,), n_channels * 4)
    p["c2_w"] = _uniform(keys[2], (32, 16, 2, 2), 16 * 4)
    p["c2_b"] = _uniform(keys[3], (32,), 16 * 4)
    p["c3_w"] = _uniform(keys[4], (64, 32, 2, 2), 32 * 4)
    p["c3_b"] = _uniform(keys[5], (64,), 32 * 4)
    p["l1_w"] = _uniform(keys[6], (hidden, flat_dim), flat_dim)
    p["l1_b"] = _uniform(keys[7], (hidden,), flat_dim)
    p["l2_w"] = _uniform(keys[8], (64, hidden), hidden)
    p["l2_b"] = _uniform(keys[9], (64,), hidden)
    p["l3_w"] = _uniform(keys[10], (64, 64), 64)
    p["l3_b"] = _uniform(keys[11], (64,), 64)
    p["l4_w"] = _uniform(keys[12], (action_space, 64), 64)
    p["l4_b"] = _uniform(keys[13], (action_space,), 64)
    return p


# ------------------------------ Pure-JAX reference ---------------------------------

def cnn_policy_ref(params, x):
    def conv(x, w, b):
        y = jax.lax.conv_general_dilated(
            x, w, window_strides=(1, 1), padding="VALID",
            dimension_numbers=("NCHW", "OIHW", "NCHW"))
        return jnp.maximum(y + b[None, :, None, None], 0.0)

    h = conv(x, params["c1_w"], params["c1_b"])
    h = conv(h, params["c2_w"], params["c2_b"])
    h = conv(h, params["c3_w"], params["c3_b"])
    flat = h.reshape(h.shape[0], -1)
    h = jnp.maximum(flat @ params["l1_w"].T + params["l1_b"], 0.0)
    h = jnp.tanh(h @ params["l2_w"].T + params["l2_b"])
    h = jnp.tanh(h @ params["l3_w"].T + params["l3_b"])
    return h @ params["l4_w"].T + params["l4_b"]


if __name__ == "__main__":
    key = jax.random.PRNGKey(0)
    k_param, k_x = jax.random.split(key)

    n_channels, action_space, in_hw, batch = 4, 6, 16, 2
    params = init_params(k_param, n_channels, action_space, hidden=128, in_hw=in_hw)
    packed = pack_params(params, in_hw)                 # one-time weight repack
    x = jax.random.normal(k_x, (batch, n_channels, in_hw, in_hw), jnp.float32)

    out = jax.block_until_ready(
        cnn_policy_forward(packed, x, action_space=action_space))
    ref = jax.block_until_ready(cnn_policy_ref(params, x))

    assert out.shape == (batch, action_space), out.shape
    # fc1 weight / conv3 activations are intentionally bf16 (f32 accumulation),
    # so compare against the f32 reference with a bf16-appropriate tolerance.
    max_err = jnp.max(jnp.abs(out - ref))
    assert jnp.allclose(out, ref, rtol=1e-2, atol=1e-2), max_err
    print("KERNEL_OK")
</pallas_src>

<mosaic_0001>
module attributes {stable_mosaic.version = 11 : i64} {
  func.func @_conv_stack_kernel(%arg0: i32, %arg1: memref<1x280x128xf32, #tpu.memory_space<vmem>>, %arg2: memref<4x128x128xf32, #tpu.memory_space<vmem>>, %arg3: memref<1x128xf32, #tpu.memory_space<vmem>>, %arg4: memref<4x128x128xf32, #tpu.memory_space<vmem>>, %arg5: memref<1x128xf32, #tpu.memory_space<vmem>>, %arg6: memref<4x128x128xf32, #tpu.memory_space<vmem>>, %arg7: memref<1x128xf32, #tpu.memory_space<vmem>>, %arg8: memref<1x208x128xbf16, #tpu.memory_space<vmem>>, %arg9: memref<256x128xf32, #tpu.memory_space<vmem>>, %arg10: memref<232x128xf32, #tpu.memory_space<vmem>>) attributes {dimension_semantics = [#tpu.dimension_semantics<parallel>], iteration_bounds = array<i64: 2>, scalar_prefetch = 0 : i64, scratch_operands = 2 : i64, tpu.core_type = #tpu.core_type<tc>, window_params = [{transform_indices = @transform_0, window_bounds = array<i64: 1, 280, 128>}, {pipeline_mode = #tpu.pipeline_mode<synchronous>, transform_indices = @transform_1, window_bounds = array<i64: 4, 128, 128>}, {pipeline_mode = #tpu.pipeline_mode<synchronous>, transform_indices = @transform_2, window_bounds = array<i64: 1, 128>}, {pipeline_mode = #tpu.pipeline_mode<synchronous>, transform_indices = @transform_3, window_bounds = array<i64: 4, 128, 128>}, {pipeline_mode = #tpu.pipeline_mode<synchronous>, transform_indices = @transform_4, window_bounds = array<i64: 1, 128>}, {pipeline_mode = #tpu.pipeline_mode<synchronous>, transform_indices = @transform_5, window_bounds = array<i64: 4, 128, 128>}, {pipeline_mode = #tpu.pipeline_mode<synchronous>, transform_indices = @transform_6, window_bounds = array<i64: 1, 128>}, {transform_indices = @transform_7, window_bounds = array<i64: 1, 208, 128>}]} {
    %c0 = arith.constant 0 : index
    %c0_0 = arith.constant 0 : index
    %c0_1 = arith.constant 0 : index
    %0 = vector.load %arg1[%c0, %c0_0, %c0_1] : memref<1x280x128xf32, #tpu.memory_space<vmem>>, vector<1x256x128xf32>
    %1 = vector.shape_cast %0 : vector<1x256x128xf32> to vector<256x128xf32>
    %c0_2 = arith.constant 0 : index
    %c0_3 = arith.constant 0 : index
    %c0_4 = arith.constant 0 : index
    %2 = vector.load %arg2[%c0_2, %c0_3, %c0_4] : memref<4x128x128xf32, #tpu.memory_space<vmem>>, vector<1x128x128xf32>
    %3 = vector.shape_cast %2 : vector<1x128x128xf32> to vector<128x128xf32>
    %cst = arith.constant dense<0.000000e+00> : vector<256x128xf32>
    %4 = tpu.matmul %1, %3, %cst {dimension_numbers = #tpu.dot_dimension_numbers<[1], [0], [0], [1], [0, 0, 1, 1], [], []>} : vector<256x128xf32>, vector<128x128xf32>, vector<256x128xf32> -> vector<256x128xf32>
    %c0_5 = arith.constant 0 : index
    %c1 = arith.constant 1 : index
    %c0_6 = arith.constant 0 : index
    %5 = vector.load %arg1[%c0_5, %c1, %c0_6] : memref<1x280x128xf32, #tpu.memory_space<vmem>>, vector<1x256x128xf32>
    %6 = vector.shape_cast %5 : vector<1x256x128xf32> to vector<256x128xf32>
    %c1_7 = arith.constant 1 : index
    %c0_8 = arith.constant 0 : index
    %c0_9 = arith.constant 0 : index
    %7 = vector.load %arg2[%c1_7, %c0_8, %c0_9] : memref<4x128x128xf32, #tpu.memory_space<vmem>>, vector<1x128x128xf32>
    %8 = vector.shape_cast %7 : vector<1x128x128xf32> to vector<128x128xf32>
    %cst_10 = arith.constant dense<0.000000e+00> : vector<256x128xf32>
    %9 = tpu.matmul %6, %8, %cst_10 {dimension_numbers = #tpu.dot_dimension_numbers<[1], [0], [0], [1], [0, 0, 1, 1], [], []>} : vector<256x128xf32>, vector<128x128xf32>, vector<256x128xf32> -> vector<256x128xf32>
    %10 = arith.addf %4, %9 : vector<256x128xf32>
    %c0_11 = arith.constant 0 : index
    %c16 = arith.constant 16 : index
    %c0_12 = arith.constant 0 : index
    %11 = vector.load %arg1[%c0_11, %c16, %c0_12] : memref<1x280x128xf32, #tpu.memory_space<vmem>>, vector<1x256x128xf32>
    %12 = vector.shape_cast %11 : vector<1x256x128xf32> to vector<256x128xf32>
    %c2 = arith.constant 2 : index
    %c0_13 = arith.constant 0 : index
    %c0_14 = arith.constant 0 : index
    %13 = vector.load %arg2[%c2, %c0_13, %c0_14] : memref<4x128x128xf32, #tpu.memory_space<vmem>>, vector<1x128x128xf32>
    %14 = vector.shape_cast %13 : vector<1x128x128xf32> to vector<128x128xf32>
    %cst_15 = arith.constant dense<0.000000e+00> : vector<256x128xf32>
    %15 = tpu.matmul %12, %14, %cst_15 {dimension_numbers = #tpu.dot_dimension_numbers<[1], [0], [0], [1], [0, 0, 1, 1], [], []>} : vector<256x128xf32>, vector<128x128xf32>, vector<256x128xf32> -> vector<256x128xf32>
    %16 = arith.addf %10, %15 : vector<256x128xf32>
    %c0_16 = arith.constant 0 : index
    %c17 = arith.constant 17 : index
    %c0_17 = arith.constant 0 : index
    %17 = vector.load %arg1[%c0_16, %c17, %c0_17] : memref<1x280x128xf32, #tpu.memory_space<vmem>>, vector<1x256x128xf32>
    %18 = vector.shape_cast %17 : vector<1x256x128xf32> to vector<256x128xf32>
    %c3 = arith.constant 3 : index
    %c0_18 = arith.constant 0 : index
    %c0_19 = arith.constant 0 : index
    %19 = vector.load %arg2[%c3, %c0_18, %c0_19] : memref<4x128x128xf32, #tpu.memory_space<vmem>>, vector<1x128x128xf32>
    %20 = vector.shape_cast %19 : vector<1x128x128xf32> to vector<128x128xf32>
    %cst_20 = arith.constant dense<0.000000e+00> : vector<256x128xf32>
    %21 = tpu.matmul %18, %20, %cst_20 {dimension_numbers = #tpu.dot_dimension_numbers<[1], [0], [0], [1], [0, 0, 1, 1], [], []>} : vector<256x128xf32>, vector<128x128xf32>, vector<256x128xf32> -> vector<256x128xf32>
    %22 = arith.addf %16, %21 : vector<256x128xf32>
    %c0_21 = arith.constant 0 : index
    %c0_22 = arith.constant 0 : index
    %23 = vector.load %arg3[%c0_21, %c0_22] : memref<1x128xf32, #tpu.memory_space<vmem>>, vector<1x128xf32>
    %24 = vector.broadcast %23 : vector<1x128xf32> to vector<256x128xf32>
    %25 = arith.addf %22, %24 : vector<256x128xf32>
    %cst_23 = arith.constant 0.000000e+00 : f32
    %26 = vector.broadcast %cst_23 : f32 to vector<256x128xf32>
    %27 = arith.maximumf %25, %26 : vector<256x128xf32>
    %c0_24 = arith.constant 0 : index
    %c0_25 = arith.constant 0 : index
    %28 = vector.load %arg9[%c0_24, %c0_25] : memref<256x128xf32, #tpu.memory_space<vmem>>, vector<256x128xf32>
    tpu.vector_store %arg9[%c0_24, %c0_25], %27 {strides = array<i32>} : memref<256x128xf32, #tpu.memory_space<vmem>>, vector<256x128xf32>,
    %c0_26 = arith.constant 0 : index
    %c0_27 = arith.constant 0 : index
    %29 = vector.load %arg9[%c0_26, %c0_27] : memref<256x128xf32, #tpu.memory_space<vmem>>, vector<232x128xf32>
    %c0_28 = arith.constant 0 : index
    %c0_29 = arith.constant 0 : index
    %c0_30 = arith.constant 0 : index
    %30 = vector.load %arg4[%c0_28, %c0_29, %c0_30] : memref<4x128x128xf32, #tpu.memory_space<vmem>>, vector<1x128x128xf32>
    %31 = vector.shape_cast %30 : vector<1x128x128xf32> to vector<128x128xf32>
    %cst_31 = arith.constant dense<0.000000e+00> : vector<232x128xf32>
    %32 = tpu.matmul %29, %31, %cst_31 {dimension_numbers = #tpu.dot_dimension_numbers<[1], [0], [0], [1], [0, 0, 1, 1], [], []>} : vector<232x128xf32>, vector<128x128xf32>, vector<232x128xf32> -> vector<232x128xf32>
    %c1_32 = arith.constant 1 : index
    %c0_33 = arith.constant 0 : index
    %33 = vector.load %arg9[%c1_32, %c0_33] : memref<256x128xf32, #tpu.memory_space<vmem>>, vector<232x128xf32>
    %c1_34 = arith.constant 1 : index
    %c0_35 = arith.constant 0 : index
    %c0_36 = arith.constant 0 : index
    %34 = vector.load %arg4[%c1_34, %c0_35, %c0_36] : memref<4x128x128xf32, #tpu.memory_space<vmem>>, vector<1x128x128xf32>
    %35 = vector.shape_cast %34 : vector<1x128x128xf32> to vector<128x128xf32>
    %cst_37 = arith.constant dense<0.000000e+00> : vector<232x128xf32>
    %36 = tpu.matmul %33, %35, %cst_37 {dimension_numbers = #tpu.dot_dimension_numbers<[1], [0], [0], [1], [0, 0, 1, 1], [], []>} : vector<232x128xf32>, vector<128x128xf32>, vector<232x128xf32> -> vector<232x128xf32>
    %37 = arith.addf %32, %36 : vector<232x128xf32>
    %c16_38 = arith.constant 16 : index
    %c0_39 = arith.constant 0 : index
    %38 = vector.load %arg9[%c16_38, %c0_39] : memref<256x128xf32, #tpu.memory_space<vmem>>, vector<232x128xf32>
    %c2_40 = arith.constant 2 : index
    %c0_41 = arith.constant 0 : index
    %c0_42 = arith.constant 0 : index
    %39 = vector.load %arg4[%c2_40, %c0_41, %c0_42] : memref<4x128x128xf32, #tpu.memory_space<vmem>>, vector<1x128x128xf32>
    %40 = vector.shape_cast %39 : vector<1x128x128xf32> to vector<128x128xf32>
    %cst_43 = arith.constant dense<0.000000e+00> : vector<232x128xf32>
    %41 = tpu.matmul %38, %40, %cst_43 {dimension_numbers = #tpu.dot_dimension_numbers<[1], [0], [0], [1], [0, 0, 1, 1], [], []>} : vector<232x128xf32>, vector<128x128xf32>, vector<232x128xf32> -> vector<232x128xf32>
    %42 = arith.addf %37, %41 : vector<232x128xf32>
    %c17_44 = arith.constant 17 : index
    %c0_45 = arith.constant 0 : index
    %43 = vector.load %arg9[%c17_44, %c0_45] : memref<256x128xf32, #tpu.memory_space<vmem>>, vector<232x128xf32>
    %c3_46 = arith.constant 3 : index
    %c0_47 = arith.constant 0 : index
    %c0_48 = arith.constant 0 : index
    %44 = vector.load %arg4[%c3_46, %c0_47, %c0_48] : memref<4x128x128xf32, #tpu.memory_space<vmem>>, vector<1x128x128xf32>
    %45 = vector.shape_cast %44 : vector<1x128x128xf32> to vector<128x128xf32>
    %cst_49 = arith.constant dense<0.000000e+00> : vector<232x128xf32>
    %46 = tpu.matmul %43, %45, %cst_49 {dimension_numbers = #tpu.dot_dimension_numbers<[1], [0], [0], [1], [0, 0, 1, 1], [], []>} : vector<232x128xf32>, vector<128x128xf32>, vector<232x128xf32> -> vector<232x128xf32>
    %47 = arith.addf %42, %46 : vector<232x128xf32>
    %c0_50 = arith.constant 0 : index
    %c0_51 = arith.constant 0 : index
    %48 = vector.load %arg5[%c0_50, %c0_51] : memref<1x128xf32, #tpu.memory_space<vmem>>, vector<1x128xf32>
    %49 = vector.broadcast %48 : vector<1x128xf32> to vector<232x128xf32>
    %50 = arith.addf %47, %49 : vector<232x128xf32>
    %cst_52 = arith.constant 0.000000e+00 : f32
    %51 = vector.broadcast %cst_52 : f32 to vector<232x128xf32>
    %52 = arith.maximumf %50, %51 : vector<232x128xf32>
    %c0_53 = arith.constant 0 : index
    %c0_54 = arith.constant 0 : index
    %53 = vector.load %arg10[%c0_53, %c0_54] : memref<232x128xf32, #tpu.memory_space<vmem>>, vector<232x128xf32>
    tpu.vector_store %arg10[%c0_53, %c0_54], %52 {strides = array<i32>} : memref<232x128xf32, #tpu.memory_space<vmem>>, vector<232x128xf32>,
    %c0_55 = arith.constant 0 : index
    %c0_56 = arith.constant 0 : index
    %54 = vector.load %arg10[%c0_55, %c0_56] : memref<232x128xf32, #tpu.memory_space<vmem>>, vector<208x128xf32>
    %c0_57 = arith.constant 0 : index
    %c0_58 = arith.constant 0 : index
    %c0_59 = arith.constant 0 : index
    %55 = vector.load %arg6[%c0_57, %c0_58, %c0_59] : memref<4x128x128xf32, #tpu.memory_space<vmem>>, vector<1x128x128xf32>
    %56 = vector.shape_cast %55 : vector<1x128x128xf32> to vector<128x128xf32>
    %cst_60 = arith.constant dense<0.000000e+00> : vector<208x128xf32>
    %57 = tpu.matmul %54, %56, %cst_60 {dimension_numbers = #tpu.dot_dimension_numbers<[1], [0], [0], [1], [0, 0, 1, 1], [], []>} : vector<208x128xf32>, vector<128x128xf32>, vector<208x128xf32> -> vector<208x128xf32>
    %c1_61 = arith.constant 1 : index
    %c0_62 = arith.constant 0 : index
    %58 = vector.load %arg10[%c1_61, %c0_62] : memref<232x128xf32, #tpu.memory_space<vmem>>, vector<208x128xf32>
    %c1_63 = arith.constant 1 : index
    %c0_64 = arith.constant 0 : index
    %c0_65 = arith.constant 0 : index
    %59 = vector.load %arg6[%c1_63, %c0_64, %c0_65] : memref<4x128x128xf32, #tpu.memory_space<vmem>>, vector<1x128x128xf32>
    %60 = vector.shape_cast %59 : vector<1x128x128xf32> to vector<128x128xf32>
    %cst_66 = arith.constant dense<0.000000e+00> : vector<208x128xf32>
    %61 = tpu.matmul %58, %60, %cst_66 {dimension_numbers = #tpu.dot_dimension_numbers<[1], [0], [0], [1], [0, 0, 1, 1], [], []>} : vector<208x128xf32>, vector<128x128xf32>, vector<208x128xf32> -> vector<208x128xf32>
    %62 = arith.addf %57, %61 : vector<208x128xf32>
    %c16_67 = arith.constant 16 : index
    %c0_68 = arith.constant 0 : index
    %63 = vector.load %arg10[%c16_67, %c0_68] : memref<232x128xf32, #tpu.memory_space<vmem>>, vector<208x128xf32>
    %c2_69 = arith.constant 2 : index
    %c0_70 = arith.constant 0 : index
    %c0_71 = arith.constant 0 : index
    %64 = vector.load %arg6[%c2_69, %c0_70, %c0_71] : memref<4x128x128xf32, #tpu.memory_space<vmem>>, vector<1x128x128xf32>
    %65 = vector.shape_cast %64 : vector<1x128x128xf32> to vector<128x128xf32>
    %cst_72 = arith.constant dense<0.000000e+00> : vector<208x128xf32>
    %66 = tpu.matmul %63, %65, %cst_72 {dimension_numbers = #tpu.dot_dimension_numbers<[1], [0], [0], [1], [0, 0, 1, 1], [], []>} : vector<208x128xf32>, vector<128x128xf32>, vector<208x128xf32> -> vector<208x128xf32>
    %67 = arith.addf %62, %66 : vector<208x128xf32>
    %c17_73 = arith.constant 17 : index
    %c0_74 = arith.constant 0 : index
    %68 = vector.load %arg10[%c17_73, %c0_74] : memref<232x128xf32, #tpu.memory_space<vmem>>, vector<208x128xf32>
    %c3_75 = arith.constant 3 : index
    %c0_76 = arith.constant 0 : index
    %c0_77 = arith.constant 0 : index
    %69 = vector.load %arg6[%c3_75, %c0_76, %c0_77] : memref<4x128x128xf32, #tpu.memory_space<vmem>>, vector<1x128x128xf32>
    %70 = vector.shape_cast %69 : vector<1x128x128xf32> to vector<128x128xf32>
    %cst_78 = arith.constant dense<0.000000e+00> : vector<208x128xf32>
    %71 = tpu.matmul %68, %70, %cst_78 {dimension_numbers = #tpu.dot_dimension_numbers<[1], [0], [0], [1], [0, 0, 1, 1], [], []>} : vector<208x128xf32>, vector<128x128xf32>, vector<208x128xf32> -> vector<208x128xf32>
    %72 = arith.addf %67, %71 : vector<208x128xf32>
    %c0_79 = arith.constant 0 : index
    %c0_80 = arith.constant 0 : index
    %73 = vector.load %arg7[%c0_79, %c0_80] : memref<1x128xf32, #tpu.memory_space<vmem>>, vector<1x128xf32>
    %74 = vector.broadcast %73 : vector<1x128xf32> to vector<208x128xf32>
    %75 = arith.addf %72, %74 : vector<208x128xf32>
    %cst_81 = arith.constant 0.000000e+00 : f32
    %76 = vector.broadcast %cst_81 : f32 to vector<208x128xf32>
    %77 = arith.maximumf %75, %76 : vector<208x128xf32>
    %78 = arith.truncf %77 : vector<208x128xf32> to vector<208x128xbf16>
    %c0_82 = arith.constant 0 : index
    %c0_83 = arith.constant 0 : index
    %c0_84 = arith.constant 0 : index
    %79 = vector.load %arg8[%c0_82, %c0_83, %c0_84] : memref<1x208x128xbf16, #tpu.memory_space<vmem>>, vector<1x208x128xbf16>
    %80 = vector.shape_cast %79 : vector<1x208x128xbf16> to vector<208x128xbf16>
    %81 = vector.shape_cast %78 : vector<208x128xbf16> to vector<1x208x128xbf16>
    tpu.vector_store %arg8[%c0_82, %c0_83, %c0_84], %81 {strides = array<i32>} : memref<1x208x128xbf16, #tpu.memory_space<vmem>>, vector<1x208x128xbf16>,
    return
  }
  func.func @transform_0(%arg0: i32) -> (i32, i32, i32) {
    %c0_i32 = arith.constant 0 : i32
    %c0_i32_0 = arith.constant 0 : i32
    %c0_i32_1 = arith.constant 0 : i32
    return %arg0, %c0_i32, %c0_i32_0 : i32, i32, i32
  }
  func.func @transform_1(%arg0: i32) -> (i32, i32, i32) {
    %c0_i32 = arith.constant 0 : i32
    %c0_i32_0 = arith.constant 0 : i32
    %c0_i32_1 = arith.constant 0 : i32
    %c0_i32_2 = arith.constant 0 : i32
    return %c0_i32, %c0_i32_0, %c0_i32_1 : i32, i32, i32
  }
  func.func @transform_2(%arg0: i32) -> (i32, i32) {
    %c0_i32 = arith.constant 0 : i32
    %c0_i32_0 = arith.constant 0 : i32
    %c0_i32_1 = arith.constant 0 : i32
    return %c0_i32, %c0_i32_0 : i32, i32
  }
  func.func @transform_3(%arg0: i32) -> (i32, i32, i32) {
    %c0_i32 = arith.constant 0 : i32
    %c0_i32_0 = arith.constant 0 : i32
    %c0_i32_1 = arith.constant 0 : i32
    %c0_i32_2 = arith.constant 0 : i32
    return %c0_i32, %c0_i32_0, %c0_i32_1 : i32, i32, i32
  }
  func.func @transform_4(%arg0: i32) -> (i32, i32) {
    %c0_i32 = arith.constant 0 : i32
    %c0_i32_0 = arith.constant 0 : i32
    %c0_i32_1 = arith.constant 0 : i32
    return %c0_i32, %c0_i32_0 : i32, i32
  }
  func.func @transform_5(%arg0: i32) -> (i32, i32, i32) {
    %c0_i32 = arith.constant 0 : i32
    %c0_i32_0 = arith.constant 0 : i32
    %c0_i32_1 = arith.constant 0 : i32
    %c0_i32_2 = arith.constant 0 : i32
    return %c0_i32, %c0_i32_0, %c0_i32_1 : i32, i32, i32
  }
  func.func @transform_6(%arg0: i32) -> (i32, i32) {
    %c0_i32 = arith.constant 0 : i32
    %c0_i32_0 = arith.constant 0 : i32
    %c0_i32_1 = arith.constant 0 : i32
    return %c0_i32, %c0_i32_0 : i32, i32
  }
  func.func @transform_7(%arg0: i32) -> (i32, i32, i32) {
    %c0_i32 = arith.constant 0 : i32
    %c0_i32_0 = arith.constant 0 : i32
    %c0_i32_1 = arith.constant 0 : i32
    return %arg0, %c0_i32, %c0_i32_0 : i32, i32, i32
  }
}

module attributes {stable_mosaic.version = 11 : i64} {
  func.func @_fc_stack_kernel(%arg0: i32, %arg1: memref<2x3328xbf16, #tpu.memory_space<vmem>>, %arg2: memref<3328x128xbf16, #tpu.memory_space<vmem>>, %arg3: memref<1x128xf32, #tpu.memory_space<vmem>>, %arg4: memref<128x128xf32, #tpu.memory_space<vmem>>, %arg5: memref<1x128xf32, #tpu.memory_space<vmem>>, %arg6: memref<128x128xf32, #tpu.memory_space<vmem>>, %arg7: memref<1x128xf32, #tpu.memory_space<vmem>>, %arg8: memref<128x128xf32, #tpu.memory_space<vmem>>, %arg9: memref<1x128xf32, #tpu.memory_space<vmem>>, %arg10: memref<2x128xf32, #tpu.memory_space<vmem>>, %arg11: memref<2x128xf32, #tpu.memory_space<vmem>>) attributes {dimension_semantics = [#tpu.dimension_semantics<arbitrary>], iteration_bounds = array<i64: 8>, scalar_prefetch = 0 : i64, scratch_operands = 1 : i64, tpu.core_type = #tpu.core_type<tc>, window_params = [{transform_indices = @transform_0, window_bounds = array<i64: 2, 3328>}, {transform_indices = @transform_1, window_bounds = array<i64: 3328, 128>}, {pipeline_mode = #tpu.pipeline_mode<synchronous>, transform_indices = @transform_2, window_bounds = array<i64: 1, 128>}, {pipeline_mode = #tpu.pipeline_mode<synchronous>, transform_indices = @transform_3, window_bounds = array<i64: 128, 128>}, {pipeline_mode = #tpu.pipeline_mode<synchronous>, transform_indices = @transform_4, window_bounds = array<i64: 1, 128>}, {pipeline_mode = #tpu.pipeline_mode<synchronous>, transform_indices = @transform_5, window_bounds = array<i64: 128, 128>}, {pipeline_mode = #tpu.pipeline_mode<synchronous>, transform_indices = @transform_6, window_bounds = array<i64: 1, 128>}, {pipeline_mode = #tpu.pipeline_mode<synchronous>, transform_indices = @transform_7, window_bounds = array<i64: 128, 128>}, {pipeline_mode = #tpu.pipeline_mode<synchronous>, transform_indices = @transform_8, window_bounds = array<i64: 1, 128>}, {pipeline_mode = #tpu.pipeline_mode<synchronous>, transform_indices = @transform_9, window_bounds = array<i64: 2, 128>}]} {
    %c0_i32 = arith.constant 0 : i32
    %0 = arith.cmpi eq, %arg0, %c0_i32 : i32
    %1 = arith.extui %0 : i1 to i32
    %c0_i32_0 = arith.constant 0 : i32
    %2 = arith.cmpi ne, %1, %c0_i32_0 : i32
    scf.if %2 {
      %cst_9 = arith.constant 0.000000e+00 : f32
      %12 = vector.broadcast %cst_9 : f32 to vector<2x128xf32>
      %c0_10 = arith.constant 0 : index
      %c0_11 = arith.constant 0 : index
      %13 = vector.load %arg11[%c0_10, %c0_11] : memref<2x128xf32, #tpu.memory_space<vmem>>, vector<2x128xf32>
      tpu.vector_store %arg11[%c0_10, %c0_11], %12 {strides = array<i32>} : memref<2x128xf32, #tpu.memory_space<vmem>>, vector<2x128xf32>,
    } else {
    }
    %c0 = arith.constant 0 : index
    %c0_1 = arith.constant 0 : index
    %3 = vector.load %arg11[%c0, %c0_1] : memref<2x128xf32, #tpu.memory_space<vmem>>, vector<2x128xf32>
    %c0_2 = arith.constant 0 : index
    %c0_3 = arith.constant 0 : index
    %4 = vector.load %arg1[%c0_2, %c0_3] : memref<2x3328xbf16, #tpu.memory_space<vmem>>, vector<2x3328xbf16>
    %c0_4 = arith.constant 0 : index
    %c0_5 = arith.constant 0 : index
    %5 = vector.load %arg2[%c0_4, %c0_5] : memref<3328x128xbf16, #tpu.memory_space<vmem>>, vector<3328x128xbf16>
    %cst = arith.constant dense<0.000000e+00> : vector<2x128xf32>
    %6 = tpu.matmul %4, %5, %cst {dimension_numbers = #tpu.dot_dimension_numbers<[1], [0], [0], [1], [0, 0, 1, 1], [], []>} : vector<2x3328xbf16>, vector<3328x128xbf16>, vector<2x128xf32> -> vector<2x128xf32>
    %7 = arith.addf %3, %6 : vector<2x128xf32>
    %c0_6 = arith.constant 0 : index
    %c0_7 = arith.constant 0 : index
    %8 = vector.load %arg11[%c0_6, %c0_7] : memref<2x128xf32, #tpu.memory_space<vmem>>, vector<2x128xf32>
    tpu.vector_store %arg11[%c0_6, %c0_7], %7 {strides = array<i32>} : memref<2x128xf32, #tpu.memory_space<vmem>>, vector<2x128xf32>,
    %c7_i32 = arith.constant 7 : i32
    %9 = arith.cmpi eq, %arg0, %c7_i32 : i32
    %10 = arith.extui %9 : i1 to i32
    %c0_i32_8 = arith.constant 0 : i32
    %11 = arith.cmpi ne, %10, %c0_i32_8 : i32
    scf.if %11 {
      %c0_9 = arith.constant 0 : index
      %c0_10 = arith.constant 0 : index
      %12 = vector.load %arg11[%c0_9, %c0_10] : memref<2x128xf32, #tpu.memory_space<vmem>>, vector<2x128xf32>
      %c0_11 = arith.constant 0 : index
      %c0_12 = arith.constant 0 : index
      %13 = vector.load %arg3[%c0_11, %c0_12] : memref<1x128xf32, #tpu.memory_space<vmem>>, vector<1x128xf32>
      %14 = vector.broadcast %13 : vector<1x128xf32> to vector<2x128xf32>
      %15 = arith.addf %12, %14 : vector<2x128xf32>
      %cst_13 = arith.constant 0.000000e+00 : f32
      %16 = vector.broadcast %cst_13 : f32 to vector<2x128xf32>
      %17 = arith.maximumf %15, %16 : vector<2x128xf32>
      %c0_14 = arith.constant 0 : index
      %c0_15 = arith.constant 0 : index
      %18 = vector.load %arg4[%c0_14, %c0_15] : memref<128x128xf32, #tpu.memory_space<vmem>>, vector<128x128xf32>
      %cst_16 = arith.constant dense<0.000000e+00> : vector<2x128xf32>
      %19 = tpu.matmul %17, %18, %cst_16 {dimension_numbers = #tpu.dot_dimension_numbers<[1], [0], [0], [1], [0, 0, 1, 1], [], []>} : vector<2x128xf32>, vector<128x128xf32>, vector<2x128xf32> -> vector<2x128xf32>
      %c0_17 = arith.constant 0 : index
      %c0_18 = arith.constant 0 : index
      %20 = vector.load %arg5[%c0_17, %c0_18] : memref<1x128xf32, #tpu.memory_space<vmem>>, vector<1x128xf32>
      %21 = vector.broadcast %20 : vector<1x128xf32> to vector<2x128xf32>
      %22 = arith.addf %19, %21 : vector<2x128xf32>
      %23 = math.tanh %22 : vector<2x128xf32>
      %c0_19 = arith.constant 0 : index
      %c0_20 = arith.constant 0 : index
      %24 = vector.load %arg6[%c0_19, %c0_20] : memref<128x128xf32, #tpu.memory_space<vmem>>, vector<128x128xf32>
      %cst_21 = arith.constant dense<0.000000e+00> : vector<2x128xf32>
      %25 = tpu.matmul %23, %24, %cst_21 {dimension_numbers = #tpu.dot_dimension_numbers<[1], [0], [0], [1], [0, 0, 1, 1], [], []>} : vector<2x128xf32>, vector<128x128xf32>, vector<2x128xf32> -> vector<2x128xf32>
      %c0_22 = arith.constant 0 : index
      %c0_23 = arith.constant 0 : index
      %26 = vector.load %arg7[%c0_22, %c0_23] : memref<1x128xf32, #tpu.memory_space<vmem>>, vector<1x128xf32>
      %27 = vector.broadcast %26 : vector<1x128xf32> to vector<2x128xf32>
      %28 = arith.addf %25, %27 : vector<2x128xf32>
      %29 = math.tanh %28 : vector<2x128xf32>
      %c0_24 = arith.constant 0 : index
      %c0_25 = arith.constant 0 : index
      %30 = vector.load %arg8[%c0_24, %c0_25] : memref<128x128xf32, #tpu.memory_space<vmem>>, vector<128x128xf32>
      %cst_26 = arith.constant dense<0.000000e+00> : vector<2x128xf32>
      %31 = tpu.matmul %29, %30, %cst_26 {dimension_numbers = #tpu.dot_dimension_numbers<[1], [0], [0], [1], [0, 0, 1, 1], [], []>} : vector<2x128xf32>, vector<128x128xf32>, vector<2x128xf32> -> vector<2x128xf32>
      %c0_27 = arith.constant 0 : index
      %c0_28 = arith.constant 0 : index
      %32 = vector.load %arg9[%c0_27, %c0_28] : memref<1x128xf32, #tpu.memory_space<vmem>>, vector<1x128xf32>
      %33 = vector.broadcast %32 : vector<1x128xf32> to vector<2x128xf32>
      %34 = arith.addf %31, %33 : vector<2x128xf32>
      %c0_29 = arith.constant 0 : index
      %c0_30 = arith.constant 0 : index
      %35 = vector.load %arg10[%c0_29, %c0_30] : memref<2x128xf32, #tpu.memory_space<vmem>>, vector<2x128xf32>
      tpu.vector_store %arg10[%c0_29, %c0_30], %34 {strides = array<i32>} : memref<2x128xf32, #tpu.memory_space<vmem>>, vector<2x128xf32>,
    } else {
    }
    return
  }
  func.func @transform_0(%arg0: i32) -> (i32, i32) {
    %c0_i32 = arith.constant 0 : i32
    %c0_i32_0 = arith.constant 0 : i32
    return %c0_i32, %arg0 : i32, i32
  }
  func.func @transform_1(%arg0: i32) -> (i32, i32) {
    %c0_i32 = arith.constant 0 : i32
    %c0_i32_0 = arith.constant 0 : i32
    return %arg0, %c0_i32 : i32, i32
  }
  func.func @transform_2(%arg0: i32) -> (i32, i32) {
    %c0_i32 = arith.constant 0 : i32
    %c0_i32_0 = arith.constant 0 : i32
    %c0_i32_1 = arith.constant 0 : i32
    return %c0_i32, %c0_i32_0 : i32, i32
  }
  func.func @transform_3(%arg0: i32) -> (i32, i32) {
    %c0_i32 = arith.constant 0 : i32
    %c0_i32_0 = arith.constant 0 : i32
    %c0_i32_1 = arith.constant 0 : i32
    return %c0_i32, %c0_i32_0 : i32, i32
  }
  func.func @transform_4(%arg0: i32) -> (i32, i32) {
    %c0_i32 = arith.constant 0 : i32
    %c0_i32_0 = arith.constant 0 : i32
    %c0_i32_1 = arith.constant 0 : i32
    return %c0_i32, %c0_i32_0 : i32, i32
  }
  func.func @transform_5(%arg0: i32) -> (i32, i32) {
    %c0_i32 = arith.constant 0 : i32
    %c0_i32_0 = arith.constant 0 : i32
    %c0_i32_1 = arith.constant 0 : i32
    return %c0_i32, %c0_i32_0 : i32, i32
  }
  func.func @transform_6(%arg0: i32) -> (i32, i32) {
    %c0_i32 = arith.constant 0 : i32
    %c0_i32_0 = arith.constant 0 : i32
    %c0_i32_1 = arith.constant 0 : i32
    return %c0_i32, %c0_i32_0 : i32, i32
  }
  func.func @transform_7(%arg0: i32) -> (i32, i32) {
    %c0_i32 = arith.constant 0 : i32
    %c0_i32_0 = arith.constant 0 : i32
    %c0_i32_1 = arith.constant 0 : i32
    return %c0_i32, %c0_i32_0 : i32, i32
  }
  func.func @transform_8(%arg0: i32) -> (i32, i32) {
    %c0_i32 = arith.constant 0 : i32
    %c0_i32_0 = arith.constant 0 : i32
    %c0_i32_1 = arith.constant 0 : i32
    return %c0_i32, %c0_i32_0 : i32, i32
  }
  func.func @transform_9(%arg0: i32) -> (i32, i32) {
    %c0_i32 = arith.constant 0 : i32
    %c0_i32_0 = arith.constant 0 : i32
    %c0_i32_1 = arith.constant 0 : i32
    return %c0_i32, %c0_i32_0 : i32, i32
  }
}

</mosaic_0001>

<bundles_post_ra>
// kernel: cnn_policy_forward.2
= control target key start
LH: loop header
LB: loop body
LE: loop exit
PB: predicated region body
PF: predicated region fallthrough
CT: control target
= control target key end

     0   :  { %12 = vsyncpa [#allocation5], 0  ;;  %s7920_s0 = inlined_call_operand.vmem [shape: f32[2,280,128], index: 0, kind: input, shape index: {}]   ;;  %s7921_s1 = inlined_call_operand.hbm [shape: f32[4,128,128], index: 1, kind: input, shape index: {}]   ;;  %s7922_s2 = inlined_call_operand.hbm [shape: f32[1,128], index: 2, kind: input, shape index: {}]   ;;  %s7923_s3 = inlined_call_operand.hbm [shape: f32[4,128,128], index: 3, kind: input, shape index: {}]   ;;  %s7924_s4 = inlined_call_operand.hbm [shape: f32[1,128], index: 4, kind: input, shape index: {}]   ;;  %s7925_s5 = inlined_call_operand.hbm [shape: f32[4,128,128], index: 5, kind: input, shape index: {}]   ;;  %s7926_s6 = inlined_call_operand.hbm [shape: f32[1,128], index: 6, kind: input, shape index: {}]   ;;  %s7927_s7 = inlined_call_operand.vmem [shape: bf16[2,208,128], index: 7, kind: output, shape index: {}]  }
   0x1   :  { %13 = vsyncpa [#allocation7], 0 }
   0x2   :  { %14 = vsyncpa [#allocation10], 0 }
   0x3   :  { %15 = vsyncpa [#allocation13], 0  ;;  %s6183_s24 = smov 0  }
   0x4 LB: > { %s6133_s25 = smov [#allocation6]   ;;  %s6189_s27 = sadd.s32 4294967295, %s6131_s24   ;;  %s6131_s24 = sphi %s6183_s24, %s21_s24  }
   0x5   : > { %s230_s26 = sshll.u32 %s6133_s25, 4  ;;  %p4107_p0 = scmp.ge.s32.totalorder %s6131_s24, 1  ;;  %s231_s26 = int_to_ptr.vmem [resolvable:$true] %s230_s26 }
   0x6   : > { %p204_p1 = scmp.lt.s32.totalorder %s6131_s24, 3  ;;  %p5923_p2 = scmp.eq.s32.totalorder %s6189_s27, 0 }
   0x7   : > { %s6134_s29 = smov [#allocation9]   ;;  %s6135_s8 = smov [#allocation4]  }
   0x8   : > { %p6194_p3 = pnand %p4107_p0, %p204_p1  ;;  %s254_s30 = sshll.u32 %s6134_s29, 4  ;;  %s6200_s30 = int_to_ptr.vmem [resolvable:$true] %s254_s30 }
   0x9   : > { %s216_s9 = sshll.u32 %s6135_s8, 4  ;;  %s6136_s11 = smov [#allocation8]   ;;  %s6208_s9 = int_to_ptr.vmem [resolvable:$true] %s216_s9 }
   0xa   : > { %p5904_p4 = pneg %p6194_p3  ;;  %s6210_s12 = sshll.u32 %s6136_s11, 4  ;;  %s241_s12 = int_to_ptr.vmem [resolvable:$true] %s6210_s12 }
   0xb   : > { %s5964_s14 = scalar_lea.vmem %s231_s26, 16  ;;  %s5971_s15 = scalar_lea.vmem %s231_s26, 32 }
   0xc   : > { %p6204_p5 = pnand %p5923_p2, %p5904_p4  ;;  %p5965_p7 = scmp.ne.s32.totalorder %s231_s26, %s5964_s14 }
   0xd   : > { %p5972_p10 = scmp.lt.s32.totalorder %s231_s26, %s231_s26  ;;  %p5973_p11 = scmp.lt.s32.totalorder %s5971_s15, %s5964_s14 }
   0xe   : > { %p6214_p6 = pneg %p6204_p5 }
   0xf   : > { %p5974_p12 = por %p5973_p11, %p5972_p10 }
  0x10   : > { %p5967_p8 = pnand %p5965_p7, %p6214_p6 }
  0x12   : > { %p5968_p9 = pneg %p5967_p8 }
  0x14   : > { %p5975_p13 = pnand %p5974_p12, %p5968_p9 }
  0x16   : > { %5978 = shalt.err (!%p5975_p13)
}
  0x17   : > { %5910 = dma.hbm_to_vmem [thread:$0]  (!%p6204_p5), %s7922_s2, 16, %s231_s26, [#allocation7]  }
  0x18   : > { %s5990_s18 = scalar_lea.vmem %s6200_s30, 16  ;;  %s5997_s19 = scalar_lea.vmem %s6200_s30, 32 }
  0x19   : > { %p5991_p0 = scmp.ne.s32.totalorder %s6200_s30, %s5990_s18  ;;  %p5998_p7 = scmp.lt.s32.totalorder %s6200_s30, %s6200_s30 }
  0x1a   : > { %p5999_p8 = scmp.lt.s32.totalorder %s5997_s19, %s5990_s18 }
  0x1b   : > { %p5993_p1 = pnand %p5991_p0, %p6214_p6 }
  0x1c   : > { %p6000_p9 = por %p5999_p8, %p5998_p7 }
  0x1d   : > { %p5994_p4 = pneg %p5993_p1 }
  0x1f   : > { %p6001_p10 = pnand %p6000_p9, %p5994_p4 }
  0x21   : > { %6004 = shalt.err (!%p6001_p10)
}
  0x22   : > { %5916 = dma.hbm_to_vmem [thread:$0]  (!%p6204_p5), %s7924_s4, 16, %s6200_s30, [#allocation10]  }
  0x23   : > { %s6016_s22 = scalar_lea.vmem %s6208_s9, 8192  ;;  %p6024_p0 = scmp.lt.s32.totalorder %s6208_s9, %s6208_s9 }
  0x24   : > { %p6017_p11 = scmp.ne.s32.totalorder %s6208_s9, %s6016_s22  ;;  %p6025_p1 = scmp.lt.s32.totalorder %s6016_s22, %s6016_s22 }
  0x26   : > { %p6019_p12 = pnand %p6017_p11, %p6214_p6  ;;  %p6026_p4 = por %p6025_p1, %p6024_p0 }
  0x28   : > { %p6020_p13 = pneg %p6019_p12 }
  0x2a   : > { %p6027_p7 = pnand %p6026_p4, %p6020_p13 }
  0x2c   : > { %6030 = shalt.err (!%p6027_p7)
}
  0x2d   : > { %s6137_s23 = smov 128   ;;  %s6138_s25 = smov 8  }
  0x2e   : > { %5907 = dma.hbm_to_vmem [thread:$0]  (!%p6204_p5), %s7921_s1, 8192, %s6208_s9, [#allocation5], %s6137_s23, %s6137_s23, %s6138_s25  }
  0x2f   : > { %s6042_s30 = scalar_lea.vmem %s241_s12, 8192  ;;  %p6050_p11 = scmp.lt.s32.totalorder %s241_s12, %s241_s12 }
  0x30   : > { %p6043_p8 = scmp.ne.s32.totalorder %s241_s12, %s6042_s30  ;;  %p6051_p12 = scmp.lt.s32.totalorder %s6042_s30, %s6042_s30 }
  0x32   : > { %p6045_p9 = pnand %p6043_p8, %p6214_p6  ;;  %p6052_p13 = por %p6051_p12, %p6050_p11 }
  0x34   : > { %p6046_p10 = pneg %p6045_p9 }
  0x36   : > { %p6053_p0 = pnand %p6052_p13, %p6046_p10 }
  0x38   : > { %6056 = shalt.err (!%p6053_p0)
}
  0x39   : > { %5913 = dma.hbm_to_vmem [thread:$0]  (!%p6204_p5), %s7923_s3, 8192, %s241_s12, [#allocation7], %s6137_s23, %s6137_s23, %s6138_s25  }
  0x3a   : > { %s6139_s9 = smov [#allocation11]   ;;  %s6140_s15 = smov [#allocation12]  }
  0x3b   : > { %s264_s14 = sshll.u32 %s6139_s9, 4  ;;  %s278_s16 = sshll.u32 %s6140_s15, 4  ;;  %s265_s14 = int_to_ptr.vmem [resolvable:$true] %s264_s14  ;;  %s279_s16 = int_to_ptr.vmem [resolvable:$true] %s278_s16 }
  0x3c   : > { %s6068_s17 = scalar_lea.vmem %s265_s14, 8192  ;;  %p6076_p8 = scmp.lt.s32.totalorder %s265_s14, %s265_s14 }
  0x3d   : > { %p6069_p1 = scmp.ne.s32.totalorder %s265_s14, %s6068_s17  ;;  %p6077_p9 = scmp.lt.s32.totalorder %s6068_s17, %s6068_s17 }
  0x3f   : > { %p6071_p4 = pnand %p6069_p1, %p6214_p6  ;;  %p6078_p10 = por %p6077_p9, %p6076_p8 }
  0x41   : > { %p6072_p7 = pneg %p6071_p4 }
  0x43   : > { %p6079_p11 = pnand %p6078_p10, %p6072_p7 }
  0x45   : > { %6082 = shalt.err (!%p6079_p11)
}
  0x46   : > { %5919 = dma.hbm_to_vmem [thread:$0]  (!%p6204_p5), %s7925_s5, 8192, %s265_s14, [#allocation10], %s6137_s23, %s6137_s23, %s6138_s25  }
  0x47   : > { %s6094_s19 = scalar_lea.vmem %s279_s16, 16  ;;  %s6101_s20 = scalar_lea.vmem %s279_s16, 32 }
  0x48   : > { %p6095_p12 = scmp.ne.s32.totalorder %s279_s16, %s6094_s19  ;;  %p6102_p1 = scmp.lt.s32.totalorder %s279_s16, %s279_s16 }
  0x49   : > { %p6103_p4 = scmp.lt.s32.totalorder %s6101_s20, %s6094_s19 }
  0x4a   : > { %p6097_p13 = pnand %p6095_p12, %p6214_p6 }
  0x4b   : > { %p6104_p7 = por %p6103_p4, %p6102_p1 }
  0x4c   : > { %p6098_p0 = pneg %p6097_p13 }
  0x4e   : > { %p6105_p8 = pnand %p6104_p7, %p6098_p0 }
  0x50   : > { %6108 = shalt.err (!%p6105_p8)
}
  0x51   : > { %5922 = dma.hbm_to_vmem [thread:$0]  (!%p6204_p5), %s7926_s6, 16, %s279_s16, [#allocation13]  }
  0x52   : > { %299 = sbr.rel (%p6194_p3) target bundleno = 1091 (0x443), region = 48 }
  0x57   : > { %6114 = dma.done.wait (%p5923_p2), [#allocation5], 8192  }
  0x58   : > { %6116 = vsyncadd (%p5923_p2), [#allocation5], 4294959104 }
  0x59   : > { %6118 = dma.done.wait (%p5923_p2), [#allocation7], 8208  }
  0x5a   : > { %6120 = vsyncadd (%p5923_p2), [#allocation7], 4294959088 }
  0x5b   : > { %6122 = dma.done.wait (%p5923_p2), [#allocation10], 8208  }
  0x5c   : > { %6124 = vsyncadd (%p5923_p2), [#allocation10], 4294959088 }
  0x5d   : > { %6126 = dma.done.wait (%p5923_p2), [#allocation13], 16  }
  0x5e   : > { %6128 = vsyncadd (%p5923_p2), [#allocation13], 4294967280  ;;  %v457_v0 = vld [vmem:[#allocation4 + $0xf8] sm:$0xff]  ;;  %v456_v2 = vld [vmem:[#allocation4 + $0xf0] sm:$0xff]  ;;  %p351_p2 = scmp.lt.s32.totalorder %s6189_s27, 1  ;;  %vm6142_vm0 = vmmov 0  }
  0x5f   : > { %v408_v1 = vld [vmem:[#allocation4 + $0x78] sm:$0xff]  ;;  %4798 = vmatprep.subr.mxu0 %v457_v0  ;;  %v407_v3 = vld [vmem:[#allocation4 + $0x70] sm:$0xff]  ;;  %v455_v4 = vld [vmem:[#allocation4 + $0xe8] sm:$0xff] }
  0x60   : > { %4878 = vmatprep.subr.mxu1 %v408_v1  ;;  %4799 = vmatpush3.msra.mxu0 %v457_v0  ;;  %v406_v5 = vld [vmem:[#allocation4 + $0x68] sm:$0xff]  ;;  %v454_v6 = vld [vmem:[#allocation4 + $0xe0] sm:$0xff]  ;;  %v453_v8 = vld [vmem:[#allocation4 + $0xd8] sm:$0xff]  ;;  %s7990_s27 = smov (!%p351_p2, %s6189_s27), 1 }
  0x61   : > { %4879 = vmatpush3.msra.mxu1 %v408_v1  ;;  %4800 = vmatprep.subr.mxu0 %v456_v2  ;;  %v405_v7 = vld [vmem:[#allocation4 + $0x60] sm:$0xff]  ;;  %v404_v9 = vld [vmem:[#allocation4 + $0x58] sm:$0xff]  ;;  %v452_v10 = vld [vmem:[#allocation4 + $0xd0] sm:$0xff]  ;;  %s5878_s28 = smul.u32 280, %s7990_s27 }
  0x62   : > { %4880 = vmatprep.subr.mxu1 %v407_v3  ;;  %4801 = vmatpush3.msra.mxu0 %v456_v2  ;;  %v403_v11 = vld [vmem:[#allocation4 + $0x50] sm:$0xff]  ;;  %v451_v12 = vld [vmem:[#allocation4 + $0xc8] sm:$0xff]  ;;  %v450_v14 = vld [vmem:[#allocation4 + $0xc0] sm:$0xff]  ;;  %s5879_s25 = smul.u32 104, %s7990_s27 }
  0x63   : > { %4881 = vmatpush3.msra.mxu1 %v407_v3  ;;  %4802 = vmatprep.subr.mxu0 %v455_v4  ;;  %v402_v13 = vld [vmem:[#allocation4 + $0x48] sm:$0xff]  ;;  %v401_v15 = vld [vmem:[#allocation4 + $0x40] sm:$0xff]  ;;  %v449_v16 = vld [vmem:[#allocation4 + $0xb8] sm:$0xff]  ;;  %s6307_s23 = scalar_lea.vmem %s7920_s0, %s5878_s28 }
  0x64   : > { %4882 = vmatprep.subr.mxu1 %v406_v5  ;;  %4803 = vmatpush3.msra.mxu0 %v455_v4  ;;  %v400_v17 = vld [vmem:[#allocation4 + $0x38] sm:$0xff]  ;;  %v448_v18 = vld [vmem:[#allocation4 + $0xb0] sm:$0xff]  ;;  %v447_v20 = vld [vmem:[#allocation4 + $0xa8] sm:$0xff]  ;;  %s7839_s29 = scalar_lea.vmem %s7927_s7, %s5879_s25 }
  0x65   : > { %4883 = vmatpush3.msra.mxu1 %v406_v5  ;;  %4804 = vmatprep.subr.mxu0 %v454_v6  ;;  %v399_v19 = vld [vmem:[#allocation4 + $0x30] sm:$0xff]  ;;  %v398_v21 = vld [vmem:[#allocation4 + $0x28] sm:$0xff]  ;;  %v446_v22 = vld [vmem:[#allocation4 + $0xa0] sm:$0xff] }
  0x66   : > { %4884 = vmatprep.subr.mxu1 %v405_v7  ;;  %4805 = vmatpush3.msra.mxu0 %v454_v6  ;;  %v397_v23 = vld [vmem:[#allocation4 + $0x20] sm:$0xff]  ;;  %v445_v24 = vld [vmem:[#allocation4 + $0x98] sm:$0xff]  ;;  %v444_v26 = vld [vmem:[#allocation4 + $0x90] sm:$0xff] }
  0x67   : > { %4885 = vmatpush3.msra.mxu1 %v405_v7  ;;  %4806 = vmatprep.subr.mxu0 %v453_v8  ;;  %v396_v25 = vld [vmem:[#allocation4 + $0x18] sm:$0xff]  ;;  %v395_v27 = vld [vmem:[#allocation4 + $0x10] sm:$0xff]  ;;  %v443_v28 = vld [vmem:[#allocation4 + $0x88] sm:$0xff] }
  0x68   : > { %4886 = vmatprep.subr.mxu1 %v404_v9  ;;  %4807 = vmatpush3.msra.mxu0 %v453_v8  ;;  %v394_v29 = vld [vmem:[#allocation4 + $0x8] sm:$0xff]  ;;  %v442_v30 = vld [vmem:[#allocation4 + $0x80] sm:$0xff]  ;;  %v361_v33 = vld [vmem:[%s6307_s23] sm:$0xff] }
  0x69   : > { %4887 = vmatpush3.msra.mxu1 %v404_v9  ;;  %4808 = vmatprep.subr.mxu0 %v452_v10  ;;  %v393_v31 = vld [vmem:[#allocation4] sm:$0xff]  ;;  %v956_v36 = vld [vmem:[#allocation4 + $0x178] sm:$0xff]  ;;  %v6314_v38 = vld [vmem:[%s6307_s23 + $0x11] sm:$0xff] }
  0x6a   : > { %4888 = vmatprep.subr.mxu1 %v403_v11  ;;  %4809 = vmatpush3.msra.mxu0 %v452_v10  ;;  %v409_v32 = vld [vmem:[%s6307_s23 + $0x1] sm:$0xff]  ;;  %v410_v34 = vld [vmem:[%s6307_s23 + $0x9] sm:$0xff]  ;;  %v6320_v40 = vld [vmem:[%s6307_s23 + $0x19] sm:$0xff] }
  0x6b   : > { %4889 = vmatpush3.msra.mxu1 %v403_v11  ;;  %4810 = vmatprep.subr.mxu0 %v451_v12  ;;  %v362_v35 = vld [vmem:[%s6307_s23 + $0x8] sm:$0xff]  ;;  %v1262_v37 = vld [vmem:[#allocation4 + $0x1f8] sm:$0xff]  ;;  %v6317_v39 = vld [vmem:[%s6307_s23 + $0x10] sm:$0xff] }
  0x6c   : > { %4890 = vmatprep.subr.mxu1 %v402_v13  ;;  %4811 = vmatpush3.msra.mxu0 %v451_v12  ;;  %v6323_v41 = vld [vmem:[%s6307_s23 + $0x18] sm:$0xff]  ;;  %v6328_v44 = vld [vmem:[%s6307_s23 + $0x21] sm:$0xff]  ;;  %v6336_v46 = vld [vmem:[%s6307_s23 + $0x29] sm:$0xff] }
  0x6d   : > { %4891 = vmatpush3.msra.mxu1 %v402_v13  ;;  %4812 = vmatprep.subr.mxu0 %v450_v14  ;;  %v955_v42 = vld [vmem:[#allocation4 + $0x170] sm:$0xff]  ;;  %v6333_v45 = vld [vmem:[%s6307_s23 + $0x20] sm:$0xff]  ;;  %v6339_v47 = vld [vmem:[%s6307_s23 + $0x28] sm:$0xff] }
  0x6e   : > { %4892 = vmatprep.subr.mxu1 %v401_v15  ;;  %4813 = vmatpush3.msra.mxu0 %v450_v14  ;;  %v1261_v43 = vld [vmem:[#allocation4 + $0x1f0] sm:$0xff]  ;;  %v954_v48 = vld [vmem:[#allocation4 + $0x168] sm:$0xff]  ;;  %v953_v54 = vld [vmem:[#allocation4 + $0x160] sm:$0xff] }
  0x6f   : > { %4893 = vmatpush3.msra.mxu1 %v401_v15  ;;  %4814 = vmatprep.subr.mxu0 %v449_v16  ;;  %v1260_v49 = vld [vmem:[#allocation4 + $0x1e8] sm:$0xff]  ;;  %v6352_v52 = vld [vmem:[%s6307_s23 + $0x39] sm:$0xff]  ;;  %v1259_v55 = vld [vmem:[#allocation4 + $0x1e0] sm:$0xff] }
  0x70   : > { %4894 = vmatprep.subr.mxu1 %v400_v17  ;;  %4815 = vmatpush3.msra.mxu0 %v449_v16  ;;  %v6344_v50 = vld [vmem:[%s6307_s23 + $0x31] sm:$0xff]  ;;  %v6360_v56 = vld [vmem:[%s6307_s23 + $0x41] sm:$0xff]  ;;  %v6368_v58 = vld [vmem:[%s6307_s23 + $0x49] sm:$0xff] }
  0x71   : > { %4895 = vmatpush3.msra.mxu1 %v400_v17  ;;  %4816 = vmatprep.subr.mxu0 %v448_v18  ;;  %v6349_v51 = vld [vmem:[%s6307_s23 + $0x30] sm:$0xff]  ;;  %v6355_v53 = vld [vmem:[%s6307_s23 + $0x38] sm:$0xff]  ;;  %v6365_v57 = vld [vmem:[%s6307_s23 + $0x40] sm:$0xff] }
  0x72   : > { %4896 = vmatprep.subr.mxu1 %v399_v19  ;;  %4817 = vmatpush3.msra.mxu0 %v448_v18  ;;  %v6371_v59 = vld [vmem:[%s6307_s23 + $0x48] sm:$0xff]  ;;  %v952_v60 = vld [vmem:[#allocation4 + $0x158] sm:$0xff]  ;;  %v6376_v62 = vld [vmem:[%s6307_s23 + $0x51] sm:$0xff] }
  0x73   : > { %4897 = vmatpush3.msra.mxu1 %v399_v19  ;;  %4818 = vmatprep.subr.mxu0 %v447_v20  ;;  %v1258_v61 = vld [vmem:[#allocation4 + $0x1d8] sm:$0xff]  ;;  %v6381_v63 = vld [vmem:[%s6307_s23 + $0x50] sm:$0xff]  ;;  %v6387_v1 = vld [vmem:[%s6307_s23 + $0x58] sm:$0xff] }
  0x74   : > { %4898 = vmatprep.subr.mxu1 %v398_v21  ;;  %4819 = vmatpush3.msra.mxu0 %v447_v20  ;;  %v6384_v0 = vld [vmem:[%s6307_s23 + $0x59] sm:$0xff]  ;;  %v6392_v4 = vld [vmem:[%s6307_s23 + $0x61] sm:$0xff]  ;;  %v6400_v6 = vld [vmem:[%s6307_s23 + $0x69] sm:$0xff] }
  0x75   : > { %4899 = vmatpush3.msra.mxu1 %v398_v21  ;;  %4820 = vmatprep.subr.mxu0 %v446_v22  ;;  %v951_v2 = vld [vmem:[#allocation4 + $0x150] sm:$0xff]  ;;  %v6397_v5 = vld [vmem:[%s6307_s23 + $0x60] sm:$0xff]  ;;  %v6403_v7 = vld [vmem:[%s6307_s23 + $0x68] sm:$0xff] }
  0x76   : > { %4900 = vmatprep.subr.mxu1 %v397_v23  ;;  %4821 = vmatpush3.msra.mxu0 %v446_v22  ;;  %v1257_v3 = vld [vmem:[#allocation4 + $0x1d0] sm:$0xff]  ;;  %v950_v8 = vld [vmem:[#allocation4 + $0x148] sm:$0xff]  ;;  %v949_v14 = vld [vmem:[#allocation4 + $0x140] sm:$0xff] }
  0x77   : > { %4901 = vmatpush3.msra.mxu1 %v397_v23  ;;  %4822 = vmatprep.subr.mxu0 %v445_v24  ;;  %v1256_v9 = vld [vmem:[#allocation4 + $0x1c8] sm:$0xff]  ;;  %v6416_v12 = vld [vmem:[%s6307_s23 + $0x79] sm:$0xff]  ;;  %v1255_v15 = vld [vmem:[#allocation4 + $0x1c0] sm:$0xff] }
  0x78   : > { %4902 = vmatprep.subr.mxu1 %v396_v25  ;;  %4823 = vmatpush3.msra.mxu0 %v445_v24  ;;  %v6408_v10 = vld [vmem:[%s6307_s23 + $0x71] sm:$0xff]  ;;  %v6424_v16 = vld [vmem:[%s6307_s23 + $0x81] sm:$0xff]  ;;  %v6432_v18 = vld [vmem:[%s6307_s23 + $0x89] sm:$0xff] }
  0x79   : > { %4903 = vmatpush3.msra.mxu1 %v396_v25  ;;  %4824 = vmatprep.subr.mxu0 %v444_v26  ;;  %v6413_v11 = vld [vmem:[%s6307_s23 + $0x70] sm:$0xff]  ;;  %v6419_v13 = vld [vmem:[%s6307_s23 + $0x78] sm:$0xff]  ;;  %v6429_v17 = vld [vmem:[%s6307_s23 + $0x80] sm:$0xff] }
  0x7a   : > { %4904 = vmatprep.subr.mxu1 %v395_v27  ;;  %4825 = vmatpush3.msra.mxu0 %v444_v26  ;;  %v6435_v19 = vld [vmem:[%s6307_s23 + $0x88] sm:$0xff]  ;;  %v948_v20 = vld [vmem:[#allocation4 + $0x138] sm:$0xff]  ;;  %v6440_v22 = vld [vmem:[%s6307_s23 + $0x91] sm:$0xff] }
  0x7b   : > { %4905 = vmatpush3.msra.mxu1 %v395_v27  ;;  %4826 = vmatprep.subr.mxu0 %v443_v28  ;;  %v1254_v21 = vld [vmem:[#allocation4 + $0x1b8] sm:$0xff]  ;;  %v6445_v23 = vld [vmem:[%s6307_s23 + $0x90] sm:$0xff]  ;;  %v6451_v25 = vld [vmem:[%s6307_s23 + $0x98] sm:$0xff] }
  0x7c   : > { %4906 = vmatprep.subr.mxu1 %v394_v29  ;;  %4827 = vmatpush3.msra.mxu0 %v443_v28  ;;  %v6448_v24 = vld [vmem:[%s6307_s23 + $0x99] sm:$0xff]  ;;  %v6456_v28 = vld [vmem:[%s6307_s23 + $0xa1] sm:$0xff] }
  0x7d   : > { %4907 = vmatpush3.msra.mxu1 %v394_v29  ;;  %4828 = vmatprep.subr.mxu0 %v442_v30  ;;  %v947_v26 = vld [vmem:[#allocation4 + $0x130] sm:$0xff]  ;;  %v6461_v29 = vld [vmem:[%s6307_s23 + $0xa0] sm:$0xff] }
  0x7e   : > { %4908 = vmatprep.subr.mxu1 %v393_v31  ;;  %4829 = vmatpush3.msra.mxu0 %v442_v30  ;;  %v1253_v27 = vld [vmem:[#allocation4 + $0x1b0] sm:$0xff]  ;;  %v6464_v30 = vld [vmem:[%s6307_s23 + $0xa9] sm:$0xff] }
  0x7f   : > { %4830 = vmatprep.mubr.f32.mxu0 %v409_v32  ;;  %4909 = vmatpush3.msra.mxu1 %v393_v31  ;;  %v6467_v31 = vld [vmem:[%s6307_s23 + $0xa8] sm:$0xff]  ;;  %v946_v32 = vld [vmem:[#allocation4 + $0x128] sm:$0xff] }
  0x80   : > { %4910 = vmatprep.mubr.f32.mxu1 %v361_v33  ;;  %4831 = vmatmul.mubr.f32.vlgmr.msra.gmra.mxu0 %v410_v34  ;;  %v1252_v33 = vld [vmem:[#allocation4 + $0x1a8] sm:$0xff] }
  0x81   : > { %4911 = vmatmul.mubr.f32.vlgmr.msra.gmra.mxu1 %v362_v35  ;;  %4958 = vmatprep.subr.mxu0 %v956_v36  ;;  %v6472_v34 = vld [vmem:[%s6307_s23 + $0xb1] sm:$0xff] }
  0x82   : > { %5038 = vmatprep.subr.mxu1 %v1262_v37  ;;  %4959 = vmatpush3.msra.mxu0 %v956_v36  ;;  %v6477_v35 = vld [vmem:[%s6307_s23 + $0xb0] sm:$0xff]  ;;  %v6480_v36 = vld [vmem:[%s6307_s23 + $0xb9] sm:$0xff] }
  0x83   : > { %4833 = vmatprep.mubr.f32.mxu0 %v6314_v38  ;;  %4913 = vmatprep.mubr.f32.mxu1 %v6317_v39 }
  0x84   : > { %5039 = vmatpush3.msra.mxu1 %v1262_v37  ;;  %4834 = vmatmul.mubr.f32.gmra.mxu0 %v6320_v40  ;;  %v6483_v37 = vld [vmem:[%s6307_s23 + $0xb8] sm:$0xff] }
  0x85   : > { %4914 = vmatmul.mubr.f32.gmra.mxu1 %v6323_v41  ;;  %4960 = vmatprep.subr.mxu0 %v955_v42 }
  0x86   : > { %5040 = vmatprep.subr.mxu1 %v1261_v43  ;;  %4961 = vmatpush3.msra.mxu0 %v955_v42  ;;  %v945_v42 = vld [vmem:[#allocation4 + $0x120] sm:$0xff] }
  0x87   : > { %4836 = vmatprep.mubr.f32.mxu0 %v6328_v44  ;;  %4916 = vmatprep.mubr.f32.mxu1 %v6333_v45 }
  0x88   : > { %5041 = vmatpush3.msra.mxu1 %v1261_v43  ;;  %4837 = vmatmul.mubr.f32.gmra.mxu0 %v6336_v46  ;;  %v1251_v43 = vld [vmem:[#allocation4 + $0x1a0] sm:$0xff] }
  0x89   : > { %4917 = vmatmul.mubr.f32.gmra.mxu1 %v6339_v47  ;;  %4962 = vmatprep.subr.mxu0 %v954_v48 }
  0x8a   : > { %5042 = vmatprep.subr.mxu1 %v1260_v49  ;;  %4963 = vmatpush3.msra.mxu0 %v954_v48  ;;  %v6488_v48 = vld [vmem:[%s6307_s23 + $0xc1] sm:$0xff] }
  0x8b   : > { %4839 = vmatprep.mubr.f32.mxu0 %v6344_v50  ;;  %4919 = vmatprep.mubr.f32.mxu1 %v6349_v51 }
  0x8c   : > { %5043 = vmatpush3.msra.mxu1 %v1260_v49  ;;  %4840 = vmatmul.mubr.f32.gmra.mxu0 %v6352_v52  ;;  %v6493_v49 = vld [vmem:[%s6307_s23 + $0xc0] sm:$0xff] }
  0x8d   : > { %4920 = vmatmul.mubr.f32.gmra.mxu1 %v6355_v53  ;;  %4964 = vmatprep.subr.mxu0 %v953_v54 }
  0x8e   : > { %5044 = vmatprep.subr.mxu1 %v1259_v55  ;;  %4965 = vmatpush3.msra.mxu0 %v953_v54  ;;  %v6496_v54 = vld [vmem:[%s6307_s23 + $0xc9] sm:$0xff] }
  0x8f   : > { %4842 = vmatprep.mubr.f32.mxu0 %v6360_v56  ;;  %4922 = vmatprep.mubr.f32.mxu1 %v6365_v57 }
  0x90   : > { %5045 = vmatpush3.msra.mxu1 %v1259_v55  ;;  %4843 = vmatmul.mubr.f32.gmra.mxu0 %v6368_v58  ;;  %v6499_v55 = vld [vmem:[%s6307_s23 + $0xc8] sm:$0xff] }
  0x91   : > { %4923 = vmatmul.mubr.f32.gmra.mxu1 %v6371_v59  ;;  %4966 = vmatprep.subr.mxu0 %v952_v60 }
  0x92   : > { %5046 = vmatprep.subr.mxu1 %v1258_v61  ;;  %4967 = vmatpush3.msra.mxu0 %v952_v60  ;;  %v944_v60 = vld [vmem:[#allocation4 + $0x118] sm:$0xff] }
  0x93   : > { %4845 = vmatprep.mubr.f32.mxu0 %v6376_v62  ;;  %4925 = vmatprep.mubr.f32.mxu1 %v6381_v63 }
  0x94   : > { %5047 = vmatpush3.msra.mxu1 %v1258_v61  ;;  %4846 = vmatmul.mubr.f32.gmra.mxu0 %v6384_v0  ;;  %v1250_v61 = vld [vmem:[#allocation4 + $0x198] sm:$0xff] }
  0x95   : > { %4926 = vmatmul.mubr.f32.gmra.mxu1 %v6387_v1  ;;  %4968 = vmatprep.subr.mxu0 %v951_v2 }
  0x96   : > { %5048 = vmatprep.subr.mxu1 %v1257_v3  ;;  %4969 = vmatpush3.msra.mxu0 %v951_v2  ;;  %v6504_v2 = vld [vmem:[%s6307_s23 + $0xd1] sm:$0xff] }
  0x97   : > { %4848 = vmatprep.mubr.f32.mxu0 %v6392_v4  ;;  %4928 = vmatprep.mubr.f32.mxu1 %v6397_v5 }
  0x98   : > { %5049 = vmatpush3.msra.mxu1 %v1257_v3  ;;  %4849 = vmatmul.mubr.f32.gmra.mxu0 %v6400_v6  ;;  %v6509_v3 = vld [vmem:[%s6307_s23 + $0xd0] sm:$0xff] }
  0x99   : > { %4929 = vmatmul.mubr.f32.gmra.mxu1 %v6403_v7  ;;  %4970 = vmatprep.subr.mxu0 %v950_v8 }
  0x9a   : > { %5050 = vmatprep.subr.mxu1 %v1256_v9  ;;  %4971 = vmatpush3.msra.mxu0 %v950_v8  ;;  %v6512_v8 = vld [vmem:[%s6307_s23 + $0xd9] sm:$0xff] }
  0x9b   : > { %4851 = vmatprep.mubr.f32.mxu0 %v6408_v10  ;;  %4931 = vmatprep.mubr.f32.mxu1 %v6413_v11 }
  0x9c   : > { %5051 = vmatpush3.msra.mxu1 %v1256_v9  ;;  %4852 = vmatmul.mubr.f32.gmra.mxu0 %v6416_v12  ;;  %v6515_v9 = vld [vmem:[%s6307_s23 + $0xd8] sm:$0xff] }
  0x9d   : > { %4932 = vmatmul.mubr.f32.gmra.mxu1 %v6419_v13  ;;  %4972 = vmatprep.subr.mxu0 %v949_v14 }
  0x9e   : > { %5052 = vmatprep.subr.mxu1 %v1255_v15  ;;  %4973 = vmatpush3.msra.mxu0 %v949_v14  ;;  %v943_v14 = vld [vmem:[#allocation4 + $0x110] sm:$0xff] }
  0x9f   : > { %4854 = vmatprep.mubr.f32.mxu0 %v6424_v16  ;;  %4934 = vmatprep.mubr.f32.mxu1 %v6429_v17 }
  0xa0   : > { %5053 = vmatpush3.msra.mxu1 %v1255_v15  ;;  %4855 = vmatmul.mubr.f32.gmra.mxu0 %v6432_v18  ;;  %v1249_v15 = vld [vmem:[#allocation4 + $0x190] sm:$0xff] }
  0xa1   : > { %4935 = vmatmul.mubr.f32.gmra.mxu1 %v6435_v19  ;;  %4974 = vmatprep.subr.mxu0 %v948_v20 }
  0xa2   : > { %5054 = vmatprep.subr.mxu1 %v1254_v21  ;;  %4975 = vmatpush3.msra.mxu0 %v948_v20  ;;  %v6520_v20 = vld [vmem:[%s6307_s23 + $0xe1] sm:$0xff] }
  0xa3   : > { %4857 = vmatprep.mubr.f32.mxu0 %v6440_v22  ;;  %4937 = vmatprep.mubr.f32.mxu1 %v6445_v23  ;;  %7934 = vst [vmem:[#allocation18_spill] sm:$0xff] %v6520_v20 }
  0xa4   : > { %5055 = vmatpush3.msra.mxu1 %v1254_v21  ;;  %4858 = vmatmul.mubr.f32.gmra.mxu0 %v6448_v24  ;;  %v6525_v21 = vld [vmem:[%s6307_s23 + $0xe0] sm:$0xff] }
  0xa5   : > { %4938 = vmatmul.mubr.f32.gmra.mxu1 %v6451_v25  ;;  %4976 = vmatprep.subr.mxu0 %v947_v26 }
  0xa6   : > { %5056 = vmatprep.subr.mxu1 %v1253_v27  ;;  %4977 = vmatpush3.msra.mxu0 %v947_v26  ;;  %v6528_v26 = vld [vmem:[%s6307_s23 + $0xe9] sm:$0xff] }
  0xa7   : > { %4860 = vmatprep.mubr.f32.mxu0 %v6456_v28  ;;  %4940 = vmatprep.mubr.f32.mxu1 %v6461_v29 }
  0xa8   : > { %5057 = vmatpush3.msra.mxu1 %v1253_v27  ;;  %4861 = vmatmul.mubr.f32.gmra.mxu0 %v6464_v30  ;;  %v6531_v27 = vld [vmem:[%s6307_s23 + $0xe8] sm:$0xff] }
  0xa9   : > { %4941 = vmatmul.mubr.f32.gmra.mxu1 %v6467_v31  ;;  %4978 = vmatprep.subr.mxu0 %v946_v32 }
  0xaa   : > { %5058 = vmatprep.subr.mxu1 %v1252_v33  ;;  %4979 = vmatpush3.msra.mxu0 %v946_v32  ;;  %v942_v32 = vld [vmem:[#allocation4 + $0x108] sm:$0xff] }
  0xab   : > { %4863 = vmatprep.mubr.f32.mxu0 %v6472_v34  ;;  %4943 = vmatprep.mubr.f32.mxu1 %v6477_v35 }
  0xac   : > { %5059 = vmatpush3.msra.mxu1 %v1252_v33  ;;  %4864 = vmatmul.mubr.f32.gmra.mxu0 %v6480_v36  ;;  %v1248_v33 = vld [vmem:[#allocation4 + $0x188] sm:$0xff] }
  0xad   : > { %4944 = vmatmul.mubr.f32.gmra.mxu1 %v6483_v37  ;;  %4980 = vmatprep.subr.mxu0 %v945_v42 }
  0xae   : > { %5060 = vmatprep.subr.mxu1 %v1251_v43  ;;  %4981 = vmatpush3.msra.mxu0 %v945_v42  ;;  %v6536_v42 = vld [vmem:[%s6307_s23 + $0xf1] sm:$0xff] }
  0xaf   : > { %4866 = vmatprep.mubr.f32.mxu0 %v6488_v48  ;;  %4946 = vmatprep.mubr.f32.mxu1 %v6493_v49 }
  0xb0   : > { %5061 = vmatpush3.msra.mxu1 %v1251_v43  ;;  %4867 = vmatmul.mubr.f32.gmra.mxu0 %v6496_v54  ;;  %v6541_v43 = vld [vmem:[%s6307_s23 + $0xf0] sm:$0xff] }
  0xb1   : > { %4947 = vmatmul.mubr.f32.gmra.mxu1 %v6499_v55  ;;  %4982 = vmatprep.subr.mxu0 %v944_v60 }
  0xb2   : > { %5062 = vmatprep.subr.mxu1 %v1250_v61  ;;  %4983 = vmatpush3.msra.mxu0 %v944_v60  ;;  %v6544_v60 = vld [vmem:[%s6307_s23 + $0xf9] sm:$0xff] }
  0xb3   : > { %4869 = vmatprep.mubr.f32.mxu0 %v6504_v2  ;;  %4949 = vmatprep.mubr.f32.mxu1 %v6509_v3 }
  0xb4   : > { %5063 = vmatpush3.msra.mxu1 %v1250_v61  ;;  %4870 = vmatmul.mubr.f32.gmra.mxu0 %v6512_v8  ;;  %v6547_v61 = vld [vmem:[%s6307_s23 + $0xf8] sm:$0xff] }
  0xb5   : > { %4950 = vmatmul.mubr.f32.gmra.mxu1 %v6515_v9  ;;  %4984 = vmatprep.subr.mxu0 %v943_v14 }
  0xb6   : > { %5064 = vmatprep.subr.mxu1 %v1249_v15  ;;  %4985 = vmatpush3.msra.mxu0 %v943_v14  ;;  %v941_v14 = vld [vmem:[#allocation4 + $0x100] sm:$0xff] }
  0xb7   : > { %4872 = vmatprep.mubr.f32.mxu0 %v6520_v20  ;;  %4952 = vmatprep.mubr.f32.mxu1 %v6525_v21  ;;  %v1247_v20 = vld [vmem:[#allocation4 + $0x180] sm:$0xff] }
  0xb8   : > { %5065 = vmatpush3.msra.mxu1 %v1249_v15  ;;  %4873 = vmatmul.mubr.f32.gmra.mxu0 %v6528_v26 }
  0xb9   : > { %4953 = vmatmul.mubr.f32.gmra.mxu1 %v6531_v27  ;;  %4986 = vmatprep.subr.mxu0 %v942_v32 }
  0xba   : > { %5066 = vmatprep.subr.mxu1 %v1248_v33  ;;  %4987 = vmatpush3.msra.mxu0 %v942_v32 }
  0xbb   : > { %4875 = vmatprep.mubr.f32.mxu0 %v6536_v42  ;;  %4955 = vmatprep.mubr.f32.mxu1 %v6541_v43 }
  0xbc   : > { %5067 = vmatpush3.msra.mxu1 %v1248_v33  ;;  %4876 = vmatmul.mubr.f32.gmra.mxu0 %v6544_v60 }
  0xbd   : > { %4956 = vmatmul.mubr.f32.gmra.mxu1 %v6547_v61  ;;  %4988 = vmatprep.subr.mxu0 %v941_v14 }
  0xbe   : > { %5068 = vmatprep.subr.mxu1 %v1247_v20  ;;  %4989 = vmatpush3.msra.mxu0 %v941_v14 }
  0xbf   : > { %4990 = vmatprep.mubr.f32.mxu0 %v6317_v39  ;;  %5069 = vmatpush3.msra.mxu1 %v1247_v20  ;;  %v7929_v39 = vmov 0.0  }
  0xc0   : > { %5070 = vmatprep.mubr.f32.mxu1 %v6314_v38  ;;  %4991 = vmatmul.mubr.f32.vlgmr.msra.gmra.mxu0 %v6323_v41  ;;  %v1713_v38 = vld [vmem:[#allocation8 + $0xf8] sm:$0xff]  ;;  %v1712_v41 = vld [vmem:[#allocation8 + $0xf0] sm:$0xff] }
  0xc1   : > { %5071 = vmatmul.mubr.f32.vlgmr.msra.gmra.mxu1 %v6320_v40  ;;  %4993 = vmatprep.mubr.f32.mxu0 %v6333_v45  ;;  %v1667_v40 = vld [vmem:[#allocation8 + $0x78] sm:$0xff]  ;;  %v1711_v45 = vld [vmem:[#allocation8 + $0xe8] sm:$0xff] }
  0xc2   : > { %5073 = vmatprep.mubr.f32.mxu1 %v6328_v44  ;;  %5118 = vmatprep.subr.mxu0 %v7929_v39  ;;  %v1666_v44 = vld [vmem:[#allocation8 + $0x70] sm:$0xff] }
  0xc3   : > { %5237 = vmatprep.subr.mxu1 %v7929_v39  ;;  %5119 = vmatpush3.msra.mxu0 %v1713_v38 }
  0xc4   : > { %4994 = vmatmul.mubr.f32.gmra.mxu0 %v6339_v47  ;;  %5238 = vmatpush3.msra.mxu1 %v1667_v40  ;;  %v1710_v47 = vld [vmem:[#allocation8 + $0xe0] sm:$0xff] }
  0xc5   : > { %5074 = vmatmul.mubr.f32.gmra.mxu1 %v6336_v46  ;;  %4996 = vmatprep.mubr.f32.mxu0 %v6349_v51  ;;  %v1665_v46 = vld [vmem:[#allocation8 + $0x68] sm:$0xff]  ;;  %v1709_v51 = vld [vmem:[#allocation8 + $0xd8] sm:$0xff] }
  0xc6   : > { %5076 = vmatprep.mubr.f32.mxu1 %v6344_v50  ;;  %5120 = vmatprep.subr.mxu0 %v7929_v39  ;;  %v1664_v50 = vld [vmem:[#allocation8 + $0x60] sm:$0xff] }
  0xc7   : > { %5121 = vmatpush3.msra.mxu0 %v1712_v41  ;;  %5239 = vmatprep.subr.mxu1 %v7929_v39 }
  0xc8   : > { %4997 = vmatmul.mubr.f32.gmra.mxu0 %v6355_v53  ;;  %5240 = vmatpush3.msra.mxu1 %v1666_v44  ;;  %v1708_v53 = vld [vmem:[#allocation8 + $0xd0] sm:$0xff] }
  0xc9   : > { %5077 = vmatmul.mubr.f32.gmra.mxu1 %v6352_v52  ;;  %4999 = vmatprep.mubr.f32.mxu0 %v6365_v57  ;;  %v1663_v52 = vld [vmem:[#allocation8 + $0x58] sm:$0xff]  ;;  %v1707_v57 = vld [vmem:[#allocation8 + $0xc8] sm:$0xff] }
  0xca   : > { %5079 = vmatprep.mubr.f32.mxu1 %v6360_v56  ;;  %5122 = vmatprep.subr.mxu0 %v7929_v39  ;;  %v1662_v56 = vld [vmem:[#allocation8 + $0x50] sm:$0xff] }
  0xcb   : > { %5123 = vmatpush3.msra.mxu0 %v1711_v45  ;;  %5241 = vmatprep.subr.mxu1 %v7929_v39 }
  0xcc   : > { %5000 = vmatmul.mubr.f32.gmra.mxu0 %v6371_v59  ;;  %5242 = vmatpush3.msra.mxu1 %v1665_v46  ;;  %v7935_v59 = vld [vmem:[#allocation18_spill] sm:$0xff] }
  0xcd   : > { %5080 = vmatmul.mubr.f32.gmra.mxu1 %v6368_v58  ;;  %5002 = vmatprep.mubr.f32.mxu0 %v6381_v63  ;;  %v1661_v58 = vld [vmem:[#allocation8 + $0x48] sm:$0xff]  ;;  %v1660_v63 = vld [vmem:[#allocation8 + $0x40] sm:$0xff] }
  0xce   : > { %5082 = vmatprep.mubr.f32.mxu1 %v6376_v62  ;;  %5124 = vmatprep.subr.mxu0 %v7929_v39  ;;  %v1706_v62 = vld [vmem:[#allocation8 + $0xc0] sm:$0xff] }
  0xcf   : > { %5125 = vmatpush3.msra.mxu0 %v1710_v47  ;;  %5243 = vmatprep.subr.mxu1 %v7929_v39 }
  0xd0   : > { %5003 = vmatmul.mubr.f32.gmra.mxu0 %v6387_v1  ;;  %5244 = vmatpush3.msra.mxu1 %v1664_v50  ;;  %v938_v1 = vld [vmem:[%s6307_s23 + $0x100] sm:$0xff] }
  0xd1   : > { %5083 = vmatmul.mubr.f32.gmra.mxu1 %v6384_v0  ;;  %5005 = vmatprep.mubr.f32.mxu0 %v6397_v5  ;;  %v1705_v0 = vld [vmem:[#allocation8 + $0xb8] sm:$0xff] }
  0xd2   : > { %5085 = vmatprep.mubr.f32.mxu1 %v6392_v4  ;;  %5126 = vmatprep.subr.mxu0 %v7929_v39  ;;  %v1244_v4 = vld [vmem:[%s6307_s23 + $0x101] sm:$0xff] }
  0xd3   : > { %5127 = vmatpush3.msra.mxu0 %v1709_v51  ;;  %5245 = vmatprep.subr.mxu1 %v7929_v39  ;;  %v1659_v5 = vld [vmem:[#allocation8 + $0x38] sm:$0xff] }
  0xd4   : > { %5006 = vmatmul.mubr.f32.gmra.mxu0 %v6403_v7  ;;  %5246 = vmatpush3.msra.mxu1 %v1663_v52  ;;  %v1245_v7 = vld [vmem:[%s6307_s23 + $0x109] sm:$0xff] }
  0xd5   : > { %5086 = vmatmul.mubr.f32.gmra.mxu1 %v6400_v6  ;;  %5008 = vmatprep.mubr.f32.mxu0 %v6413_v11  ;;  %v939_v6 = vld [vmem:[%s6307_s23 + $0x108] sm:$0xff]  ;;  %v1658_v11 = vld [vmem:[#allocation8 + $0x30] sm:$0xff] }
  0xd6   : > { %5088 = vmatprep.mubr.f32.mxu1 %v6408_v10  ;;  %5128 = vmatprep.subr.mxu0 %v7929_v39  ;;  %v1704_v10 = vld [vmem:[#allocation8 + $0xb0] sm:$0xff] }
  0xd7   : > { %5129 = vmatpush3.msra.mxu0 %v1708_v53  ;;  %5247 = vmatprep.subr.mxu1 %v7929_v39 }
  0xd8   : > { %5009 = vmatmul.mubr.f32.gmra.mxu0 %v6419_v13  ;;  %5248 = vmatpush3.msra.mxu1 %v1662_v56  ;;  %v1657_v13 = vld [vmem:[#allocation8 + $0x28] sm:$0xff] }
  0xd9   : > { %5089 = vmatmul.mubr.f32.gmra.mxu1 %v6416_v12  ;;  %5011 = vmatprep.mubr.f32.mxu0 %v6429_v17  ;;  %v1703_v12 = vld [vmem:[#allocation8 + $0xa8] sm:$0xff]  ;;  %v1656_v17 = vld [vmem:[#allocation8 + $0x20] sm:$0xff] }
  0xda   : > { %5091 = vmatprep.mubr.f32.mxu1 %v6424_v16  ;;  %5130 = vmatprep.subr.mxu0 %v7929_v39  ;;  %v1702_v16 = vld [vmem:[#allocation8 + $0xa0] sm:$0xff] }
  0xdb   : > { %5131 = vmatpush3.msra.mxu0 %v1707_v57  ;;  %5249 = vmatprep.subr.mxu1 %v7929_v39 }
  0xdc   : > { %5012 = vmatmul.mubr.f32.gmra.mxu0 %v6435_v19  ;;  %5250 = vmatpush3.msra.mxu1 %v1661_v58  ;;  %v1654_v19 = vld [vmem:[#allocation8 + $0x10] sm:$0xff] }
  0xdd   : > { %5092 = vmatmul.mubr.f32.gmra.mxu1 %v6432_v18  ;;  %5014 = vmatprep.mubr.f32.mxu0 %v6445_v23  ;;  %v1655_v18 = vld [vmem:[#allocation8 + $0x18] sm:$0xff]  ;;  %v1652_v23 = vld [vmem:[#allocation8] sm:$0xff] }
  0xde   : > { %5094 = vmatprep.mubr.f32.mxu1 %v6440_v22  ;;  %5132 = vmatprep.subr.mxu0 %v7929_v39  ;;  %v1653_v22 = vld [vmem:[#allocation8 + $0x8] sm:$0xff] }
  0xdf   : > { %5133 = vmatpush3.msra.mxu0 %v1706_v62  ;;  %5251 = vmatprep.subr.mxu1 %v7929_v39 }
  0xe0   : > { %5015 = vmatmul.mubr.f32.gmra.mxu0 %v6451_v25  ;;  %5252 = vmatpush3.msra.mxu1 %v1660_v63  ;;  %v1700_v25 = vld [vmem:[#allocation8 + $0x90] sm:$0xff] }
  0xe1   : > { %5095 = vmatmul.mubr.f32.gmra.mxu1 %v6448_v24  ;;  %5017 = vmatprep.mubr.f32.mxu0 %v6461_v29  ;;  %v1701_v24 = vld [vmem:[#allocation8 + $0x98] sm:$0xff]  ;;  %v1698_v29 = vld [vmem:[#allocation8 + $0x80] sm:$0xff] }
  0xe2   : > { %5097 = vmatprep.mubr.f32.mxu1 %v6456_v28  ;;  %5134 = vmatprep.subr.mxu0 %v7929_v39  ;;  %v1699_v28 = vld [vmem:[#allocation8 + $0x88] sm:$0xff] }
  0xe3   : > { %5135 = vmatpush3.msra.mxu0 %v1705_v0  ;;  %5253 = vmatprep.subr.mxu1 %v7929_v39 }
  0xe4   : > { %5018 = vmatmul.mubr.f32.gmra.mxu0 %v6467_v31  ;;  %5254 = vmatpush3.msra.mxu1 %v1659_v5 }
  0xe5   : > { %5098 = vmatmul.mubr.f32.gmra.mxu1 %v6464_v30  ;;  %5020 = vmatprep.mubr.f32.mxu0 %v6477_v35 }
  0xe6   : > { %5100 = vmatprep.mubr.f32.mxu1 %v6472_v34  ;;  %5136 = vmatprep.subr.mxu0 %v7929_v39 }
  0xe7   : > { %5137 = vmatpush3.msra.mxu0 %v1704_v10  ;;  %5255 = vmatprep.subr.mxu1 %v7929_v39 }
  0xe8   : > { %5021 = vmatmul.mubr.f32.gmra.mxu0 %v6483_v37  ;;  %5256 = vmatpush3.msra.mxu1 %v1658_v11 }
  0xe9   : > { %5101 = vmatmul.mubr.f32.gmra.mxu1 %v6480_v36  ;;  %5023 = vmatprep.mubr.f32.mxu0 %v6493_v49 }
  0xea   : > { %5103 = vmatprep.mubr.f32.mxu1 %v6488_v48  ;;  %5138 = vmatprep.subr.mxu0 %v7929_v39 }
  0xeb   : > { %5139 = vmatpush3.msra.mxu0 %v1703_v12  ;;  %5257 = vmatprep.subr.mxu1 %v7929_v39 }
  0xec   : > { %5024 = vmatmul.mubr.f32.gmra.mxu0 %v6499_v55  ;;  %5140 = vmatprep.subr.mxu0 %v7929_v39 }
  0xed   : > { %5104 = vmatmul.mubr.f32.gmra.mxu1 %v6496_v54  ;;  %5026 = vmatprep.mubr.f32.mxu0 %v6509_v3 }
  0xee   : > { %5106 = vmatprep.mubr.f32.mxu1 %v6504_v2  ;;  %5258 = vmatpush3.msra.mxu1 %v1657_v13 }
  0xef   : > { %5259 = vmatprep.subr.mxu1 %v7929_v39  ;;  %5141 = vmatpush3.msra.mxu0 %v1702_v16 }
  0xf0   : > { %5027 = vmatmul.mubr.f32.gmra.mxu0 %v6515_v9  ;;  %5260 = vmatpush3.msra.mxu1 %v1656_v17 }
  0xf1   : > { %5107 = vmatmul.mubr.f32.gmra.mxu1 %v6512_v8  ;;  %5029 = vmatprep.mubr.f32.mxu0 %v6525_v21 }
  0xf2   : > { %5109 = vmatprep.mubr.f32.mxu1 %v7935_v59  ;;  %5142 = vmatprep.subr.mxu0 %v7929_v39 }
  0xf3   : > { %5261 = vmatprep.subr.mxu1 %v7929_v39  ;;  %5143 = vmatpush3.msra.mxu0 %v1701_v24 }
  0xf4   : > { %5030 = vmatmul.mubr.f32.gmra.mxu0 %v6531_v27  ;;  %5262 = vmatpush3.msra.mxu1 %v1655_v18 }
  0xf5   : > { %5110 = vmatmul.mubr.f32.gmra.mxu1 %v6528_v26  ;;  %5032 = vmatprep.mubr.f32.mxu0 %v6541_v43 }
  0xf6   : > { %5112 = vmatprep.mubr.f32.mxu1 %v6536_v42  ;;  %5263 = vmatprep.subr.mxu1 %v7929_v39 }
  0xf7   : > { %5264 = vmatpush3.msra.mxu1 %v1654_v19  ;;  %5144 = vmatprep.subr.mxu0 %v7929_v39 }
  0xf8   : > { %5033 = vmatmul.mubr.f32.gmra.mxu0 %v6547_v61  ;;  %5265 = vmatprep.subr.mxu1 %v7929_v39 }
  0xf9   : > { %5113 = vmatmul.mubr.f32.gmra.mxu1 %v6544_v60  ;;  %5035 = vmatprep.mubr.f32.mxu0 %v938_v1 }
  0xfa   : > { %5115 = vmatprep.mubr.f32.mxu1 %v1244_v4  ;;  %5266 = vmatpush3.msra.mxu1 %v1653_v22 }
  0xfb   : > { %5267 = vmatprep.subr.mxu1 %v7929_v39  ;;  %5145 = vmatpush3.msra.mxu0 %v1700_v25 }
  0xfc   : > { %5036 = vmatmul.mubr.f32.gmra.mxu0 %v939_v6  ;;  %5268 = vmatpush3.msra.mxu1 %v1652_v23 }
  0xfd   : > { %5116 = vmatmul.mubr.f32.gmra.mxu1 %v1245_v7  ;;  %5150 = vmatprep.mubr.msk.f32.mxu0 %vm6142_vm0, %v7929_v39 }
  0xfe   : > { %5269 = vmatprep.mubr.msk.f32.mxu1 %vm6142_vm0, %v7929_v39  ;;  %5475 = vmatprep.subr.mxu1 %v7929_v39 }
  0xff   : > { %5146 = vmatprep.subr.mxu0 %v7929_v39 }
 0x100   : > { %5147 = vmatpush3.msra.mxu0 %v1699_v28 }
 0x101   : > { %5148 = vmatprep.subr.mxu0 %v7929_v39 }
 0x102   : > { %5149 = vmatpush3.msra.mxu0 %v1698_v29 }
 0x103   : > { %5356 = vmatprep.subr.mxu0 %v7929_v39 }
 0x140   : > { %v6655_v30 = vpop.f32.mrf.mxu0 }
 0x141   : > { %v6657_v31 = vpop.f32.mrf.mxu1 }
 0x142   : > { %v6659_v34 = vpop.f32.mrf.mxu0 }
 0x143   : > { %v6661_v35 = vpop.f32.mrf.mxu1 }
 0x144   : > { %v6663_v36 = vpop.f32.mrf.mxu0 }
 0x145   : > { %v6665_v37 = vpop.f32.mrf.mxu1 }
 0x146   : > { %v6667_v48 = vpop.f32.mrf.mxu0 }
 0x147   : > { %v6669_v49 = vpop.f32.mrf.mxu1 }
 0x148   : > { %v6671_v54 = vpop.f32.mrf.mxu0 }
 0x149   : > { %v6673_v55 = vpop.f32.mrf.mxu1 }
 0x14a   : > { %v6675_v2 = vpop.f32.mrf.mxu0 }
 0x14b   : > { %v6677_v3 = vpop.f32.mrf.mxu1 }
 0x14c   : > { %v6679_v8 = vpop.f32.mrf.mxu0 }
 0x14d   : > { %v6681_v9 = vpop.f32.mrf.mxu1 }
 0x14e   : > { %v6683_v15 = vpop.f32.mrf.mxu0 }
 0x14f   : > { %v6685_v20 = vpop.f32.mrf.mxu1 }
 0x150   : > { %v6687_v21 = vpop.f32.mrf.mxu0 }
 0x151   : > { %v6689_v26 = vpop.f32.mrf.mxu1 }
 0x152   : > { %v6691_v27 = vpop.f32.mrf.mxu0 }
 0x153   : > { %v6693_v32 = vpop.f32.mrf.mxu1 }
 0x154   : > { %v6695_v33 = vpop.f32.mrf.mxu0 }
 0x155   : > { %v6697_v42 = vpop.f32.mrf.mxu1 }
 0x156   : > { %v6699_v43 = vpop.f32.mrf.mxu0 }
 0x157   : > { %v6701_v60 = vpop.f32.mrf.mxu1 }
 0x158   : > { %v6703_v61 = vpop.f32.mrf.mxu0 }
 0x159   : > { %v6705_v14 = vpop.f32.mrf.mxu1 }
 0x15a   : > { %v6707_v38 = vpop.f32.mrf.mxu0 }
 0x15b   : > { %v6709_v40 = vpop.f32.mrf.mxu1 }
 0x15c   : > { %v6711_v41 = vpop.f32.mrf.mxu0 }
 0x15d   : > { %v6713_v44 = vpop.f32.mrf.mxu1 }
 0x15e   : > { %v6715_v45 = vpop.f32.mrf.mxu0 }
 0x15f   : > { %v6717_v46 = vpop.f32.mrf.mxu1 }
 0x160   : > { %v6719_v47 = vpop.f32.mrf.mxu0 }
 0x161   : > { %v6721_v50 = vpop.f32.mrf.mxu1 }
 0x162   : > { %v6723_v51 = vpop.f32.mrf.mxu0 }
 0x163   : > { %v6725_v52 = vpop.f32.mrf.mxu1 }
 0x164   : > { %v6727_v53 = vpop.f32.mrf.mxu0 }
 0x165   : > { %v6729_v56 = vpop.f32.mrf.mxu1 }
 0x166   : > { %v6731_v57 = vpop.f32.mrf.mxu0 }
 0x167   : > { %v6733_v58 = vpop.f32.mrf.mxu1 }
 0x168   : > { %v6735_v59 = vpop.f32.mrf.mxu0 }
 0x169   : > { %v6737_v62 = vpop.f32.mrf.mxu1 }
 0x16a   : > { %v6739_v63 = vpop.f32.mrf.mxu0 }
 0x16b   : > { %v6741_v0 = vpop.f32.mrf.mxu1 }
 0x16c   : > { %v6743_v1 = vpop.f32.mrf.mxu0 }
 0x16d   : > { %v6745_v4 = vpop.f32.mrf.mxu1 }
 0x16e   : > { %v6747_v5 = vpop.f32.mrf.mxu0 }
 0x16f   : > { %v6749_v6 = vpop.f32.mrf.mxu1 }
 0x170   : > { %v6751_v7 = vpop.f32.mrf.mxu0 }
 0x171   : > { %7936 = vst [vmem:[#allocation18_spill] sm:$0xff] %v6751_v7  ;;  %v6753_v10 = vpop.f32.mrf.mxu1 }
 0x172   : > { %7937 = vst [vmem:[#allocation19_spill] sm:$0xff] %v6753_v10  ;;  %v6755_v11 = vpop.f32.mrf.mxu0 }
 0x173   : > { %7938 = vst [vmem:[#allocation20_spill] sm:$0xff] %v6755_v11  ;;  %v6757_v12 = vpop.f32.mrf.mxu1 }
 0x174   : > { %7939 = vst [vmem:[#allocation21_spill] sm:$0xff] %v6757_v12  ;;  %v6759_v13 = vpop.f32.mrf.mxu0 }
 0x175   : > { %7940 = vst [vmem:[#allocation22_spill] sm:$0xff] %v6759_v13  ;;  %v6761_v16 = vpop.f32.mrf.mxu1 }
 0x176   : > { %7941 = vst [vmem:[#allocation23_spill] sm:$0xff] %v6761_v16  ;;  %v6763_v17 = vpop.f32.mrf.mxu0 }
 0x177   : > { %7942 = vst [vmem:[#allocation24_spill] sm:$0xff] %v6763_v17  ;;  %v6765_v18 = vpop.f32.mrf.mxu1  ;;  %v755_v17 = vadd.f32 %v6657_v31, %v6655_v30  ;;  %v760_v30 = vadd.f32 %v6669_v49, %v6667_v48 }
 0x178   : > { %7943 = vst [vmem:[#allocation25_spill] sm:$0xff] %v6765_v18  ;;  %v6767_v19 = vpop.f32.mrf.mxu0 }
 0x179   : > { %7944 = vst [vmem:[#allocation26_spill] sm:$0xff] %v6767_v19  ;;  %v6769_v22 = vpop.f32.mrf.mxu1 }
 0x17a   : > { %7945 = vst [vmem:[#allocation27_spill] sm:$0xff] %v6769_v22  ;;  %v6771_v23 = vpop.f32.mrf.mxu0  ;;  %v750_v22 = vadd.f32 %v6661_v35, %v6659_v34  ;;  %v775_v34 = vadd.f32 %v6673_v55, %v6671_v54  ;;  %v785_v54 = vadd.f32 %v6681_v9, %v6679_v8 }
 0x17b   : > { %7946 = vst [vmem:[#allocation28_spill] sm:$0xff] %v6771_v23  ;;  %v6773_v24 = vpop.f32.mrf.mxu1  ;;  %v6787_v23 = vld [vmem:[#allocation6] ss:$0 sm:$0xff] }
 0x17c   : > { %7947 = vst [vmem:[#allocation29_spill] sm:$0xff] %v6773_v24  ;;  %v6775_v25 = vpop.f32.mrf.mxu0 }
 0x17d   : > { %7948 = vst [vmem:[#allocation30_spill] sm:$0xff] %v6775_v25  ;;  %v6777_v28 = vpop.f32.mrf.mxu1 }
 0x17e   : > { %7949 = vst [vmem:[#allocation31_spill] sm:$0xff] %v6777_v28  ;;  %v6779_v29 = vpop.f32.mrf.mxu0  ;;  %v765_v28 = vadd.f32 %v6665_v37, %v6663_v36 }
 0x17f   : > { %7950 = vst [vmem:[#allocation32_spill] sm:$0xff] %v6779_v29  ;;  %v6781_v39 = vpop.f32.mrf.mxu1 }
 0x180   : > { %7951 = vst [vmem:[#allocation33_spill] sm:$0xff] %v6781_v39  ;;  %v4992_v18 = vpop.f32.mrf.mxu0 }
 0x181   : > { %v5072_v16 = vpop.f32.mrf.mxu1  ;;  %v1183_v19 = vadd.f32 %v4992_v18, %v755_v17 }
 0x182   : > { %v1023_v24 = vpop.f32.mrf.mxu0 }
 0x183   : > { %v1329_v13 = vpop.f32.mrf.mxu1  ;;  %v1489_v25 = vadd.f32 %v5072_v16, %v1183_v19  ;;  %v1182_v29 = vadd.f32 %v1023_v24, %v750_v22  ;;  %v770_v16 = vadd.f32 %v6677_v3, %v6675_v2  ;;  %v2464_v24 = vld [vmem:[#allocation8 + $0x1f8] sm:$0xff] }
 0x184   : > { %v4995_v12 = vpop.f32.mrf.mxu0 }
 0x185   : > { %v5075_v39 = vpop.f32.mrf.mxu1  ;;  %v1528_v31 = vadd.f32 %v6787_v23, %v1489_v25  ;;  %v1488_v11 = vadd.f32 %v1329_v13, %v1182_v29  ;;  %v1185_v10 = vadd.f32 %v4995_v12, %v765_v28 }
 0x186   : > { %v1033_v35 = vpop.f32.mrf.mxu0 }
 0x187   : > { %v1339_v17 = vpop.f32.mrf.mxu1  ;;  %v1560_v18 = vmax.f32 %v1528_v31, 0.0  ;;  %v1527_v7 = vadd.f32 %v6787_v23, %v1488_v11  ;;  %v1491_v36 = vadd.f32 %v5075_v39, %v1185_v10  ;;  %v1184_v37 = vadd.f32 %v1033_v35, %v760_v30  ;;  %v2463_v11 = vld [vmem:[#allocation8 + $0x1f0] sm:$0xff]  ;;  %v2462_v35 = vld [vmem:[#allocation8 + $0x1e8] sm:$0xff] }
 0x188   : > { %v4998_v19 = vpop.f32.mrf.mxu0  ;;  %v7952_v30 = vmov 0.0  }
 0x189   : > { %v5078_v22 = vpop.f32.mrf.mxu1  ;;  %1592 = vst [vmem:[#allocation2 + $0x8] sm:$0xff] %v1560_v18  ;;  %v1559_v48 = vmax.f32 %v1527_v7, 0.0  ;;  %v1530_v49 = vadd.f32 %v6787_v23, %v1491_v36  ;;  %v1490_v12 = vadd.f32 %v1339_v17, %v1184_v37  ;;  %v1187_v13 = vadd.f32 %v4998_v19, %v775_v34 }
 0x18a   : > { %v1043_v55 = vpop.f32.mrf.mxu0  ;;  %v780_v7 = vadd.f32 %v6685_v20, %v6683_v15  ;;  %v795_v15 = vadd.f32 %v6689_v26, %v6687_v21 }
 0x18b   : > { %v1349_v25 = vpop.f32.mrf.mxu1  ;;  %1591 = vst [vmem:[#allocation2] sm:$0xff] %v1559_v48  ;;  %v6802_v39 = vmax.f32 %v1530_v49, 0.0  ;;  %v1529_v10 = vadd.f32 %v6787_v23, %v1490_v12  ;;  %v1186_v2 = vadd.f32 %v1043_v55, %v770_v16  ;;  %v1493_v3 = vadd.f32 %v5078_v22, %v1187_v13  ;;  %5270 = vmatmul.mubr.f32.vlgmr.msra.gmra.mxu1 %v1559_v48  ;;  %v2461_v22 = vld [vmem:[#allocation8 + $0x1e0] sm:$0xff] }
 0x18c   : > { %v5001_v28 = vpop.f32.mrf.mxu0  ;;  %5272 = vmatprep.mubr.msk.f32.mxu1 %vm6142_vm0, %v7952_v30  ;;  %5476 = vmatpush3.msra.mxu1 %v2464_v24  ;;  %v790_v48 = vadd.f32 %v6693_v32, %v6691_v27  ;;  %v2179_v24 = vld [vmem:[#allocation8 + $0x178] sm:$0xff]  ;;  %v805_v27 = vadd.f32 %v6697_v42, %v6695_v33 }
 0x18d   : > { %v5081_v29 = vpop.f32.mrf.mxu1  ;;  %1594 = vst [vmem:[#allocation2 + $0x18] sm:$0xff] %v6802_v39  ;;  %v6810_v8 = vmax.f32 %v1529_v10, 0.0  ;;  %v1532_v9 = vadd.f32 %v6787_v23, %v1493_v3  ;;  %v1189_v31 = vadd.f32 %v5001_v28, %v785_v54  ;;  %v1492_v34 = vadd.f32 %v1349_v25, %v1186_v2  ;;  %5477 = vmatprep.subr.mxu1 %v7952_v30 }
 0x18e   : > { %v1053_v20 = vpop.f32.mrf.mxu0  ;;  %5478 = vmatpush3.msra.mxu1 %v2463_v11  ;;  %v2178_v11 = vld [vmem:[#allocation8 + $0x170] sm:$0xff] }
 0x18f   : > { %v1359_v17 = vpop.f32.mrf.mxu1  ;;  %1593 = vst [vmem:[#allocation2 + $0x10] sm:$0xff] %v6810_v8  ;;  %v6817_v36 = vmax.f32 %v1532_v9, 0.0  ;;  %v1531_v37 = vadd.f32 %v6787_v23, %v1492_v34  ;;  %v1188_v16 = vadd.f32 %v1053_v20, %v780_v7  ;;  %v1495_v19 = vadd.f32 %v5081_v29, %v1189_v31  ;;  %5273 = vmatmul.mubr.f32.gmra.mxu1 %v1560_v18 }
 0x190   : > { %5479 = vmatprep.subr.mxu1 %v7952_v30  ;;  %v5004_v49 = vpop.f32.mrf.mxu0  ;;  %5275 = vmatprep.mubr.msk.f32.mxu1 %vm6142_vm0, %v7952_v30  ;;  %v800_v7 = vadd.f32 %v6701_v60, %v6699_v43  ;;  %v815_v43 = vadd.f32 %v6705_v14, %v6703_v61  ;;  %v810_v61 = vadd.f32 %v6709_v40, %v6707_v38 }
 0x191   : > { %v5084_v21 = vpop.f32.mrf.mxu1  ;;  %5480 = vmatpush3.msra.mxu1 %v2462_v35  ;;  %1596 = vst [vmem:[#allocation2 + $0x28] sm:$0xff] %v6817_v36  ;;  %v6826_v26 = vmax.f32 %v1531_v37, 0.0  ;;  %v1534_v12 = vadd.f32 %v6787_v23, %v1495_v19  ;;  %v1191_v13 = vadd.f32 %v5004_v49, %v795_v15  ;;  %v1494_v18 = vadd.f32 %v1359_v17, %v1188_v16  ;;  %v2460_v15 = vld [vmem:[#allocation8 + $0x1d8] sm:$0xff]  ;;  %v2177_v19 = vld [vmem:[#allocation8 + $0x168] sm:$0xff] }
 0x192   : > { %5481 = vmatprep.subr.mxu1 %v7952_v30  ;;  %v1063_v32 = vpop.f32.mrf.mxu0  ;;  %v1668_v54 = vld [vmem:[#allocation2 + $0x1] sm:$0xff]  ;;  %v825_v38 = vadd.f32 %v6713_v44, %v6711_v41  ;;  %v2176_v41 = vld [vmem:[#allocation8 + $0x160] sm:$0xff]  ;;  %v820_v44 = vadd.f32 %v6717_v46, %v6715_v45  ;;  %v835_v45 = vadd.f32 %v6721_v50, %v6719_v47  ;;  %v830_v50 = vadd.f32 %v6725_v52, %v6723_v51 }
 0x193   : > { %v1369_v55 = vpop.f32.mrf.mxu1  ;;  %5482 = vmatpush3.msra.mxu1 %v2461_v22  ;;  %1595 = vst [vmem:[#allocation2 + $0x20] sm:$0xff] %v6826_v26  ;;  %v6833_v25 = vmax.f32 %v1534_v12, 0.0  ;;  %v1533_v10 = vadd.f32 %v6787_v23, %v1494_v18  ;;  %v1190_v2 = vadd.f32 %v1063_v32, %v790_v48  ;;  %v1497_v3 = vadd.f32 %v5084_v21, %v1191_v13  ;;  %v2175_v47 = vld [vmem:[#allocation8 + $0x158] sm:$0xff] }
 0x194   : > { %5151 = vmatmul.mubr.f32.vlgmr.msra.gmra.mxu0 %v1668_v54  ;;  %5276 = vmatmul.mubr.f32.gmra.mxu1 %v6810_v8  ;;  %v5007_v33 = vpop.f32.mrf.mxu0  ;;  %v845_v51 = vadd.f32 %v6729_v56, %v6727_v53  ;;  %v2174_v53 = vld [vmem:[#allocation8 + $0x150] sm:$0xff]  ;;  %v840_v56 = vadd.f32 %v6733_v58, %v6731_v57  ;;  %v855_v57 = vadd.f32 %v6737_v62, %v6735_v59  ;;  %v2173_v59 = vld [vmem:[#allocation8 + $0x148] sm:$0xff] }
 0x195   : > { %5357 = vmatpush3.msra.mxu0 %v2179_v24  ;;  %v5087_v42 = vpop.f32.mrf.mxu1  ;;  %5153 = vmatprep.mubr.msk.f32.mxu0 %vm6142_vm0, %v7952_v30  ;;  %1598 = vst [vmem:[#allocation2 + $0x38] sm:$0xff] %v6833_v25  ;;  %v6842_v28 = vmax.f32 %v1533_v10, 0.0  ;;  %v1536_v29 = vadd.f32 %v6787_v23, %v1497_v3  ;;  %v1193_v9 = vadd.f32 %v5007_v33, %v805_v27  ;;  %v2459_v24 = vld [vmem:[#allocation8 + $0x1d0] sm:$0xff] }
 0x196   : > { %v1496_v31 = vadd.f32 %v1369_v55, %v1190_v2  ;;  %5358 = vmatprep.subr.mxu0 %v7952_v30  ;;  %5278 = vmatprep.mubr.msk.f32.mxu1 %vm6142_vm0, %v7952_v30  ;;  %v1073_v60 = vpop.f32.mrf.mxu0  ;;  %v1669_v34 = vld [vmem:[#allocation2 + $0x9] sm:$0xff]  ;;  %v6869_v13 = vld [vmem:[#allocation2 + $0x11] sm:$0xff]  ;;  %v850_v62 = vadd.f32 %v6741_v0, %v6739_v63  ;;  %v865_v63 = vadd.f32 %v6745_v4, %v6743_v1 }
 0x197   : > { %v1379_v35 = vpop.f32.mrf.mxu1  ;;  %5359 = vmatpush3.msra.mxu0 %v2178_v11  ;;  %5483 = vmatprep.subr.mxu1 %v7952_v30  ;;  %1597 = vst [vmem:[#allocation2 + $0x30] sm:$0xff] %v6842_v28  ;;  %v6852_v20 = vmax.f32 %v1536_v29, 0.0  ;;  %v1192_v37 = vadd.f32 %v1073_v60, %v800_v7  ;;  %v1499_v16 = vadd.f32 %v5087_v42, %v1193_v9  ;;  %v2458_v9 = vld [vmem:[#allocation8 + $0x1c8] sm:$0xff]  ;;  %v2172_v1 = vld [vmem:[#allocation8 + $0x140] sm:$0xff] }
 0x198   : > { %v1535_v17 = vadd.f32 %v6787_v23, %v1496_v31  ;;  %5154 = vmatmul.mubr.f32.gmra.mxu0 %v1669_v34  ;;  %5279 = vmatmul.mubr.f32.gmra.mxu1 %v6802_v39  ;;  %v5010_v14 = vpop.f32.mrf.mxu0  ;;  %v860_v4 = vadd.f32 %v6749_v6, %v6747_v5  ;;  %v7953_v5 = vld [vmem:[#allocation18_spill] sm:$0xff]  ;;  %v7954_v6 = vld [vmem:[#allocation19_spill] sm:$0xff] }
 0x199   : > { %v5090_v22 = vpop.f32.mrf.mxu1  ;;  %5156 = vmatprep.mubr.msk.f32.mxu0 %vm6142_vm0, %v7952_v30  ;;  %5281 = vmatprep.mubr.msk.f32.mxu1 %vm6142_vm0, %v7952_v30  ;;  %1600 = vst [vmem:[#allocation2 + $0x48] sm:$0xff] %v6852_v20  ;;  %v1538_v49 = vadd.f32 %v6787_v23, %v1499_v16  ;;  %v1195_v21 = vadd.f32 %v5010_v14, %v815_v43 }
 0x19a   : > { %v6863_v48 = vmax.f32 %v1535_v17, 0.0  ;;  %v1498_v12 = vadd.f32 %v1379_v35, %v1192_v37  ;;  %5360 = vmatprep.subr.mxu0 %v7952_v30  ;;  %5484 = vmatpush3.msra.mxu1 %v2460_v15  ;;  %v1083_v40 = vpop.f32.mrf.mxu0  ;;  %v6891_v42 = vld [vmem:[#allocation2 + $0x19] sm:$0xff] }
 0x19b   : > { %v1389_v18 = vpop.f32.mrf.mxu1  ;;  %5361 = vmatpush3.msra.mxu0 %v2177_v19  ;;  %5485 = vmatprep.subr.mxu1 %v7952_v30  ;;  %v6873_v27 = vmax.f32 %v1538_v49, 0.0  ;;  %v1194_v54 = vadd.f32 %v1083_v40, %v810_v61  ;;  %v1501_v55 = vadd.f32 %v5090_v22, %v1195_v21  ;;  %v6913_v61 = vld [vmem:[#allocation2 + $0x21] sm:$0xff]  ;;  %v2457_v22 = vld [vmem:[#allocation8 + $0x1c0] sm:$0xff] }
 0x19c   : > { %1599 = vst [vmem:[#allocation2 + $0x40] sm:$0xff] %v6863_v48  ;;  %v1537_v32 = vadd.f32 %v6787_v23, %v1498_v12  ;;  %5157 = vmatmul.mubr.f32.gmra.mxu0 %v6869_v13  ;;  %5282 = vmatmul.mubr.f32.gmra.mxu1 %v6826_v26  ;;  %v5013_v10 = vpop.f32.mrf.mxu0 }
 0x19d   : > { %v5093_v2 = vpop.f32.mrf.mxu1  ;;  %5159 = vmatprep.mubr.msk.f32.mxu0 %vm6142_vm0, %v7952_v30  ;;  %5284 = vmatprep.mubr.msk.f32.mxu1 %vm6142_vm0, %v7952_v30  ;;  %1602 = vst [vmem:[#allocation2 + $0x58] sm:$0xff] %v6873_v27  ;;  %v1540_v11 = vadd.f32 %v6787_v23, %v1501_v55  ;;  %v1197_v7 = vadd.f32 %v5013_v10, %v825_v38  ;;  %v2456_v10 = vld [vmem:[#allocation8 + $0x1b8] sm:$0xff] }
 0x19e   : > { %v6885_v3 = vmax.f32 %v1537_v32, 0.0  ;;  %v1500_v33 = vadd.f32 %v1389_v18, %v1194_v54  ;;  %5362 = vmatprep.subr.mxu0 %v7952_v30  ;;  %5486 = vmatpush3.msra.mxu1 %v2459_v24  ;;  %v1093_v46 = vpop.f32.mrf.mxu0 }
 0x19f   : > { %v1399_v29 = vpop.f32.mrf.mxu1  ;;  %5363 = vmatpush3.msra.mxu0 %v2176_v41  ;;  %5487 = vmatprep.subr.mxu1 %v7952_v30  ;;  %v6895_v31 = vmax.f32 %v1540_v11, 0.0  ;;  %v1196_v60 = vadd.f32 %v1093_v46, %v820_v44  ;;  %v1503_v34 = vadd.f32 %v5093_v2, %v1197_v7  ;;  %v6935_v41 = vld [vmem:[#allocation2 + $0x29] sm:$0xff] }
 0x1a0   : > { %1601 = vst [vmem:[#allocation2 + $0x50] sm:$0xff] %v6885_v3  ;;  %v1539_v43 = vadd.f32 %v6787_v23, %v1500_v33  ;;  %5160 = vmatmul.mubr.f32.gmra.mxu0 %v6891_v42  ;;  %5285 = vmatmul.mubr.f32.gmra.mxu1 %v6817_v36  ;;  %v5016_v35 = vpop.f32.mrf.mxu0 }
 0x1a1   : > { %v5096_v15 = vpop.f32.mrf.mxu1  ;;  %5162 = vmatprep.mubr.msk.f32.mxu0 %vm6142_vm0, %v7952_v30  ;;  %5287 = vmatprep.mubr.msk.f32.mxu1 %vm6142_vm0, %v7952_v30  ;;  %1604 = vst [vmem:[#allocation2 + $0x68] sm:$0xff] %v6895_v31  ;;  %v1542_v37 = vadd.f32 %v6787_v23, %v1503_v34  ;;  %v1199_v16 = vadd.f32 %v5016_v35, %v835_v45  ;;  %v6957_v34 = vld [vmem:[#allocation2 + $0x31] sm:$0xff] }
 0x1a2   : > { %v6907_v17 = vmax.f32 %v1539_v43, 0.0  ;;  %v1502_v19 = vadd.f32 %v1399_v29, %v1196_v60  ;;  %5364 = vmatprep.subr.mxu0 %v7952_v30  ;;  %5488 = vmatpush3.msra.mxu1 %v2458_v9  ;;  %v1103_v52 = vpop.f32.mrf.mxu0 }
 0x1a3   : > { %v1409_v14 = vpop.f32.mrf.mxu1  ;;  %5365 = vmatpush3.msra.mxu0 %v2175_v47  ;;  %5489 = vmatprep.subr.mxu1 %v7952_v30  ;;  %v6917_v49 = vmax.f32 %v1542_v37, 0.0  ;;  %v1198_v12 = vadd.f32 %v1103_v52, %v830_v50  ;;  %v1505_v38 = vadd.f32 %v5096_v15, %v1199_v16  ;;  %v2455_v50 = vld [vmem:[#allocation8 + $0x1b0] sm:$0xff] }
 0x1a4   : > { %1603 = vst [vmem:[#allocation2 + $0x60] sm:$0xff] %v6907_v17  ;;  %v1541_v21 = vadd.f32 %v6787_v23, %v1502_v19  ;;  %5163 = vmatmul.mubr.f32.gmra.mxu0 %v6913_v61  ;;  %5288 = vmatmul.mubr.f32.gmra.mxu1 %v6842_v28  ;;  %v5019_v40 = vpop.f32.mrf.mxu0 }
 0x1a5   : > { %v5099_v18 = vpop.f32.mrf.mxu1  ;;  %5165 = vmatprep.mubr.msk.f32.mxu0 %vm6142_vm0, %v7952_v30  ;;  %5290 = vmatprep.mubr.msk.f32.mxu1 %vm6142_vm0, %v7952_v30  ;;  %1606 = vst [vmem:[#allocation2 + $0x78] sm:$0xff] %v6917_v49  ;;  %v1544_v32 = vadd.f32 %v6787_v23, %v1505_v38  ;;  %v1201_v54 = vadd.f32 %v5019_v40, %v845_v51  ;;  %v2454_v40 = vld [vmem:[#allocation8 + $0x1a8] sm:$0xff] }
 0x1a6   : > { %v6929_v24 = vmax.f32 %v1541_v21, 0.0  ;;  %v1504_v55 = vadd.f32 %v1409_v14, %v1198_v12  ;;  %5366 = vmatprep.subr.mxu0 %v7952_v30  ;;  %5490 = vmatpush3.msra.mxu1 %v2457_v22  ;;  %v1113_v58 = vpop.f32.mrf.mxu0  ;;  %v875_v12 = vadd.f32 %v7954_v6, %v7953_v5 }
 0x1a7   : > { %v1419_v44 = vpop.f32.mrf.mxu1  ;;  %5367 = vmatpush3.msra.mxu0 %v2174_v53  ;;  %5491 = vmatprep.subr.mxu1 %v7952_v30  ;;  %v6939_v2 = vmax.f32 %v1544_v32, 0.0  ;;  %v1200_v7 = vadd.f32 %v1113_v58, %v840_v56  ;;  %v1507_v33 = vadd.f32 %v5099_v18, %v1201_v54  ;;  %v6979_v53 = vld [vmem:[#allocation2 + $0x39] sm:$0xff] }
 0x1a8   : > { %1605 = vst [vmem:[#allocation2 + $0x70] sm:$0xff] %v6929_v24  ;;  %v1543_v11 = vadd.f32 %v6787_v23, %v1504_v55  ;;  %5166 = vmatmul.mubr.f32.gmra.mxu0 %v6935_v41  ;;  %5291 = vmatmul.mubr.f32.gmra.mxu1 %v6833_v25  ;;  %v5022_v45 = vpop.f32.mrf.mxu0  ;;  %v7955_v58 = vld [vmem:[#allocation20_spill] sm:$0xff] }
 0x1a9   : > { %v5102_v46 = vpop.f32.mrf.mxu1  ;;  %5168 = vmatprep.mubr.msk.f32.mxu0 %vm6142_vm0, %v7952_v30  ;;  %5293 = vmatprep.mubr.msk.f32.mxu1 %vm6142_vm0, %v7952_v30  ;;  %1608 = vst [vmem:[#allocation2 + $0x88] sm:$0xff] %v6939_v2  ;;  %v1546_v9 = vadd.f32 %v6787_v23, %v1507_v33  ;;  %v1203_v43 = vadd.f32 %v5022_v45, %v855_v57  ;;  %v2171_v57 = vld [vmem:[#allocation8 + $0x138] sm:$0xff] }
 0x1aa   : > { %v6951_v29 = vmax.f32 %v1543_v11, 0.0  ;;  %v1506_v60 = vadd.f32 %v1419_v44, %v1200_v7  ;;  %5368 = vmatprep.subr.mxu0 %v7952_v30  ;;  %5492 = vmatpush3.msra.mxu1 %v2456_v10  ;;  %v1123_v0 = vpop.f32.mrf.mxu0  ;;  %v7956_v44 = vld [vmem:[#allocation21_spill] sm:$0xff] }
 0x1ab   : > { %v1429_v47 = vpop.f32.mrf.mxu1  ;;  %5369 = vmatpush3.msra.mxu0 %v2173_v59  ;;  %5493 = vmatprep.subr.mxu1 %v7952_v30  ;;  %v6961_v35 = vmax.f32 %v1546_v9, 0.0  ;;  %v1202_v37 = vadd.f32 %v1123_v0, %v850_v62  ;;  %v1509_v16 = vadd.f32 %v5102_v46, %v1203_v43  ;;  %v870_v10 = vadd.f32 %v7956_v44, %v7955_v58  ;;  %v7957_v46 = vld [vmem:[#allocation22_spill] sm:$0xff]  ;;  %v7958_v9 = vld [vmem:[#allocation23_spill] sm:$0xff] }
 0x1ac   : > { %1607 = vst [vmem:[#allocation2 + $0x80] sm:$0xff] %v6951_v29  ;;  %v1545_v15 = vadd.f32 %v6787_v23, %v1506_v60  ;;  %5169 = vmatmul.mubr.f32.gmra.mxu0 %v6957_v34  ;;  %5294 = vmatmul.mubr.f32.gmra.mxu1 %v6863_v48  ;;  %v5025_v19 = vpop.f32.mrf.mxu0  ;;  %v885_v43 = vadd.f32 %v7958_v9, %v7957_v46 }
 0x1ad   : > { %v5105_v51 = vpop.f32.mrf.mxu1  ;;  %5171 = vmatprep.mubr.msk.f32.mxu0 %vm6142_vm0, %v7952_v30  ;;  %5296 = vmatprep.mubr.msk.f32.mxu1 %vm6142_vm0, %v7952_v30  ;;  %1610 = vst [vmem:[#allocation2 + $0x98] sm:$0xff] %v6961_v35  ;;  %v1548_v14 = vadd.f32 %v6787_v23, %v1509_v16  ;;  %v1205_v22 = vadd.f32 %v5025_v19, %v865_v63  ;;  %v7001_v63 = vld [vmem:[#allocation2 + $0x41] sm:$0xff] }
 0x1ae   : > { %v6973_v52 = vmax.f32 %v1545_v15, 0.0  ;;  %v1508_v21 = vadd.f32 %v1429_v47, %v1202_v37  ;;  %5370 = vmatprep.subr.mxu0 %v7952_v30  ;;  %5494 = vmatpush3.msra.mxu1 %v2455_v50  ;;  %v1133_v38 = vpop.f32.mrf.mxu0  ;;  %v2453_v47 = vld [vmem:[#allocation8 + $0x1a0] sm:$0xff] }
 0x1af   : > { %v1439_v56 = vpop.f32.mrf.mxu1  ;;  %5371 = vmatpush3.msra.mxu0 %v2172_v1  ;;  %5495 = vmatprep.subr.mxu1 %v7952_v30  ;;  %v6983_v18 = vmax.f32 %v1548_v14, 0.0  ;;  %v1204_v54 = vadd.f32 %v1133_v38, %v860_v4  ;;  %v1511_v55 = vadd.f32 %v5105_v51, %v1205_v22  ;;  %v2170_v1 = vld [vmem:[#allocation8 + $0x130] sm:$0xff]  ;;  %v7960_v19 = vld [vmem:[#allocation25_spill] sm:$0xff]  ;;  %v7961_v38 = vld [vmem:[#allocation26_spill] sm:$0xff] }
 0x1b0   : > { %1609 = vst [vmem:[#allocation2 + $0x90] sm:$0xff] %v6973_v52  ;;  %v1547_v32 = vadd.f32 %v6787_v23, %v1508_v21  ;;  %5172 = vmatmul.mubr.f32.gmra.mxu0 %v6979_v53  ;;  %5297 = vmatmul.mubr.f32.gmra.mxu1 %v6852_v20  ;;  %v5028_v11 = vpop.f32.mrf.mxu0  ;;  %v7959_v4 = vld [vmem:[#allocation24_spill] sm:$0xff] }
 0x1b1   : > { %v5108_v7 = vpop.f32.mrf.mxu1  ;;  %5174 = vmatprep.mubr.msk.f32.mxu0 %vm6142_vm0, %v7952_v30  ;;  %5299 = vmatprep.mubr.msk.f32.mxu1 %vm6142_vm0, %v7952_v30  ;;  %1612 = vst [vmem:[#allocation2 + $0xa8] sm:$0xff] %v6983_v18  ;;  %v1550_v59 = vadd.f32 %v6787_v23, %v1511_v55  ;;  %v1207_v62 = vadd.f32 %v5028_v11, %v875_v12 }
 0x1b2   : > { %v6995_v33 = vmax.f32 %v1547_v32, 0.0  ;;  %v1510_v45 = vadd.f32 %v1439_v56, %v1204_v54  ;;  %5372 = vmatprep.subr.mxu0 %v7952_v30  ;;  %5496 = vmatpush3.msra.mxu1 %v2454_v40  ;;  %v1143_v60 = vpop.f32.mrf.mxu0  ;;  %v880_v51 = vadd.f32 %v7960_v19, %v7959_v4  ;;  %v7962_v56 = vld [vmem:[#allocation27_spill] sm:$0xff]  ;;  %v7023_v54 = vld [vmem:[#allocation2 + $0x49] sm:$0xff] }
 0x1b3   : > { %v1449_v0 = vpop.f32.mrf.mxu1  ;;  %5373 = vmatpush3.msra.mxu0 %v2171_v57  ;;  %5497 = vmatprep.subr.mxu1 %v7952_v30  ;;  %v7005_v50 = vmax.f32 %v1550_v59, 0.0  ;;  %v1206_v37 = vadd.f32 %v1143_v60, %v870_v10  ;;  %v1513_v16 = vadd.f32 %v5108_v7, %v1207_v62  ;;  %v895_v40 = vadd.f32 %v7962_v56, %v7961_v38  ;;  %v2452_v57 = vld [vmem:[#allocation8 + $0x198] sm:$0xff]  ;;  %v2169_v7 = vld [vmem:[#allocation8 + $0x128] sm:$0xff] }
 0x1b4   : > { %1611 = vst [vmem:[#allocation2 + $0xa0] sm:$0xff] %v6995_v33  ;;  %v1549_v15 = vadd.f32 %v6787_v23, %v1510_v45  ;;  %5175 = vmatmul.mubr.f32.gmra.mxu0 %v7001_v63  ;;  %5300 = vmatmul.mubr.f32.gmra.mxu1 %v6885_v3  ;;  %v5031_v14 = vpop.f32.mrf.mxu0  ;;  %v7963_v59 = vld [vmem:[#allocation28_spill] sm:$0xff]  ;;  %v7964_v62 = vld [vmem:[#allocation29_spill] sm:$0xff]  ;;  %v7045_v4 = vld [vmem:[#allocation2 + $0x51] sm:$0xff] }
 0x1b5   : > { %v5111_v22 = vpop.f32.mrf.mxu1  ;;  %5177 = vmatprep.mubr.msk.f32.mxu0 %vm6142_vm0, %v7952_v30  ;;  %5302 = vmatprep.mubr.msk.f32.mxu1 %vm6142_vm0, %v7952_v30  ;;  %1614 = vst [vmem:[#allocation2 + $0xb8] sm:$0xff] %v7005_v50  ;;  %v1552_v5 = vadd.f32 %v6787_v23, %v1513_v16  ;;  %v1209_v6 = vadd.f32 %v5031_v14, %v885_v43  ;;  %v7967_v38 = vld [vmem:[#allocation32_spill] sm:$0xff]  ;;  %v7968_v56 = vld [vmem:[#allocation33_spill] sm:$0xff] }
 0x1b6   : > { %v7017_v21 = vmax.f32 %v1549_v15, 0.0  ;;  %v1512_v12 = vadd.f32 %v1449_v0, %v1206_v37  ;;  %5374 = vmatprep.subr.mxu0 %v7952_v30  ;;  %5498 = vmatpush3.msra.mxu1 %v2453_v47  ;;  %v1153_v32 = vpop.f32.mrf.mxu0  ;;  %v890_v45 = vadd.f32 %v7964_v62, %v7963_v59  ;;  %v7965_v15 = vld [vmem:[#allocation30_spill] sm:$0xff]  ;;  %v7966_v37 = vld [vmem:[#allocation31_spill] sm:$0xff] }
 0x1b7   : > { %v1459_v55 = vpop.f32.mrf.mxu1  ;;  %5375 = vmatpush3.msra.mxu0 %v2170_v1  ;;  %5499 = vmatprep.subr.mxu1 %v7952_v30  ;;  %v7027_v58 = vmax.f32 %v1552_v5, 0.0  ;;  %v1208_v10 = vadd.f32 %v1153_v32, %v880_v51  ;;  %v1515_v11 = vadd.f32 %v5111_v22, %v1209_v6  ;;  %v905_v16 = vadd.f32 %v7966_v37, %v7965_v15  ;;  %v2451_v51 = vld [vmem:[#allocation8 + $0x190] sm:$0xff] }
 0x1b8   : > { %1613 = vst [vmem:[#allocation2 + $0xb0] sm:$0xff] %v7017_v21  ;;  %v1551_v44 = vadd.f32 %v6787_v23, %v1512_v12  ;;  %5178 = vmatmul.mubr.f32.gmra.mxu0 %v7023_v54  ;;  %5303 = vmatmul.mubr.f32.gmra.mxu1 %v6873_v27  ;;  %v5034_v46 = vpop.f32.mrf.mxu0  ;;  %v2168_v12 = vld [vmem:[#allocation8 + $0x120] sm:$0xff]  ;;  %v7067_v59 = vld [vmem:[#allocation2 + $0x59] sm:$0xff] }
 0x1b9   : > { %v5114_v9 = vpop.f32.mrf.mxu1  ;;  %5180 = vmatprep.mubr.msk.f32.mxu0 %vm6142_vm0, %v7952_v30  ;;  %5305 = vmatprep.mubr.msk.f32.mxu1 %vm6142_vm0, %v7952_v30  ;;  %1616 = vst [vmem:[#allocation2 + $0xc8] sm:$0xff] %v7027_v58  ;;  %v1554_v60 = vadd.f32 %v6787_v23, %v1515_v11  ;;  %v1211_v0 = vadd.f32 %v5034_v46, %v895_v40 }
 0x1ba   : > { %v7039_v43 = vmax.f32 %v1551_v44, 0.0  ;;  %v1514_v47 = vadd.f32 %v1459_v55, %v1208_v10  ;;  %5376 = vmatprep.subr.mxu0 %v7952_v30  ;;  %5500 = vmatpush3.msra.mxu1 %v2452_v57  ;;  %v1163_v1 = vpop.f32.mrf.mxu0  ;;  %v900_v40 = vadd.f32 %v7968_v56, %v7967_v38  ;;  %v7111_v38 = vld [vmem:[#allocation2 + $0x71] sm:$0xff] }
 0x1bb   : > { %v1469_v19 = vpop.f32.mrf.mxu1  ;;  %5377 = vmatpush3.msra.mxu0 %v2169_v7  ;;  %5501 = vmatprep.subr.mxu1 %v7952_v30  ;;  %v7049_v14 = vmax.f32 %v1554_v60, 0.0  ;;  %v1210_v5 = vadd.f32 %v1163_v1, %v890_v45  ;;  %v1517_v6 = vadd.f32 %v5114_v9, %v1211_v0  ;;  %v2450_v45 = vld [vmem:[#allocation8 + $0x188] sm:$0xff]  ;;  %v7085_v1 = vld [vmem:[#allocation2 + $0x61] sm:$0xff]  ;;  %v2164_v56 = vld [vmem:[#allocation8 + $0x100] sm:$0xff] }
 0x1bc   : > { %1615 = vst [vmem:[#allocation2 + $0xc0] sm:$0xff] %v7039_v43  ;;  %v1553_v22 = vadd.f32 %v6787_v23, %v1514_v47  ;;  %5181 = vmatmul.mubr.f32.gmra.mxu0 %v7045_v4  ;;  %5306 = vmatmul.mubr.f32.gmra.mxu1 %v6907_v17  ;;  %v5037_v32 = vpop.f32.mrf.mxu0  ;;  %v2167_v47 = vld [vmem:[#allocation8 + $0x118] sm:$0xff] }
 0x1bd   : > { %v5117_v55 = vpop.f32.mrf.mxu1  ;;  %5183 = vmatprep.mubr.msk.f32.mxu0 %vm6142_vm0, %v7952_v30  ;;  %5308 = vmatprep.mubr.msk.f32.mxu1 %vm6142_vm0, %v7952_v30  ;;  %1618 = vst [vmem:[#allocation2 + $0xd8] sm:$0xff] %v7049_v14  ;;  %v7064_v44 = vadd.f32 %v6787_v23, %v1517_v6  ;;  %v1213_v10 = vadd.f32 %v5037_v32, %v905_v16  ;;  %v7128_v32 = vld [vmem:[#allocation2 + $0x81] sm:$0xff] }
 0x1be   : > { %v7061_v57 = vmax.f32 %v1553_v22, 0.0  ;;  %v1516_v11 = vadd.f32 %v1469_v19, %v1210_v5  ;;  %5378 = vmatprep.subr.mxu0 %v7952_v30  ;;  %5502 = vmatpush3.msra.mxu1 %v2451_v51  ;;  %v1173_v7 = vpop.f32.mrf.mxu0  ;;  %v2449_v19 = vld [vmem:[#allocation8 + $0x180] sm:$0xff]  ;;  %v2166_v5 = vld [vmem:[#allocation8 + $0x110] sm:$0xff] }
 0x1bf   : > { %v1479_v62 = vpop.f32.mrf.mxu1  ;;  %5379 = vmatpush3.msra.mxu0 %v2168_v12  ;;  %5503 = vmatprep.subr.mxu1 %v7952_v30  ;;  %v1588_v46 = vmax.f32 %v7064_v44, 0.0  ;;  %v1212_v60 = vadd.f32 %v1173_v7, %v900_v40  ;;  %v1519_v0 = vadd.f32 %v5117_v55, %v1213_v10  ;;  %v7100_v12 = vld [vmem:[#allocation2 + $0x69] sm:$0xff]  ;;  %v7120_v40 = vld [vmem:[#allocation2 + $0x79] sm:$0xff]  ;;  %v7144_v10 = vld [vmem:[#allocation2 + $0x91] sm:$0xff] }
 0x1c0   : > { %1617 = vst [vmem:[#allocation2 + $0xd0] sm:$0xff] %v7061_v57  ;;  %v1555_v9 = vadd.f32 %v6787_v23, %v1516_v11  ;;  %5184 = vmatmul.mubr.f32.gmra.mxu0 %v7067_v59  ;;  %5309 = vmatmul.mubr.f32.gmra.mxu1 %v6895_v31  ;;  %v7136_v55 = vld [vmem:[#allocation2 + $0x89] sm:$0xff]  ;;  %v7152_v11 = vld [vmem:[#allocation2 + $0x99] sm:$0xff]  ;;  %v7160_v7 = vld [vmem:[#allocation2 + $0xa1] sm:$0xff] }
 0x1c1   : > { %5186 = vmatprep.mubr.msk.f32.mxu0 %vm6142_vm0, %v7952_v30  ;;  %5311 = vmatprep.mubr.msk.f32.mxu1 %vm6142_vm0, %v7952_v30  ;;  %1620 = vst [vmem:[#allocation2 + $0xe8] sm:$0xff] %v1588_v46  ;;  %v1558_v37 = vadd.f32 %v6787_v23, %v1519_v0  ;;  %v1518_v16 = vadd.f32 %v1479_v62, %v1212_v60  ;;  %v7168_v62 = vld [vmem:[#allocation2 + $0xa9] sm:$0xff] }
 0x1c2   : > { %v7081_v15 = vmax.f32 %v1555_v9, 0.0  ;;  %5380 = vmatprep.subr.mxu0 %v7952_v30  ;;  %5504 = vmatpush3.msra.mxu1 %v2450_v45  ;;  %v7176_v45 = vld [vmem:[#allocation2 + $0xb1] sm:$0xff] }
 0x1c3   : > { %5381 = vmatpush3.msra.mxu0 %v2167_v47  ;;  %5505 = vmatprep.subr.mxu1 %v7952_v30  ;;  %v1590_v51 = vmax.f32 %v1558_v37, 0.0  ;;  %v7090_v22 = vadd.f32 %v6787_v23, %v1518_v16  ;;  %v2165_v23 = vld [vmem:[#allocation8 + $0x108] sm:$0xff]  ;;  %v7192_v60 = vld [vmem:[#allocation2 + $0xc1] sm:$0xff] }
 0x1c4   : > { %1619 = vst [vmem:[#allocation2 + $0xe0] sm:$0xff] %v7081_v15  ;;  %5187 = vmatmul.mubr.f32.gmra.mxu0 %v7085_v1  ;;  %5312 = vmatmul.mubr.f32.gmra.mxu1 %v6929_v24  ;;  %v7184_v9 = vld [vmem:[#allocation2 + $0xb9] sm:$0xff] }
 0x1c5   : > { %5189 = vmatprep.mubr.msk.f32.mxu0 %vm6142_vm0, %v7952_v30  ;;  %5314 = vmatprep.mubr.msk.f32.mxu1 %vm6142_vm0, %v7952_v30  ;;  %1622 = vst [vmem:[#allocation2 + $0xf8] sm:$0xff] %v1590_v51  ;;  %v1589_v6 = vmax.f32 %v7090_v22, 0.0 }
 0x1c6   : > { %5382 = vmatprep.subr.mxu0 %v7952_v30  ;;  %5506 = vmatpush3.msra.mxu1 %v2449_v19  ;;  %v2828_v19 = vld [vmem:[#allocation11 + $0x20] sm:$0xff] }
 0x1c7   : > { %5383 = vmatpush3.msra.mxu0 %v2166_v5  ;;  %1621 = vst [vmem:[#allocation2 + $0xf0] sm:$0xff] %v1589_v6  ;;  %v7200_v0 = vld [vmem:[#allocation2 + $0xc9] sm:$0xff]  ;;  %v7208_v47 = vld [vmem:[#allocation2 + $0xd1] sm:$0xff] }
 0x1c8   : > { %5190 = vmatmul.mubr.f32.gmra.mxu0 %v7100_v12  ;;  %5315 = vmatmul.mubr.f32.gmra.mxu1 %v6917_v49 }
 0x1c9   : > { %5192 = vmatprep.mubr.msk.f32.mxu0 %vm6142_vm0, %v7952_v30  ;;  %5317 = vmatprep.mubr.msk.f32.mxu1 %vm6142_vm0, %v7952_v30 }
 0x1ca   : > { %5384 = vmatprep.subr.mxu0 %v7952_v30 }
 0x1cb   : > { %5385 = vmatpush3.msra.mxu0 %v2165_v23  ;;  %v7216_v37 = vld [vmem:[#allocation2 + $0xd9] sm:$0xff]  ;;  %v7224_v16 = vld [vmem:[#allocation2 + $0xe1] sm:$0xff] }
 0x1cc   : > { %5193 = vmatmul.mubr.f32.gmra.mxu0 %v7111_v38  ;;  %5318 = vmatmul.mubr.f32.gmra.mxu1 %v6951_v29 }
 0x1cd   : > { %5195 = vmatprep.mubr.msk.f32.mxu0 %vm6142_vm0, %v7952_v30  ;;  %5320 = vmatprep.mubr.msk.f32.mxu1 %vm6142_vm0, %v7952_v30 }
 0x1ce   : > { %5386 = vmatprep.subr.mxu0 %v7952_v30 }
 0x1cf   : > { %5387 = vmatpush3.msra.mxu0 %v2164_v56  ;;  %v2827_v56 = vld [vmem:[#allocation11 + $0x18] sm:$0xff] }
 0x1d0   : > { %5196 = vmatmul.mubr.f32.gmra.mxu0 %v7120_v40  ;;  %5321 = vmatmul.mubr.f32.gmra.mxu1 %v6939_v2 }
 0x1d1   : > { %5198 = vmatprep.mubr.msk.f32.mxu0 %vm6142_vm0, %v7952_v30  ;;  %5323 = vmatprep.mubr.msk.f32.mxu1 %vm6142_vm0, %v7952_v30 }
 0x1d4   : > { %5199 = vmatmul.mubr.f32.gmra.mxu0 %v7128_v32  ;;  %5324 = vmatmul.mubr.f32.gmra.mxu1 %v6973_v52 }
 0x1d5   : > { %5201 = vmatprep.mubr.msk.f32.mxu0 %vm6142_vm0, %v7952_v30  ;;  %5326 = vmatprep.mubr.msk.f32.mxu1 %vm6142_vm0, %v7952_v30 }
 0x1d8   : > { %5202 = vmatmul.mubr.f32.gmra.mxu0 %v7136_v55  ;;  %5327 = vmatmul.mubr.f32.gmra.mxu1 %v6961_v35 }
 0x1d9   : > { %5204 = vmatprep.mubr.msk.f32.mxu0 %vm6142_vm0, %v7952_v30  ;;  %5329 = vmatprep.mubr.msk.f32.mxu1 %vm6142_vm0, %v7952_v30 }
 0x1dc   : > { %5205 = vmatmul.mubr.f32.gmra.mxu0 %v7144_v10  ;;  %5330 = vmatmul.mubr.f32.gmra.mxu1 %v6995_v33 }
 0x1dd   : > { %5207 = vmatprep.mubr.msk.f32.mxu0 %vm6142_vm0, %v7952_v30  ;;  %5332 = vmatprep.mubr.msk.f32.mxu1 %vm6142_vm0, %v7952_v30 }
 0x1e0   : > { %5208 = vmatmul.mubr.f32.gmra.mxu0 %v7152_v11  ;;  %5333 = vmatmul.mubr.f32.gmra.mxu1 %v6983_v18 }
 0x1e1   : > { %5210 = vmatprep.mubr.msk.f32.mxu0 %vm6142_vm0, %v7952_v30  ;;  %5335 = vmatprep.mubr.msk.f32.mxu1 %vm6142_vm0, %v7952_v30 }
 0x1e4   : > { %5211 = vmatmul.mubr.f32.gmra.mxu0 %v7160_v7  ;;  %5336 = vmatmul.mubr.f32.gmra.mxu1 %v7017_v21 }
 0x1e5   : > { %5213 = vmatprep.mubr.msk.f32.mxu0 %vm6142_vm0, %v7952_v30  ;;  %5338 = vmatprep.mubr.msk.f32.mxu1 %vm6142_vm0, %v7952_v30 }
 0x1e8   : > { %5214 = vmatmul.mubr.f32.gmra.mxu0 %v7168_v62  ;;  %5339 = vmatmul.mubr.f32.gmra.mxu1 %v7005_v50 }
 0x1e9   : > { %5216 = vmatprep.mubr.msk.f32.mxu0 %vm6142_vm0, %v7952_v30  ;;  %5341 = vmatprep.mubr.msk.f32.mxu1 %vm6142_vm0, %v7952_v30 }
 0x1ec   : > { %5217 = vmatmul.mubr.f32.gmra.mxu0 %v7176_v45  ;;  %5342 = vmatmul.mubr.f32.gmra.mxu1 %v7039_v43 }
 0x1ed   : > { %5219 = vmatprep.mubr.msk.f32.mxu0 %vm6142_vm0, %v7952_v30  ;;  %5344 = vmatprep.mubr.msk.f32.mxu1 %vm6142_vm0, %v7952_v30 }
 0x1f0   : > { %5220 = vmatmul.mubr.f32.gmra.mxu0 %v7184_v9  ;;  %5345 = vmatmul.mubr.f32.gmra.mxu1 %v7027_v58 }
 0x1f1   : > { %5222 = vmatprep.mubr.msk.f32.mxu0 %vm6142_vm0, %v7952_v30  ;;  %5347 = vmatprep.mubr.msk.f32.mxu1 %vm6142_vm0, %v7952_v30 }
 0x1f4   : > { %5223 = vmatmul.mubr.f32.gmra.mxu0 %v7192_v60  ;;  %5348 = vmatmul.mubr.f32.gmra.mxu1 %v7061_v57 }
 0x1f5   : > { %5225 = vmatprep.mubr.msk.f32.mxu0 %vm6142_vm0, %v7952_v30  ;;  %5350 = vmatprep.mubr.msk.f32.mxu1 %vm6142_vm0, %v7952_v30 }
 0x1f8   : > { %5226 = vmatmul.mubr.f32.gmra.mxu0 %v7200_v0  ;;  %5351 = vmatmul.mubr.f32.gmra.mxu1 %v7049_v14 }
 0x1f9   : > { %5228 = vmatprep.mubr.msk.f32.mxu0 %vm6142_vm0, %v7952_v30  ;;  %5353 = vmatprep.mubr.msk.f32.mxu1 %vm6142_vm0, %v7952_v30 }
 0x1fc   : > { %5229 = vmatmul.mubr.f32.gmra.mxu0 %v7208_v47  ;;  %5354 = vmatmul.mubr.f32.gmra.mxu1 %v7081_v15 }
 0x1fd   : > { %5231 = vmatprep.mubr.msk.f32.mxu0 %vm6142_vm0, %v7952_v30  ;;  %5507 = vmatprep.mubr.msk.f32.mxu1 %vm6142_vm0, %v7952_v30 }
 0x200   : > { %5232 = vmatmul.mubr.f32.gmra.mxu0 %v7216_v37  ;;  %5508 = vmatmul.mubr.f32.vlgmr.msra.gmra.mxu1 %v6869_v13  ;;  %v2878_v13 = vld [vmem:[#allocation11 + $0xd8] sm:$0xff] }
 0x201   : > { %5234 = vmatprep.mubr.msk.f32.mxu0 %vm6142_vm0, %v7952_v30  ;;  %5510 = vmatprep.mubr.msk.f32.mxu1 %vm6142_vm0, %v7952_v30 }
 0x204   : > { %5235 = vmatmul.mubr.f32.gmra.mxu0 %v7224_v16  ;;  %5511 = vmatmul.mubr.f32.gmra.mxu1 %v6891_v42  ;;  %v2877_v42 = vld [vmem:[#allocation11 + $0xd0] sm:$0xff] }
 0x205   : > { %5388 = vmatprep.mubr.msk.f32.mxu0 %vm6142_vm0, %v7952_v30  ;;  %5513 = vmatprep.mubr.msk.f32.mxu1 %vm6142_vm0, %v7952_v30 }
 0x208   : > { %5389 = vmatmul.mubr.f32.vlgmr.msra.gmra.mxu0 %v6810_v8  ;;  %5514 = vmatmul.mubr.f32.gmra.mxu1 %v6913_v61  ;;  %v2839_v8 = vld [vmem:[#allocation11 + $0x78] sm:$0xff] }
 0x209   : > { %5391 = vmatprep.mubr.msk.f32.mxu0 %vm6142_vm0, %v7952_v30  ;;  %5516 = vmatprep.mubr.msk.f32.mxu1 %vm6142_vm0, %v7952_v30  ;;  %v2831_v61 = vld [vmem:[#allocation11 + $0x38] sm:$0xff] }
 0x20a   : > { %5665 = vmatprep.subr.mxu1 %v2839_v8 }
 0x20b   : > { %5666 = vmatpush3.msra.mxu1 %v2839_v8 }
 0x20c   : > { %5392 = vmatmul.mubr.f32.gmra.mxu0 %v6802_v39  ;;  %5517 = vmatmul.mubr.f32.gmra.mxu1 %v6935_v41  ;;  %v2882_v39 = vld [vmem:[#allocation11 + $0xf8] sm:$0xff] }
 0x20d   : > { %5394 = vmatprep.mubr.msk.f32.mxu0 %vm6142_vm0, %v7952_v30  ;;  %5519 = vmatprep.mubr.msk.f32.mxu1 %vm6142_vm0, %v7952_v30 }
 0x20e   : > { %5594 = vmatprep.subr.mxu0 %v2882_v39 }
 0x20f   : > { %5595 = vmatpush3.msra.mxu0 %v2882_v39  ;;  %v2825_v39 = vld [vmem:[#allocation11 + $0x8] sm:$0xff] }
 0x210   : > { %5395 = vmatmul.mubr.f32.gmra.mxu0 %v6826_v26  ;;  %5520 = vmatmul.mubr.f32.gmra.mxu1 %v6957_v34  ;;  %v2838_v26 = vld [vmem:[#allocation11 + $0x70] sm:$0xff] }
 0x211   : > { %5397 = vmatprep.mubr.msk.f32.mxu0 %vm6142_vm0, %v7952_v30  ;;  %5522 = vmatprep.mubr.msk.f32.mxu1 %vm6142_vm0, %v7952_v30 }
 0x212   : > { %5667 = vmatprep.subr.mxu1 %v2838_v26 }
 0x213   : > { %5668 = vmatpush3.msra.mxu1 %v2838_v26 }
 0x214   : > { %5398 = vmatmul.mubr.f32.gmra.mxu0 %v6817_v36  ;;  %5523 = vmatmul.mubr.f32.gmra.mxu1 %v6979_v53  ;;  %v2881_v36 = vld [vmem:[#allocation11 + $0xf0] sm:$0xff]  ;;  %v2829_v53 = vld [vmem:[#allocation11 + $0x28] sm:$0xff] }
 0x215   : > { %5400 = vmatprep.mubr.msk.f32.mxu0 %vm6142_vm0, %v7952_v30  ;;  %5525 = vmatprep.mubr.msk.f32.mxu1 %vm6142_vm0, %v7952_v30 }
 0x216   : > { %5596 = vmatprep.subr.mxu0 %v2881_v36 }
 0x217   : > { %5597 = vmatpush3.msra.mxu0 %v2881_v36 }
 0x218   : > { %5401 = vmatmul.mubr.f32.gmra.mxu0 %v6842_v28  ;;  %5526 = vmatmul.mubr.f32.gmra.mxu1 %v7001_v63  ;;  %v2837_v28 = vld [vmem:[#allocation11 + $0x68] sm:$0xff] }
 0x219   : > { %5403 = vmatprep.mubr.msk.f32.mxu0 %vm6142_vm0, %v7952_v30  ;;  %5528 = vmatprep.mubr.msk.f32.mxu1 %vm6142_vm0, %v7952_v30 }
 0x21a   : > { %5669 = vmatprep.subr.mxu1 %v2837_v28 }
 0x21b   : > { %5670 = vmatpush3.msra.mxu1 %v2837_v28  ;;  %v2824_v28 = vld [vmem:[#allocation11] sm:$0xff] }
 0x21c   : > { %5404 = vmatmul.mubr.f32.gmra.mxu0 %v6833_v25  ;;  %5529 = vmatmul.mubr.f32.gmra.mxu1 %v7023_v54  ;;  %v2880_v25 = vld [vmem:[#allocation11 + $0xe8] sm:$0xff] }
 0x21d   : > { %5406 = vmatprep.mubr.msk.f32.mxu0 %vm6142_vm0, %v7952_v30  ;;  %5531 = vmatprep.mubr.msk.f32.mxu1 %vm6142_vm0, %v7952_v30 }
 0x21e   : > { %5598 = vmatprep.subr.mxu0 %v2880_v25 }
 0x21f   : > { %5599 = vmatpush3.msra.mxu0 %v2880_v25  ;;  %v2869_v25 = vld [vmem:[#allocation11 + $0x90] sm:$0xff] }
 0x220   : > { %5407 = vmatmul.mubr.f32.gmra.mxu0 %v6863_v48  ;;  %5532 = vmatmul.mubr.f32.gmra.mxu1 %v7045_v4  ;;  %v2836_v48 = vld [vmem:[#allocation11 + $0x60] sm:$0xff] }
 0x221   : > { %5409 = vmatprep.mubr.msk.f32.mxu0 %vm6142_vm0, %v7952_v30  ;;  %5534 = vmatprep.mubr.msk.f32.mxu1 %vm6142_vm0, %v7952_v30 }
 0x222   : > { %5671 = vmatprep.subr.mxu1 %v2836_v48 }
 0x223   : > { %5672 = vmatpush3.msra.mxu1 %v2836_v48 }
 0x224   : > { %5410 = vmatmul.mubr.f32.gmra.mxu0 %v6852_v20  ;;  %5535 = vmatmul.mubr.f32.gmra.mxu1 %v7067_v59  ;;  %v2879_v20 = vld [vmem:[#allocation11 + $0xe0] sm:$0xff] }
 0x225   : > { %5412 = vmatprep.mubr.msk.f32.mxu0 %vm6142_vm0, %v7952_v30  ;;  %5537 = vmatprep.mubr.msk.f32.mxu1 %vm6142_vm0, %v7952_v30 }
 0x226   : > { %5600 = vmatprep.subr.mxu0 %v2879_v20 }
 0x227   : > { %5601 = vmatpush3.msra.mxu0 %v2879_v20 }
 0x228   : > { %5413 = vmatmul.mubr.f32.gmra.mxu0 %v6885_v3  ;;  %5538 = vmatmul.mubr.f32.gmra.mxu1 %v7085_v1  ;;  %v2834_v3 = vld [vmem:[#allocation11 + $0x50] sm:$0xff] }
 0x229   : > { %5415 = vmatprep.mubr.msk.f32.mxu0 %vm6142_vm0, %v7952_v30  ;;  %5540 = vmatprep.mubr.msk.f32.mxu1 %vm6142_vm0, %v7952_v30  ;;  %v2873_v1 = vld [vmem:[#allocation11 + $0xb0] sm:$0xff] }
 0x22a   : > { %5602 = vmatprep.subr.mxu0 %v2878_v13 }
 0x22b   : > { %5603 = vmatpush3.msra.mxu0 %v2878_v13 }
 0x22c   : > { %5416 = vmatmul.mubr.f32.gmra.mxu0 %v6873_v27  ;;  %5541 = vmatmul.mubr.f32.gmra.mxu1 %v7100_v12  ;;  %v2835_v27 = vld [vmem:[#allocation11 + $0x58] sm:$0xff] }
 0x22d   : > { %5418 = vmatprep.mubr.msk.f32.mxu0 %vm6142_vm0, %v7952_v30  ;;  %5543 = vmatprep.mubr.msk.f32.mxu1 %vm6142_vm0, %v7952_v30 }
 0x22e   : > { %5673 = vmatprep.subr.mxu1 %v2835_v27  ;;  %5604 = vmatprep.subr.mxu0 %v2877_v42 }
 0x22f   : > { %5674 = vmatpush3.msra.mxu1 %v2835_v27  ;;  %5605 = vmatpush3.msra.mxu0 %v2877_v42  ;;  %v2446_v27 = vld [vmem:[#allocation2 + $0xe9] sm:$0xff] }
 0x230   : > { %5419 = vmatmul.mubr.f32.gmra.mxu0 %v6907_v17  ;;  %5544 = vmatmul.mubr.f32.gmra.mxu1 %v7111_v38  ;;  %v2832_v17 = vld [vmem:[#allocation11 + $0x40] sm:$0xff]  ;;  %v2872_v38 = vld [vmem:[#allocation11 + $0xa8] sm:$0xff] }
 0x231   : > { %5421 = vmatprep.mubr.msk.f32.mxu0 %vm6142_vm0, %v7952_v30  ;;  %5546 = vmatprep.mubr.msk.f32.mxu1 %vm6142_vm0, %v7952_v30 }
 0x232   : > { %5675 = vmatprep.subr.mxu1 %v2834_v3 }
 0x233   : > { %5676 = vmatpush3.msra.mxu1 %v2834_v3  ;;  %v2868_v3 = vld [vmem:[#allocation11 + $0x88] sm:$0xff] }
 0x234   : > { %5422 = vmatmul.mubr.f32.gmra.mxu0 %v6895_v31  ;;  %5547 = vmatmul.mubr.f32.gmra.mxu1 %v7120_v40  ;;  %v2833_v31 = vld [vmem:[#allocation11 + $0x48] sm:$0xff] }
 0x235   : > { %5424 = vmatprep.mubr.msk.f32.mxu0 %vm6142_vm0, %v7952_v30  ;;  %5549 = vmatprep.mubr.msk.f32.mxu1 %vm6142_vm0, %v7952_v30 }
 0x236   : > { %5677 = vmatprep.subr.mxu1 %v2833_v31 }
 0x237   : > { %5678 = vmatpush3.msra.mxu1 %v2833_v31 }
 0x238   : > { %5425 = vmatmul.mubr.f32.gmra.mxu0 %v6929_v24  ;;  %5550 = vmatmul.mubr.f32.gmra.mxu1 %v7128_v32  ;;  %v2876_v24 = vld [vmem:[#allocation11 + $0xc8] sm:$0xff] }
 0x239   : > { %5427 = vmatprep.mubr.msk.f32.mxu0 %vm6142_vm0, %v7952_v30  ;;  %5552 = vmatprep.mubr.msk.f32.mxu1 %vm6142_vm0, %v7952_v30 }
 0x23a   : > { %5679 = vmatprep.subr.mxu1 %v2832_v17  ;;  %5606 = vmatprep.subr.mxu0 %v2876_v24 }
 0x23b   : > { %5680 = vmatpush3.msra.mxu1 %v2832_v17  ;;  %5607 = vmatpush3.msra.mxu0 %v2876_v24 }
 0x23c   : > { %5428 = vmatmul.mubr.f32.gmra.mxu0 %v6917_v49  ;;  %5553 = vmatmul.mubr.f32.gmra.mxu1 %v7136_v55 }
 0x23d   : > { %5430 = vmatprep.mubr.msk.f32.mxu0 %vm6142_vm0, %v7952_v30  ;;  %5555 = vmatprep.mubr.msk.f32.mxu1 %vm6142_vm0, %v7952_v30 }
 0x23e   : > { %5681 = vmatprep.subr.mxu1 %v2831_v61 }
 0x23f   : > { %5682 = vmatpush3.msra.mxu1 %v2831_v61  ;;  %v2867_v61 = vld [vmem:[#allocation11 + $0x80] sm:$0xff] }
 0x240   : > { %5431 = vmatmul.mubr.f32.gmra.mxu0 %v6951_v29  ;;  %5556 = vmatmul.mubr.f32.gmra.mxu1 %v7144_v10  ;;  %v2830_v29 = vld [vmem:[#allocation11 + $0x30] sm:$0xff] }
 0x241   : > { %5433 = vmatprep.mubr.msk.f32.mxu0 %vm6142_vm0, %v7952_v30  ;;  %5558 = vmatprep.mubr.msk.f32.mxu1 %vm6142_vm0, %v7952_v30 }
 0x242   : > { %5683 = vmatprep.subr.mxu1 %v2830_v29 }
 0x243   : > { %5684 = vmatpush3.msra.mxu1 %v2830_v29 }
 0x244   : > { %5434 = vmatmul.mubr.f32.gmra.mxu0 %v6939_v2  ;;  %5559 = vmatmul.mubr.f32.gmra.mxu1 %v7152_v11  ;;  %v2875_v2 = vld [vmem:[#allocation11 + $0xc0] sm:$0xff] }
 0x245   : > { %5436 = vmatprep.mubr.msk.f32.mxu0 %vm6142_vm0, %v7952_v30  ;;  %5561 = vmatprep.mubr.msk.f32.mxu1 %vm6142_vm0, %v7952_v30  ;;  %v2871_v11 = vld [vmem:[#allocation11 + $0xa0] sm:$0xff] }
 0x246   : > { %5608 = vmatprep.subr.mxu0 %v2875_v2  ;;  %5685 = vmatprep.subr.mxu1 %v2829_v53 }
 0x247   : > { %5609 = vmatpush3.msra.mxu0 %v2875_v2  ;;  %5686 = vmatpush3.msra.mxu1 %v2829_v53 }
 0x248   : > { %5437 = vmatmul.mubr.f32.gmra.mxu0 %v6973_v52  ;;  %5562 = vmatmul.mubr.f32.gmra.mxu1 %v7160_v7  ;;  %v2874_v52 = vld [vmem:[#allocation11 + $0xb8] sm:$0xff]  ;;  %v2826_v7 = vld [vmem:[#allocation11 + $0x10] sm:$0xff] }
 0x249   : > { %5439 = vmatprep.mubr.msk.f32.mxu0 %vm6142_vm0, %v7952_v30  ;;  %5564 = vmatprep.mubr.msk.f32.mxu1 %vm6142_vm0, %v7952_v30 }
 0x24a   : > { %5610 = vmatprep.subr.mxu0 %v2874_v52  ;;  %5687 = vmatprep.subr.mxu1 %v2828_v19 }
 0x24b   : > { %v1990_v49 = vpop.f32.mrf.mxu1  ;;  %5611 = vmatpush3.msra.mxu0 %v2874_v52  ;;  %5688 = vmatpush3.msra.mxu1 %v2828_v19 }
 0x24c   : > { %5440 = vmatmul.mubr.f32.gmra.mxu0 %v6961_v35  ;;  %5565 = vmatmul.mubr.f32.gmra.mxu1 %v7168_v62 }
 0x24d   : > { %5442 = vmatprep.mubr.msk.f32.mxu0 %vm6142_vm0, %v7952_v30  ;;  %5567 = vmatprep.mubr.msk.f32.mxu1 %vm6142_vm0, %v7952_v30  ;;  %v5271_v41 = vpop.f32.mrf.mxu1 }
 0x24e   : > { %5612 = vmatprep.subr.mxu0 %v2873_v1  ;;  %5689 = vmatprep.subr.mxu1 %v2827_v56 }
 0x24f   : > { %v1995_v34 = vpop.f32.mrf.mxu1  ;;  %5613 = vmatpush3.msra.mxu0 %v2873_v1  ;;  %5690 = vmatpush3.msra.mxu1 %v2827_v56 }
 0x250   : > { %5443 = vmatmul.mubr.f32.gmra.mxu0 %v6995_v33  ;;  %5568 = vmatmul.mubr.f32.gmra.mxu1 %v7176_v45 }
 0x251   : > { %5445 = vmatprep.mubr.msk.f32.mxu0 %vm6142_vm0, %v7952_v30  ;;  %5570 = vmatprep.mubr.msk.f32.mxu1 %vm6142_vm0, %v7952_v30  ;;  %v5274_v35 = vpop.f32.mrf.mxu1 }
 0x252   : > { %5614 = vmatprep.subr.mxu0 %v2872_v38  ;;  %5691 = vmatprep.subr.mxu1 %v2826_v7 }
 0x253   : > { %5615 = vmatpush3.msra.mxu0 %v2872_v38  ;;  %5692 = vmatpush3.msra.mxu1 %v2826_v7 }
 0x254   : > { %v1780_v63 = vpop.f32.mrf.mxu0  ;;  %5446 = vmatmul.mubr.f32.gmra.mxu0 %v6983_v18  ;;  %v2000_v33 = vpop.f32.mrf.mxu1  ;;  %5571 = vmatmul.mubr.f32.gmra.mxu1 %v7184_v9 }
 0x255   : > { %v7348_v54 = vadd.f32 %v1990_v49, %v1780_v63  ;;  %5448 = vmatprep.mubr.msk.f32.mxu0 %vm6142_vm0, %v7952_v30  ;;  %5573 = vmatprep.mubr.msk.f32.mxu1 %vm6142_vm0, %v7952_v30  ;;  %v2447_v49 = vld [vmem:[#allocation2 + $0xf1] sm:$0xff] }
 0x256   : > { %v5152_v4 = vpop.f32.mrf.mxu0  ;;  %v5277_v59 = vpop.f32.mrf.mxu1  ;;  %5616 = vmatprep.subr.mxu0 %v2871_v11  ;;  %5693 = vmatprep.subr.mxu1 %v2825_v39 }
 0x257   : > { %5617 = vmatpush3.msra.mxu0 %v2871_v11  ;;  %5694 = vmatpush3.msra.mxu1 %v2825_v39 }
 0x258   : > { %v1785_v18 = vpop.f32.mrf.mxu0  ;;  %5449 = vmatmul.mubr.f32.gmra.mxu0 %v7017_v21  ;;  %v2005_v51 = vpop.f32.mrf.mxu1  ;;  %5574 = vmatmul.mubr.f32.gmra.mxu1 %v7192_v60 }
 0x259   : > { %v7356_v5 = vadd.f32 %v1995_v34, %v1785_v18  ;;  %5451 = vmatprep.mubr.msk.f32.mxu0 %vm6142_vm0, %v7952_v30  ;;  %5576 = vmatprep.mubr.msk.f32.mxu1 %vm6142_vm0, %v7952_v30 }
 0x25a   : > { %v5155_v12 = vpop.f32.mrf.mxu0  ;;  %v5280_v23 = vpop.f32.mrf.mxu1  ;;  %5695 = vmatprep.subr.mxu1 %v2824_v28 }
 0x25b   : > { %5696 = vmatpush3.msra.mxu1 %v2824_v28 }
 0x25c   : > { %v1790_v21 = vpop.f32.mrf.mxu0  ;;  %5452 = vmatmul.mubr.f32.gmra.mxu0 %v7005_v50  ;;  %v2010_v40 = vpop.f32.mrf.mxu1  ;;  %5577 = vmatmul.mubr.f32.gmra.mxu1 %v7200_v0  ;;  %v2870_v0 = vld [vmem:[#allocation11 + $0x98] sm:$0xff] }
 0x25d   : > { %v7364_v32 = vadd.f32 %v2000_v33, %v1790_v21  ;;  %5454 = vmatprep.mubr.msk.f32.mxu0 %vm6142_vm0, %v7952_v30  ;;  %5579 = vmatprep.mubr.msk.f32.mxu1 %vm6142_vm0, %v7952_v30 }
 0x25e   : > { %v5158_v55 = vpop.f32.mrf.mxu0  ;;  %v5283_v10 = vpop.f32.mrf.mxu1  ;;  %5618 = vmatprep.subr.mxu0 %v2870_v0 }
 0x25f   : > { %5619 = vmatpush3.msra.mxu0 %v2870_v0 }
 0x260   : > { %v1795_v50 = vpop.f32.mrf.mxu0  ;;  %5455 = vmatmul.mubr.f32.gmra.mxu0 %v7039_v43  ;;  %v2015_v62 = vpop.f32.mrf.mxu1  ;;  %5580 = vmatmul.mubr.f32.gmra.mxu1 %v7208_v47 }
 0x261   : > { %v7372_v45 = vadd.f32 %v2005_v51, %v1795_v50  ;;  %5457 = vmatprep.mubr.msk.f32.mxu0 %vm6142_vm0, %v7952_v30  ;;  %5582 = vmatprep.mubr.msk.f32.mxu1 %vm6142_vm0, %v7952_v30 }
 0x262   : > { %v5161_v9 = vpop.f32.mrf.mxu0  ;;  %v5286_v60 = vpop.f32.mrf.mxu1  ;;  %5620 = vmatprep.subr.mxu0 %v2869_v25 }
 0x263   : > { %5621 = vmatpush3.msra.mxu0 %v2869_v25 }
 0x264   : > { %v1800_v43 = vpop.f32.mrf.mxu0  ;;  %5458 = vmatmul.mubr.f32.gmra.mxu0 %v7027_v58  ;;  %v2020_v47 = vpop.f32.mrf.mxu1  ;;  %5583 = vmatmul.mubr.f32.gmra.mxu1 %v7216_v37 }
 0x265   : > { %v7380_v8 = vadd.f32 %v2010_v40, %v1800_v43  ;;  %5460 = vmatprep.mubr.msk.f32.mxu0 %vm6142_vm0, %v7952_v30  ;;  %5585 = vmatprep.mubr.msk.f32.mxu1 %vm6142_vm0, %v7952_v30 }
 0x266   : > { %v5164_v36 = vpop.f32.mrf.mxu0  ;;  %v5289_v26 = vpop.f32.mrf.mxu1  ;;  %5622 = vmatprep.subr.mxu0 %v2868_v3 }
 0x267   : > { %5623 = vmatpush3.msra.mxu0 %v2868_v3 }
 0x268   : > { %v1805_v58 = vpop.f32.mrf.mxu0  ;;  %5461 = vmatmul.mubr.f32.gmra.mxu0 %v7061_v57  ;;  %v2025_v37 = vpop.f32.mrf.mxu1  ;;  %5586 = vmatmul.mubr.f32.gmra.mxu1 %v7224_v16 }
 0x269   : > { %v7388_v20 = vadd.f32 %v2015_v62, %v1805_v58  ;;  %5463 = vmatprep.mubr.msk.f32.mxu0 %vm6142_vm0, %v7952_v30  ;;  %5588 = vmatprep.mubr.msk.f32.mxu1 %vm6142_vm0, %v7952_v30 }
 0x26a   : > { %v5167_v48 = vpop.f32.mrf.mxu0  ;;  %v5292_v13 = vpop.f32.mrf.mxu1  ;;  %5624 = vmatprep.subr.mxu0 %v2867_v61 }
 0x26b   : > { %5625 = vmatpush3.msra.mxu0 %v2867_v61 }
 0x26c   : > { %v1810_v57 = vpop.f32.mrf.mxu0  ;;  %5464 = vmatmul.mubr.f32.gmra.mxu0 %v7049_v14  ;;  %v2030_v16 = vpop.f32.mrf.mxu1  ;;  %5589 = vmatmul.mubr.f32.gmra.mxu1 %v2446_v27 }
 0x26d   : > { %v7395_v42 = vadd.f32 %v2020_v47, %v1810_v57  ;;  %5466 = vmatprep.mubr.msk.f32.mxu0 %vm6142_vm0, %v7952_v30  ;;  %5591 = vmatprep.mubr.msk.f32.mxu1 %vm6142_vm0, %v7952_v30 }
 0x26e   : > { %v5170_v31 = vpop.f32.mrf.mxu0  ;;  %v5295_v17 = vpop.f32.mrf.mxu1 }
 0x26f   : > { %v7434_v17 = vld [vmem:[#allocation11 + $0x178] sm:$0xff] }
 0x270   : > { %v1815_v24 = vpop.f32.mrf.mxu0  ;;  %5467 = vmatmul.mubr.f32.gmra.mxu0 %v7081_v15  ;;  %v2035_v14 = vpop.f32.mrf.mxu1  ;;  %5592 = vmatmul.mubr.f32.gmra.mxu1 %v2447_v49 }
 0x271   : > { %v7402_v41 = vadd.f32 %v2025_v37, %v1815_v24  ;;  %5469 = vmatprep.mubr.msk.f32.mxu0 %vm6142_vm0, %v7952_v30  ;;  %5736 = vmatprep.subr.mxu0 %v7434_v17 }
 0x272   : > { %v5173_v2 = vpop.f32.mrf.mxu0  ;;  %v5298_v29 = vpop.f32.mrf.mxu1 }
 0x274   : > { %v1820_v34 = vpop.f32.mrf.mxu0  ;;  %5470 = vmatmul.mubr.f32.gmra.mxu0 %v1588_v46  ;;  %v2040_v35 = vpop.f32.mrf.mxu1 }
 0x275   : > { %v7408_v52 = vadd.f32 %v2030_v16, %v1820_v34  ;;  %5472 = vmatprep.mubr.msk.f32.mxu0 %vm6142_vm0, %v7952_v30  ;;  %v7430_v16 = vld [vmem:[#allocation11 + $0x1f8] sm:$0xff] }
 0x276   : > { %v5176_v15 = vpop.f32.mrf.mxu0  ;;  %v5301_v53 = vpop.f32.mrf.mxu1  ;;  %5807 = vmatprep.subr.mxu1 %v7430_v16 }
 0x278   : > { %v1825_v63 = vpop.f32.mrf.mxu0  ;;  %5473 = vmatmul.mubr.f32.gmra.mxu0 %v1589_v6  ;;  %v2045_v33 = vpop.f32.mrf.mxu1 }
 0x279   : > { %v7414_v4 = vadd.f32 %v2035_v14, %v1825_v63 }
 0x27a   : > { %v5179_v59 = vpop.f32.mrf.mxu0  ;;  %v5304_v1 = vpop.f32.mrf.mxu1 }
 0x27c   : > { %v1830_v19 = vpop.f32.mrf.mxu0  ;;  %v2050_v44 = vpop.f32.mrf.mxu1 }
 0x27d   : > { %v7416_v46 = vadd.f32 %v2040_v35, %v1830_v19 }
 0x27e   : > { %v5182_v18 = vpop.f32.mrf.mxu0  ;;  %v5307_v51 = vpop.f32.mrf.mxu1 }
 0x280   : > { %v1835_v12 = vpop.f32.mrf.mxu0  ;;  %v2055_v23 = vpop.f32.mrf.mxu1 }
 0x281   : > { %v7418_v30 = vadd.f32 %v2045_v33, %v1835_v12 }
 0x282   : > { %v5185_v38 = vpop.f32.mrf.mxu0  ;;  %v5310_v56 = vpop.f32.mrf.mxu1 }
 0x284   : > { %v1840_v21 = vpop.f32.mrf.mxu0  ;;  %v2060_v22 = vpop.f32.mrf.mxu1 }
 0x285   : > { %v7420_v6 = vadd.f32 %v2050_v44, %v1840_v21 }
 0x286   : > { %v5188_v40 = vpop.f32.mrf.mxu0  ;;  %v5313_v55 = vpop.f32.mrf.mxu1 }
 0x288   : > { %v1845_v10 = vpop.f32.mrf.mxu0  ;;  %v2065_v11 = vpop.f32.mrf.mxu1 }
 0x289   : > { %v7422_v7 = vadd.f32 %v2055_v23, %v1845_v10 }
 0x28a   : > { %v5191_v50 = vpop.f32.mrf.mxu0  ;;  %v5316_v62 = vpop.f32.mrf.mxu1 }
 0x28c   : > { %v1850_v9 = vpop.f32.mrf.mxu0  ;;  %v2070_v60 = vpop.f32.mrf.mxu1 }
 0x28d   : > { %v7424_v0 = vadd.f32 %v2060_v22, %v1850_v9 }
 0x28e   : > { %v5194_v39 = vpop.f32.mrf.mxu0  ;;  %v5319_v43 = vpop.f32.mrf.mxu1 }
 0x290   : > { %v1855_v47 = vpop.f32.mrf.mxu0  ;;  %v2075_v36 = vpop.f32.mrf.mxu1 }
 0x291   : > { %v7426_v26 = vadd.f32 %v2065_v11, %v1855_v47 }
 0x292   : > { %v5197_v25 = vpop.f32.mrf.mxu0  ;;  %v5322_v28 = vpop.f32.mrf.mxu1 }
 0x294   : > { %v1860_v58 = vpop.f32.mrf.mxu0  ;;  %v2080_v37 = vpop.f32.mrf.mxu1 }
 0x295   : > { %v7428_v48 = vadd.f32 %v2070_v60, %v1860_v58 }
 0x296   : > { %v5200_v13 = vpop.f32.mrf.mxu0  ;;  %v5325_v27 = vpop.f32.mrf.mxu1 }
 0x298   : > { %v1865_v3 = vpop.f32.mrf.mxu0  ;;  %v2085_v57 = vpop.f32.mrf.mxu1 }
 0x299   : > { %v7432_v31 = vadd.f32 %v2075_v36, %v1865_v3 }
 0x29a   : > { %v5203_v61 = vpop.f32.mrf.mxu0  ;;  %v5328_v49 = vpop.f32.mrf.mxu1 }
 0x29c   : > { %v1870_v24 = vpop.f32.mrf.mxu0  ;;  %v2090_v14 = vpop.f32.mrf.mxu1 }
 0x29d   : > { %v7438_v2 = vadd.f32 %v2080_v37, %v1870_v24 }
 0x29e   : > { %v5206_v29 = vpop.f32.mrf.mxu0  ;;  %v5331_v34 = vpop.f32.mrf.mxu1 }
 0x2a0   : > { %v1875_v35 = vpop.f32.mrf.mxu0  ;;  %v2095_v15 = vpop.f32.mrf.mxu1 }
 0x2a1   : > { %v7440_v53 = vadd.f32 %v2085_v57, %v1875_v35 }
 0x2a2   : > { %v5209_v63 = vpop.f32.mrf.mxu0  ;;  %v5334_v33 = vpop.f32.mrf.mxu1 }
 0x2a4   : > { %v1880_v59 = vpop.f32.mrf.mxu0  ;;  %v2100_v1 = vpop.f32.mrf.mxu1 }
 0x2a5   : > { %v7442_v19 = vadd.f32 %v2090_v14, %v1880_v59 }
 0x2a6   : > { %v5212_v44 = vpop.f32.mrf.mxu0  ;;  %v5337_v18 = vpop.f32.mrf.mxu1 }
 0x2a8   : > { %v1885_v51 = vpop.f32.mrf.mxu0  ;;  %v2105_v12 = vpop.f32.mrf.mxu1 }
 0x2a9   : > { %v7444_v23 = vadd.f32 %v2095_v15, %v1885_v51 }
 0x2aa   : > { %v5215_v38 = vpop.f32.mrf.mxu0  ;;  %v5340_v56 = vpop.f32.mrf.mxu1 }
 0x2ab   : > { %v7461_v38 = vld [vmem:[#allocation9] ss:$0 sm:$0xff] }
 0x2ac   : > { %v1890_v21 = vpop.f32.mrf.mxu0  ;;  %v2110_v22 = vpop.f32.mrf.mxu1 }
 0x2ad   : > { %v7446_v40 = vadd.f32 %v2100_v1, %v1890_v21 }
 0x2ae   : > { %v5218_v55 = vpop.f32.mrf.mxu0  ;;  %v5343_v10 = vpop.f32.mrf.mxu1 }
 0x2b0   : > { %v1895_v11 = vpop.f32.mrf.mxu0  ;;  %v2115_v50 = vpop.f32.mrf.mxu1 }
 0x2b1   : > { %v7448_v62 = vadd.f32 %v2105_v12, %v1895_v11 }
 0x2b2   : > { %v5221_v9 = vpop.f32.mrf.mxu0  ;;  %v5346_v60 = vpop.f32.mrf.mxu1 }
 0x2b4   : > { %v1900_v39 = vpop.f32.mrf.mxu0  ;;  %v2120_v43 = vpop.f32.mrf.mxu1 }
 0x2b5   : > { %v7450_v47 = vadd.f32 %v2110_v22, %v1900_v39 }
 0x2b6   : > { %v5224_v36 = vpop.f32.mrf.mxu0  ;;  %v5349_v25 = vpop.f32.mrf.mxu1 }
 0x2b8   : > { %v1905_v28 = vpop.f32.mrf.mxu0  ;;  %v2125_v58 = vpop.f32.mrf.mxu1 }
 0x2b9   : > { %v7452_v37 = vadd.f32 %v2115_v50, %v1905_v28 }
 0x2ba   : > { %v5227_v13 = vpop.f32.mrf.mxu0  ;;  %v5352_v27 = vpop.f32.mrf.mxu1 }
 0x2bc   : > { %v1910_v3 = vpop.f32.mrf.mxu0  ;;  %v2130_v57 = vpop.f32.mrf.mxu1 }
 0x2bd   : > { %v7454_v61 = vadd.f32 %v2120_v43, %v1910_v3 }
 0x2be   : > { %v5230_v49 = vpop.f32.mrf.mxu0  ;;  %v5355_v24 = vpop.f32.mrf.mxu1 }
 0x2bf   : > { %v3578_v24 = vld [vmem:[#allocation11 + $0x1f0] sm:$0xff] }
 0x2c0   : > { %v1915_v14 = vpop.f32.mrf.mxu0  ;;  %v2531_v29 = vpop.f32.mrf.mxu1 }
 0x2c1   : > { %v7456_v34 = vadd.f32 %v2125_v58, %v1915_v14 }
 0x2c2   : > { %v5233_v35 = vpop.f32.mrf.mxu0  ;;  %v5509_v15 = vpop.f32.mrf.mxu1 }
 0x2c3   : > { %v3577_v15 = vld [vmem:[#allocation11 + $0x1e8] sm:$0xff] }
 0x2c4   : > { %v1920_v63 = vpop.f32.mrf.mxu0  ;;  %v2536_v33 = vpop.f32.mrf.mxu1 }
 0x2c5   : > { %v7458_v59 = vadd.f32 %v2130_v57, %v1920_v63 }
 0x2c6   : > { %v5236_v1 = vpop.f32.mrf.mxu0  ;;  %v5512_v44 = vpop.f32.mrf.mxu1 }
 0x2c7   : > { %v3576_v44 = vld [vmem:[#allocation11 + $0x1e0] sm:$0xff] }
 0x2c8   : > { %v2246_v18 = vpop.f32.mrf.mxu0  ;;  %v2541_v51 = vpop.f32.mrf.mxu1 }
 0x2c9   : > { %v2390_v12 = vadd.f32 %v2246_v18, %v7348_v54 }
 0x2ca   : > { %v5390_v56 = vpop.f32.mrf.mxu0  ;;  %v5515_v21 = vpop.f32.mrf.mxu1 }
 0x2cb   : > { %v2675_v22 = vadd.f32 %v2531_v29, %v2390_v12  ;;  %v3575_v21 = vld [vmem:[#allocation11 + $0x1d8] sm:$0xff] }
 0x2cc   : > { %v2251_v55 = vpop.f32.mrf.mxu0  ;;  %v2546_v10 = vpop.f32.mrf.mxu1 }
 0x2cd   : > { %v2711_v11 = vadd.f32 %v7461_v38, %v2675_v22  ;;  %v2391_v50 = vadd.f32 %v2251_v55, %v7356_v5 }
 0x2ce   : > { %v5393_v9 = vpop.f32.mrf.mxu0  ;;  %v5518_v60 = vpop.f32.mrf.mxu1 }
 0x2cf   : > { %v2740_v39 = vmax.f32 %v2711_v11, 0.0  ;;  %v2676_v43 = vadd.f32 %v2536_v33, %v2391_v50  ;;  %v3574_v50 = vld [vmem:[#allocation11 + $0x1d0] sm:$0xff] }
 0x2d0   : > { %v2256_v36 = vpop.f32.mrf.mxu0  ;;  %v2551_v25 = vpop.f32.mrf.mxu1 }
 0x2d1   : > { %2769 = vst [vmem:[#allocation3] sm:$0xff] %v2740_v39  ;;  %v2712_v54 = vadd.f32 %v7461_v38, %v2676_v43  ;;  %v2392_v28 = vadd.f32 %v2256_v36, %v7364_v32  ;;  %5697 = vmatprep.mubr.f32.mxu1 %v2740_v39 }
 0x2d2   : > { %v5396_v58 = vpop.f32.mrf.mxu0  ;;  %v5521_v13 = vpop.f32.mrf.mxu1 }
 0x2d3   : > { %v2741_v27 = vmax.f32 %v2712_v54, 0.0  ;;  %v2677_v3 = vadd.f32 %v2541_v51, %v2392_v28  ;;  %v3314_v28 = vld [vmem:[#allocation11 + $0x170] sm:$0xff]  ;;  %v3573_v58 = vld [vmem:[#allocation11 + $0x1c8] sm:$0xff] }
 0x2d4   : > { %v2261_v57 = vpop.f32.mrf.mxu0  ;;  %v2556_v49 = vpop.f32.mrf.mxu1 }
 0x2d5   : > { %2770 = vst [vmem:[#allocation3 + $0x8] sm:$0xff] %v2741_v27  ;;  %v2713_v5 = vadd.f32 %v7461_v38, %v2677_v3  ;;  %v2393_v14 = vadd.f32 %v2261_v57, %v7372_v45  ;;  %5698 = vmatmul.mubr.f32.vlgmr.msra.gmra.mxu1 %v2741_v27 }
 0x2d6   : > { %v5399_v29 = vpop.f32.mrf.mxu0  ;;  %v5524_v35 = vpop.f32.mrf.mxu1  ;;  %5808 = vmatpush3.msra.mxu1 %v7430_v16 }
 0x2d7   : > { %v7470_v32 = vmax.f32 %v2713_v5, 0.0  ;;  %v2678_v63 = vadd.f32 %v2546_v10, %v2393_v14  ;;  %5809 = vmatprep.subr.mxu1 %v3578_v24  ;;  %v3572_v5 = vld [vmem:[#allocation11 + $0x1c0] sm:$0xff] }
 0x2d8   : > { %v2266_v33 = vpop.f32.mrf.mxu0  ;;  %v2561_v1 = vpop.f32.mrf.mxu1  ;;  %5810 = vmatpush3.msra.mxu1 %v3578_v24  ;;  %v3313_v24 = vld [vmem:[#allocation11 + $0x168] sm:$0xff] }
 0x2d9   : > { %2771 = vst [vmem:[#allocation3 + $0x10] sm:$0xff] %v7470_v32  ;;  %v2714_v18 = vadd.f32 %v7461_v38, %v2678_v63  ;;  %v2394_v45 = vadd.f32 %v2266_v33, %v7380_v8  ;;  %5700 = vmatprep.mubr.f32.mxu1 %v7470_v32  ;;  %5811 = vmatprep.subr.mxu1 %v3577_v15  ;;  %v3571_v63 = vld [vmem:[#allocation11 + $0x1b8] sm:$0xff] }
 0x2da   : > { %v5402_v51 = vpop.f32.mrf.mxu0  ;;  %v5527_v16 = vpop.f32.mrf.mxu1  ;;  %5812 = vmatpush3.msra.mxu1 %v3577_v15  ;;  %v3312_v15 = vld [vmem:[#allocation11 + $0x160] sm:$0xff] }
 0x2db   : > { %v7476_v12 = vmax.f32 %v2714_v18, 0.0  ;;  %v2679_v56 = vadd.f32 %v2551_v25, %v2394_v45  ;;  %5813 = vmatprep.subr.mxu1 %v3576_v44 }
 0x2dc   : > { %v2271_v22 = vpop.f32.mrf.mxu0  ;;  %v2840_v55 = vld [vmem:[#allocation3 + $0x1] sm:$0xff]  ;;  %v2566_v10 = vpop.f32.mrf.mxu1  ;;  %5814 = vmatpush3.msra.mxu1 %v3576_v44 }
 0x2dd   : > { %2772 = vst [vmem:[#allocation3 + $0x18] sm:$0xff] %v7476_v12  ;;  %v2715_v11 = vadd.f32 %v7461_v38, %v2679_v56  ;;  %v2395_v8 = vadd.f32 %v2271_v22, %v7388_v20  ;;  %5626 = vmatprep.mubr.f32.mxu0 %v2840_v55  ;;  %5701 = vmatmul.mubr.f32.gmra.mxu1 %v7476_v12  ;;  %v3570_v56 = vld [vmem:[#allocation11 + $0x1b0] sm:$0xff] }
 0x2de   : > { %v5405_v9 = vpop.f32.mrf.mxu0  ;;  %v5530_v60 = vpop.f32.mrf.mxu1  ;;  %5815 = vmatprep.subr.mxu1 %v3575_v21 }
 0x2df   : > { %v7482_v39 = vmax.f32 %v2715_v11, 0.0  ;;  %v2680_v43 = vadd.f32 %v2556_v49, %v2395_v8  ;;  %5816 = vmatpush3.msra.mxu1 %v3575_v21  ;;  %v3569_v9 = vld [vmem:[#allocation11 + $0x1a8] sm:$0xff] }
 0x2e0   : > { %v2276_v36 = vpop.f32.mrf.mxu0  ;;  %v2841_v25 = vld [vmem:[#allocation3 + $0x9] sm:$0xff]  ;;  %v2571_v54 = vpop.f32.mrf.mxu1  ;;  %5817 = vmatprep.subr.mxu1 %v3574_v50 }
 0x2e1   : > { %2773 = vst [vmem:[#allocation3 + $0x20] sm:$0xff] %v7482_v39  ;;  %v2716_v20 = vadd.f32 %v7461_v38, %v2680_v43  ;;  %v2396_v13 = vadd.f32 %v2276_v36, %v7395_v42  ;;  %5627 = vmatmul.mubr.f32.vlgmr.msra.gmra.mxu0 %v2841_v25  ;;  %5703 = vmatprep.mubr.f32.mxu1 %v7482_v39 }
 0x2e2   : > { %v5408_v27 = vpop.f32.mrf.mxu0  ;;  %v5533_v3 = vpop.f32.mrf.mxu1  ;;  %5737 = vmatpush3.msra.mxu0 %v7434_v17  ;;  %5818 = vmatpush3.msra.mxu1 %v3574_v50  ;;  %v3310_v50 = vld [vmem:[#allocation11 + $0x150] sm:$0xff] }
 0x2e3   : > { %v7489_v57 = vmax.f32 %v2716_v20, 0.0  ;;  %v2681_v49 = vadd.f32 %v2561_v1, %v2396_v13  ;;  %5738 = vmatprep.subr.mxu0 %v3314_v28  ;;  %5819 = vmatprep.subr.mxu1 %v3573_v58 }
 0x2e4   : > { %v2281_v14 = vpop.f32.mrf.mxu0  ;;  %v7491_v29 = vld [vmem:[#allocation3 + $0x11] sm:$0xff]  ;;  %v2576_v35 = vpop.f32.mrf.mxu1  ;;  %5739 = vmatpush3.msra.mxu0 %v3314_v28  ;;  %5820 = vmatpush3.msra.mxu1 %v3573_v58 }
 0x2e5   : > { %2774 = vst [vmem:[#allocation3 + $0x28] sm:$0xff] %v7489_v57  ;;  %v2717_v42 = vadd.f32 %v7461_v38, %v2681_v49  ;;  %v2397_v17 = vadd.f32 %v2281_v14, %v7402_v41  ;;  %5629 = vmatprep.mubr.f32.mxu0 %v7491_v29  ;;  %5704 = vmatmul.mubr.f32.gmra.mxu1 %v7489_v57  ;;  %v3311_v41 = vld [vmem:[#allocation11 + $0x158] sm:$0xff]  ;;  %v3568_v28 = vld [vmem:[#allocation11 + $0x1a0] sm:$0xff] }
 0x2e6   : > { %v5411_v33 = vpop.f32.mrf.mxu0  ;;  %v5536_v1 = vpop.f32.mrf.mxu1  ;;  %5740 = vmatprep.subr.mxu0 %v3313_v24  ;;  %5821 = vmatprep.subr.mxu1 %v3572_v5 }
 0x2e7   : > { %v7498_v44 = vmax.f32 %v2717_v42, 0.0  ;;  %v2682_v18 = vadd.f32 %v2566_v10, %v2397_v17  ;;  %5741 = vmatpush3.msra.mxu0 %v3313_v24  ;;  %5822 = vmatpush3.msra.mxu1 %v3572_v5  ;;  %v3567_v5 = vld [vmem:[#allocation11 + $0x198] sm:$0xff]  ;;  %v3566_v1 = vld [vmem:[#allocation11 + $0x190] sm:$0xff] }
 0x2e8   : > { %v2286_v45 = vpop.f32.mrf.mxu0  ;;  %v7500_v51 = vld [vmem:[#allocation3 + $0x19] sm:$0xff]  ;;  %v2581_v16 = vpop.f32.mrf.mxu1  ;;  %5742 = vmatprep.subr.mxu0 %v3312_v15  ;;  %5823 = vmatprep.subr.mxu1 %v3571_v63  ;;  %v3307_v33 = vld [vmem:[#allocation11 + $0x138] sm:$0xff] }
 0x2e9   : > { %2775 = vst [vmem:[#allocation3 + $0x30] sm:$0xff] %v7498_v44  ;;  %v2718_v21 = vadd.f32 %v7461_v38, %v2682_v18  ;;  %v2398_v22 = vadd.f32 %v2286_v45, %v7408_v52  ;;  %5630 = vmatmul.mubr.f32.gmra.mxu0 %v7500_v51  ;;  %5706 = vmatprep.mubr.f32.mxu1 %v7498_v44 }
 0x2ea   : > { %v5414_v55 = vpop.f32.mrf.mxu0  ;;  %v5539_v10 = vpop.f32.mrf.mxu1  ;;  %5743 = vmatpush3.msra.mxu0 %v3312_v15  ;;  %5824 = vmatpush3.msra.mxu1 %v3571_v63 }
 0x2eb   : > { %v7507_v11 = vmax.f32 %v2718_v21, 0.0  ;;  %v2683_v8 = vadd.f32 %v2571_v54, %v2398_v22  ;;  %5744 = vmatprep.subr.mxu0 %v3311_v41  ;;  %5825 = vmatprep.subr.mxu1 %v3570_v56  ;;  %v3309_v54 = vld [vmem:[#allocation11 + $0x148] sm:$0xff] }
 0x2ec   : > { %v2291_v60 = vpop.f32.mrf.mxu0  ;;  %v7509_v43 = vld [vmem:[#allocation3 + $0x21] sm:$0xff]  ;;  %v2586_v36 = vpop.f32.mrf.mxu1  ;;  %5745 = vmatpush3.msra.mxu0 %v3311_v41  ;;  %5826 = vmatpush3.msra.mxu1 %v3570_v56  ;;  %v3565_v21 = vld [vmem:[#allocation11 + $0x188] sm:$0xff] }
 0x2ed   : > { %2776 = vst [vmem:[#allocation3 + $0x38] sm:$0xff] %v7507_v11  ;;  %v2719_v52 = vadd.f32 %v7461_v38, %v2683_v8  ;;  %v2399_v25 = vadd.f32 %v2291_v60, %v7414_v4  ;;  %5632 = vmatprep.mubr.f32.mxu0 %v7509_v43  ;;  %5707 = vmatmul.mubr.f32.gmra.mxu1 %v7507_v11  ;;  %v3308_v4 = vld [vmem:[#allocation11 + $0x140] sm:$0xff] }
 0x2ee   : > { %v5417_v58 = vpop.f32.mrf.mxu0  ;;  %v5542_v20 = vpop.f32.mrf.mxu1  ;;  %5746 = vmatprep.subr.mxu0 %v3310_v50  ;;  %5827 = vmatprep.subr.mxu1 %v3569_v9 }
 0x2ef   : > { %v7516_v13 = vmax.f32 %v2719_v52, 0.0  ;;  %v2684_v27 = vadd.f32 %v2576_v35, %v2399_v25  ;;  %5747 = vmatpush3.msra.mxu0 %v3310_v50  ;;  %5828 = vmatpush3.msra.mxu1 %v3569_v9  ;;  %v3564_v52 = vld [vmem:[#allocation11 + $0x180] sm:$0xff] }
 0x2f0   : > { %v2296_v3 = vpop.f32.mrf.mxu0  ;;  %v7518_v49 = vld [vmem:[#allocation3 + $0x29] sm:$0xff]  ;;  %v2591_v24 = vpop.f32.mrf.mxu1  ;;  %5748 = vmatprep.subr.mxu0 %v3309_v54  ;;  %5829 = vmatprep.subr.mxu1 %v3568_v28 }
 0x2f1   : > { %2777 = vst [vmem:[#allocation3 + $0x40] sm:$0xff] %v7516_v13  ;;  %v2720_v14 = vadd.f32 %v7461_v38, %v2684_v27  ;;  %v2400_v42 = vadd.f32 %v2296_v3, %v7416_v46  ;;  %5633 = vmatmul.mubr.f32.gmra.mxu0 %v7518_v49  ;;  %5709 = vmatprep.mubr.f32.mxu1 %v7516_v13  ;;  %v3304_v27 = vld [vmem:[#allocation11 + $0x120] sm:$0xff] }
 0x2f2   : > { %v5420_v35 = vpop.f32.mrf.mxu0  ;;  %v5545_v17 = vpop.f32.mrf.mxu1  ;;  %5749 = vmatpush3.msra.mxu0 %v3309_v54  ;;  %5830 = vmatpush3.msra.mxu1 %v3568_v28 }
 0x2f3   : > { %v7525_v15 = vmax.f32 %v2720_v14, 0.0  ;;  %v2685_v63 = vadd.f32 %v2581_v16, %v2400_v42  ;;  %5750 = vmatprep.subr.mxu0 %v3308_v4  ;;  %5831 = vmatprep.subr.mxu1 %v3567_v5  ;;  %v3306_v16 = vld [vmem:[#allocation11 + $0x130] sm:$0xff] }
 0x2f4   : > { %v2301_v18 = vpop.f32.mrf.mxu0  ;;  %v7527_v45 = vld [vmem:[#allocation3 + $0x31] sm:$0xff]  ;;  %v2596_v41 = vpop.f32.mrf.mxu1  ;;  %5751 = vmatpush3.msra.mxu0 %v3308_v4  ;;  %5832 = vmatpush3.msra.mxu1 %v3567_v5 }
 0x2f5   : > { %2778 = vst [vmem:[#allocation3 + $0x48] sm:$0xff] %v7525_v15  ;;  %v2721_v46 = vadd.f32 %v7461_v38, %v2685_v63  ;;  %v2401_v56 = vadd.f32 %v2301_v18, %v7418_v30  ;;  %5635 = vmatprep.mubr.f32.mxu0 %v7527_v45  ;;  %5710 = vmatmul.mubr.f32.gmra.mxu1 %v7525_v15  ;;  %v3305_v30 = vld [vmem:[#allocation11 + $0x128] sm:$0xff] }
 0x2f6   : > { %v5423_v22 = vpop.f32.mrf.mxu0  ;;  %v5548_v55 = vpop.f32.mrf.mxu1  ;;  %5752 = vmatprep.subr.mxu0 %v3307_v33  ;;  %5833 = vmatprep.subr.mxu1 %v3566_v1 }
 0x2f7   : > { %v7534_v10 = vmax.f32 %v2721_v46, 0.0  ;;  %v2686_v8 = vadd.f32 %v2586_v36, %v2401_v56  ;;  %5753 = vmatpush3.msra.mxu0 %v3307_v33  ;;  %5834 = vmatpush3.msra.mxu1 %v3566_v1  ;;  %v3302_v46 = vld [vmem:[#allocation11 + $0x110] sm:$0xff]  ;;  %v3301_v55 = vld [vmem:[#allocation11 + $0x108] sm:$0xff] }
 0x2f8   : > { %v2306_v50 = vpop.f32.mrf.mxu0  ;;  %v7536_v9 = vld [vmem:[#allocation3 + $0x39] sm:$0xff]  ;;  %v2601_v60 = vpop.f32.mrf.mxu1  ;;  %5754 = vmatprep.subr.mxu0 %v3306_v16  ;;  %5835 = vmatprep.subr.mxu1 %v3565_v21 }
 0x2f9   : > { %2779 = vst [vmem:[#allocation3 + $0x50] sm:$0xff] %v7534_v10  ;;  %v2722_v25 = vadd.f32 %v7461_v38, %v2686_v8  ;;  %v2402_v54 = vadd.f32 %v2306_v50, %v7420_v6  ;;  %5636 = vmatmul.mubr.f32.gmra.mxu0 %v7536_v9  ;;  %5712 = vmatprep.mubr.f32.mxu1 %v7534_v10 }
 0x2fa   : > { %v5426_v36 = vpop.f32.mrf.mxu0  ;;  %v5551_v28 = vpop.f32.mrf.mxu1  ;;  %5755 = vmatpush3.msra.mxu0 %v3306_v16  ;;  %5836 = vmatpush3.msra.mxu1 %v3565_v21 }
 0x2fb   : > { %v7543_v58 = vmax.f32 %v2722_v25, 0.0  ;;  %v2687_v20 = vadd.f32 %v2591_v24, %v2402_v54  ;;  %5756 = vmatprep.subr.mxu0 %v3305_v30  ;;  %5837 = vmatprep.subr.mxu1 %v3564_v52  ;;  %v3303_v24 = vld [vmem:[#allocation11 + $0x118] sm:$0xff]  ;;  %v3300_v25 = vld [vmem:[#allocation11 + $0x100] sm:$0xff] }
 0x2fc   : > { %v2311_v3 = vpop.f32.mrf.mxu0  ;;  %v7545_v4 = vld [vmem:[#allocation3 + $0x41] sm:$0xff]  ;;  %v2606_v5 = vpop.f32.mrf.mxu1  ;;  %5757 = vmatpush3.msra.mxu0 %v3305_v30  ;;  %5838 = vmatpush3.msra.mxu1 %v3564_v52 }
 0x2fd   : > { %2780 = vst [vmem:[#allocation3 + $0x58] sm:$0xff] %v7543_v58  ;;  %v2723_v6 = vadd.f32 %v7461_v38, %v2687_v20  ;;  %v2403_v14 = vadd.f32 %v2311_v3, %v7422_v7  ;;  %5638 = vmatprep.mubr.f32.mxu0 %v7545_v4  ;;  %5713 = vmatmul.mubr.f32.gmra.mxu1 %v7543_v58 }
 0x2fe   : > { %v5429_v42 = vpop.f32.mrf.mxu0  ;;  %v5554_v35 = vpop.f32.mrf.mxu1  ;;  %5758 = vmatprep.subr.mxu0 %v3304_v27 }
 0x2ff   : > { %v7552_v17 = vmax.f32 %v2723_v6, 0.0  ;;  %v2688_v63 = vadd.f32 %v2596_v41, %v2403_v14  ;;  %5759 = vmatpush3.msra.mxu0 %v3304_v27 }
 0x300   : > { %v2316_v33 = vpop.f32.mrf.mxu0  ;;  %v7554_v1 = vld [vmem:[#allocation3 + $0x49] sm:$0xff]  ;;  %v2611_v18 = vpop.f32.mrf.mxu1  ;;  %5760 = vmatprep.subr.mxu0 %v3303_v24 }
 0x301   : > { %2781 = vst [vmem:[#allocation3 + $0x60] sm:$0xff] %v7552_v17  ;;  %v2724_v7 = vadd.f32 %v7461_v38, %v2688_v63  ;;  %v2404_v56 = vadd.f32 %v2316_v33, %v7424_v0  ;;  %5639 = vmatmul.mubr.f32.gmra.mxu0 %v7554_v1  ;;  %5715 = vmatprep.mubr.f32.mxu1 %v7552_v17 }
 0x302   : > { %v5432_v16 = vpop.f32.mrf.mxu0  ;;  %v5557_v21 = vpop.f32.mrf.mxu1  ;;  %5761 = vmatpush3.msra.mxu0 %v3303_v24 }
 0x303   : > { %v7561_v41 = vmax.f32 %v2724_v7, 0.0  ;;  %v2689_v22 = vadd.f32 %v2601_v60, %v2404_v56  ;;  %5762 = vmatprep.subr.mxu0 %v3302_v46 }
 0x304   : > { %v2321_v8 = vpop.f32.mrf.mxu0  ;;  %v7563_v50 = vld [vmem:[#allocation3 + $0x51] sm:$0xff]  ;;  %v2616_v30 = vpop.f32.mrf.mxu1  ;;  %5763 = vmatpush3.msra.mxu0 %v3302_v46 }
 0x305   : > { %2782 = vst [vmem:[#allocation3 + $0x68] sm:$0xff] %v7561_v41  ;;  %v2725_v0 = vadd.f32 %v7461_v38, %v2689_v22  ;;  %v2405_v52 = vadd.f32 %v2321_v8, %v7426_v26  ;;  %5641 = vmatprep.mubr.f32.mxu0 %v7563_v50  ;;  %5716 = vmatmul.mubr.f32.gmra.mxu1 %v7561_v41 }
 0x306   : > { %v5435_v54 = vpop.f32.mrf.mxu0  ;;  %v5560_v60 = vpop.f32.mrf.mxu1  ;;  %5764 = vmatprep.subr.mxu0 %v3301_v55 }
 0x307   : > { %v7570_v36 = vmax.f32 %v2725_v0, 0.0  ;;  %v2690_v28 = vadd.f32 %v2606_v5, %v2405_v52  ;;  %5765 = vmatpush3.msra.mxu0 %v3301_v55 }
 0x308   : > { %v2326_v20 = vpop.f32.mrf.mxu0  ;;  %v7572_v27 = vld [vmem:[#allocation3 + $0x59] sm:$0xff]  ;;  %v2621_v3 = vpop.f32.mrf.mxu1  ;;  %5766 = vmatprep.subr.mxu0 %v3300_v25 }
 0x309   : > { %2783 = vst [vmem:[#allocation3 + $0x70] sm:$0xff] %v7570_v36  ;;  %v2726_v26 = vadd.f32 %v7461_v38, %v2690_v28  ;;  %v2406_v6 = vadd.f32 %v2326_v20, %v7428_v48  ;;  %5642 = vmatmul.mubr.f32.gmra.mxu0 %v7572_v27  ;;  %5718 = vmatprep.mubr.f32.mxu1 %v7570_v36 }
 0x30a   : > { %v5438_v14 = vpop.f32.mrf.mxu0  ;;  %v5563_v24 = vpop.f32.mrf.mxu1  ;;  %5767 = vmatpush3.msra.mxu0 %v3300_v25 }
 0x30b   : > { %v7579_v5 = vmax.f32 %v2726_v26, 0.0  ;;  %v2691_v42 = vadd.f32 %v2611_v18, %v2406_v6 }
 0x30c   : > { %v2331_v35 = vpop.f32.mrf.mxu0  ;;  %v7581_v63 = vld [vmem:[#allocation3 + $0x61] sm:$0xff]  ;;  %v2626_v33 = vpop.f32.mrf.mxu1 }
 0x30d   : > { %2784 = vst [vmem:[#allocation3 + $0x78] sm:$0xff] %v7579_v5  ;;  %v2727_v46 = vadd.f32 %v7461_v38, %v2691_v42  ;;  %v2407_v48 = vadd.f32 %v2331_v35, %v7432_v31  ;;  %5644 = vmatprep.mubr.f32.mxu0 %v7581_v63  ;;  %5719 = vmatmul.mubr.f32.gmra.mxu1 %v7579_v5 }
 0x30e   : > { %v5441_v7 = vpop.f32.mrf.mxu0  ;;  %v5566_v56 = vpop.f32.mrf.mxu1 }
 0x30f   : > { %v7588_v16 = vmax.f32 %v2727_v46, 0.0  ;;  %v2692_v21 = vadd.f32 %v2616_v30, %v2407_v48 }
 0x310   : > { %v2336_v18 = vpop.f32.mrf.mxu0  ;;  %v7590_v22 = vld [vmem:[#allocation3 + $0x69] sm:$0xff]  ;;  %v2631_v55 = vpop.f32.mrf.mxu1 }
 0x311   : > { %2785 = vst [vmem:[#allocation3 + $0x80] sm:$0xff] %v7588_v16  ;;  %v2728_v8 = vadd.f32 %v7461_v38, %v2692_v21  ;;  %v2408_v0 = vadd.f32 %v2336_v18, %v7438_v2  ;;  %5645 = vmatmul.mubr.f32.gmra.mxu0 %v7590_v22  ;;  %5721 = vmatprep.mubr.f32.mxu1 %v7588_v16 }
 0x312   : > { %v5444_v31 = vpop.f32.mrf.mxu0  ;;  %v5569_v52 = vpop.f32.mrf.mxu1 }
 0x313   : > { %v7597_v25 = vmax.f32 %v2728_v8, 0.0  ;;  %v2693_v54 = vadd.f32 %v2621_v3, %v2408_v0 }
 0x314   : > { %v2341_v30 = vpop.f32.mrf.mxu0  ;;  %v7599_v60 = vld [vmem:[#allocation3 + $0x71] sm:$0xff]  ;;  %v2636_v28 = vpop.f32.mrf.mxu1 }
 0x315   : > { %2786 = vst [vmem:[#allocation3 + $0x88] sm:$0xff] %v7597_v25  ;;  %v2729_v20 = vadd.f32 %v7461_v38, %v2693_v54  ;;  %v2409_v26 = vadd.f32 %v2341_v30, %v7440_v53  ;;  %5647 = vmatprep.mubr.f32.mxu0 %v7599_v60  ;;  %5722 = vmatmul.mubr.f32.gmra.mxu1 %v7597_v25 }
 0x316   : > { %v5447_v2 = vpop.f32.mrf.mxu0  ;;  %v5572_v6 = vpop.f32.mrf.mxu1 }
 0x317   : > { %v7606_v14 = vmax.f32 %v2729_v20, 0.0  ;;  %v2694_v24 = vadd.f32 %v2626_v33, %v2409_v26 }
 0x318   : > { %v2346_v3 = vpop.f32.mrf.mxu0  ;;  %v7608_v42 = vld [vmem:[#allocation3 + $0x79] sm:$0xff]  ;;  %v2641_v35 = vpop.f32.mrf.mxu1 }
 0x319   : > { %2787 = vst [vmem:[#allocation3 + $0x90] sm:$0xff] %v7606_v14  ;;  %v2730_v46 = vadd.f32 %v7461_v38, %v2694_v24  ;;  %v2410_v48 = vadd.f32 %v2346_v3, %v7442_v19  ;;  %5648 = vmatmul.mubr.f32.gmra.mxu0 %v7608_v42  ;;  %5724 = vmatprep.mubr.f32.mxu1 %v7606_v14 }
 0x31a   : > { %v5450_v53 = vpop.f32.mrf.mxu0  ;;  %v5575_v7 = vpop.f32.mrf.mxu1 }
 0x31b   : > { %v7615_v56 = vmax.f32 %v2730_v46, 0.0  ;;  %v2695_v21 = vadd.f32 %v2631_v55, %v2410_v48 }
 0x31c   : > { %v2351_v33 = vpop.f32.mrf.mxu0  ;;  %v7617_v18 = vld [vmem:[#allocation3 + $0x81] sm:$0xff]  ;;  %v2646_v8 = vpop.f32.mrf.mxu1 }
 0x31d   : > { %2788 = vst [vmem:[#allocation3 + $0x98] sm:$0xff] %v7615_v56  ;;  %v2731_v0 = vadd.f32 %v7461_v38, %v2695_v21  ;;  %v2411_v31 = vadd.f32 %v2351_v33, %v7444_v23  ;;  %5650 = vmatprep.mubr.f32.mxu0 %v7617_v18  ;;  %5725 = vmatmul.mubr.f32.gmra.mxu1 %v7615_v56 }
 0x31e   : > { %v5453_v19 = vpop.f32.mrf.mxu0  ;;  %v5578_v52 = vpop.f32.mrf.mxu1 }
 0x31f   : > { %v7624_v54 = vmax.f32 %v2731_v0, 0.0  ;;  %v2696_v30 = vadd.f32 %v2636_v28, %v2411_v31 }
 0x320   : > { %v2356_v55 = vpop.f32.mrf.mxu0  ;;  %v7626_v20 = vld [vmem:[#allocation3 + $0x89] sm:$0xff]  ;;  %v2651_v26 = vpop.f32.mrf.mxu1 }
 0x321   : > { %2789 = vst [vmem:[#allocation3 + $0xa0] sm:$0xff] %v7624_v54  ;;  %v2732_v2 = vadd.f32 %v7461_v38, %v2696_v30  ;;  %v2412_v6 = vadd.f32 %v2356_v55, %v7446_v40  ;;  %5651 = vmatmul.mubr.f32.gmra.mxu0 %v7626_v20  ;;  %5727 = vmatprep.mubr.f32.mxu1 %v7624_v54 }
 0x322   : > { %v5456_v23 = vpop.f32.mrf.mxu0  ;;  %v5581_v24 = vpop.f32.mrf.mxu1 }
 0x323   : > { %v7633_v3 = vmax.f32 %v2732_v2, 0.0  ;;  %v2697_v46 = vadd.f32 %v2641_v35, %v2412_v6 }
 0x324   : > { %v2361_v28 = vpop.f32.mrf.mxu0  ;;  %v7635_v48 = vld [vmem:[#allocation3 + $0x91] sm:$0xff]  ;;  %v2656_v53 = vpop.f32.mrf.mxu1 }
 0x325   : > { %2790 = vst [vmem:[#allocation3 + $0xa8] sm:$0xff] %v7633_v3  ;;  %v2733_v7 = vadd.f32 %v7461_v38, %v2697_v46  ;;  %v2413_v21 = vadd.f32 %v2361_v28, %v7448_v62  ;;  %5653 = vmatprep.mubr.f32.mxu0 %v7635_v48  ;;  %5728 = vmatmul.mubr.f32.gmra.mxu1 %v7633_v3 }
 0x326   : > { %v5459_v40 = vpop.f32.mrf.mxu0  ;;  %v5584_v33 = vpop.f32.mrf.mxu1 }
 0x327   : > { %v7642_v0 = vmax.f32 %v2733_v7, 0.0  ;;  %v2698_v31 = vadd.f32 %v2646_v8, %v2413_v21 }
 0x328   : > { %v2366_v35 = vpop.f32.mrf.mxu0  ;;  %v7644_v19 = vld [vmem:[#allocation3 + $0x99] sm:$0xff]  ;;  %v2661_v52 = vpop.f32.mrf.mxu1 }
 0x329   : > { %2791 = vst [vmem:[#allocation3 + $0xb0] sm:$0xff] %v7642_v0  ;;  %v2734_v30 = vadd.f32 %v7461_v38, %v2698_v31  ;;  %v2414_v55 = vadd.f32 %v2366_v35, %v7450_v47  ;;  %5654 = vmatmul.mubr.f32.gmra.mxu0 %v7644_v19  ;;  %5730 = vmatprep.mubr.f32.mxu1 %v7642_v0 }
 0x32a   : > { %v5462_v62 = vpop.f32.mrf.mxu0  ;;  %v5587_v2 = vpop.f32.mrf.mxu1 }
 0x32b   : > { %v7651_v6 = vmax.f32 %v2734_v30, 0.0  ;;  %v2699_v23 = vadd.f32 %v2651_v26, %v2414_v55 }
 0x32c   : > { %v2371_v8 = vpop.f32.mrf.mxu0  ;;  %v7653_v24 = vld [vmem:[#allocation3 + $0xa1] sm:$0xff]  ;;  %v2666_v46 = vpop.f32.mrf.mxu1 }
 0x32d   : > { %2792 = vst [vmem:[#allocation3 + $0xb8] sm:$0xff] %v7651_v6  ;;  %v2735_v28 = vadd.f32 %v7461_v38, %v2699_v23  ;;  %v2415_v7 = vadd.f32 %v2371_v8, %v7452_v37  ;;  %5656 = vmatprep.mubr.f32.mxu0 %v7653_v24  ;;  %5731 = vmatmul.mubr.f32.gmra.mxu1 %v7651_v6 }
 0x32e   : > { %v5465_v47 = vpop.f32.mrf.mxu0  ;;  %v5590_v21 = vpop.f32.mrf.mxu1 }
 0x32f   : > { %v7660_v40 = vmax.f32 %v2735_v28, 0.0  ;;  %v2700_v33 = vadd.f32 %v2656_v53, %v2415_v7 }
 0x330   : > { %v2376_v26 = vpop.f32.mrf.mxu0  ;;  %v7662_v31 = vld [vmem:[#allocation3 + $0xa9] sm:$0xff]  ;;  %v2671_v35 = vpop.f32.mrf.mxu1 }
 0x331   : > { %2793 = vst [vmem:[#allocation3 + $0xc0] sm:$0xff] %v7660_v40  ;;  %v2736_v30 = vadd.f32 %v7461_v38, %v2700_v33  ;;  %v2416_v55 = vadd.f32 %v2376_v26, %v7454_v61  ;;  %5657 = vmatmul.mubr.f32.gmra.mxu0 %v7662_v31  ;;  %5733 = vmatprep.mubr.f32.mxu1 %v7660_v40 }
 0x332   : > { %v5468_v37 = vpop.f32.mrf.mxu0  ;;  %v5593_v62 = vpop.f32.mrf.mxu1 }
 0x333   : > { %v7669_v2 = vmax.f32 %v2736_v30, 0.0  ;;  %v2701_v23 = vadd.f32 %v2661_v52, %v2416_v55 }
 0x334   : > { %v2381_v53 = vpop.f32.mrf.mxu0  ;;  %v2862_v8 = vld [vmem:[#allocation3 + $0xb1] sm:$0xff] }
 0x335   : > { %2794 = vst [vmem:[#allocation3 + $0xc8] sm:$0xff] %v7669_v2  ;;  %v7673_v28 = vadd.f32 %v7461_v38, %v2701_v23  ;;  %v2417_v7 = vadd.f32 %v2381_v53, %v7456_v34  ;;  %5659 = vmatprep.mubr.f32.mxu0 %v2862_v8  ;;  %5734 = vmatmul.mubr.f32.gmra.mxu1 %v7669_v2 }
 0x336   : > { %v5471_v61 = vpop.f32.mrf.mxu0  ;;  %5839 = vmatprep.mubr.f32.mxu1 %v7491_v29 }
 0x337   : > { %v2766_v47 = vmax.f32 %v7673_v28, 0.0  ;;  %v2702_v21 = vadd.f32 %v2666_v46, %v2417_v7 }
 0x338   : > { %v2386_v33 = vpop.f32.mrf.mxu0  ;;  %v2863_v52 = vld [vmem:[#allocation3 + $0xb9] sm:$0xff] }
 0x339   : > { %2795 = vst [vmem:[#allocation3 + $0xd0] sm:$0xff] %v2766_v47  ;;  %v7682_v26 = vadd.f32 %v7461_v38, %v2702_v21  ;;  %v2418_v30 = vadd.f32 %v2386_v33, %v7458_v59  ;;  %5660 = vmatmul.mubr.f32.gmra.mxu0 %v2863_v52  ;;  %5840 = vmatmul.mubr.f32.vlgmr.msra.gmra.mxu1 %v7500_v51 }
 0x33a   : > { %v5474_v34 = vpop.f32.mrf.mxu0  ;;  %5842 = vmatprep.mubr.f32.mxu1 %v7509_v43 }
 0x33b   : > { %v2767_v29 = vmax.f32 %v7682_v26, 0.0  ;;  %v2703_v55 = vadd.f32 %v2671_v35, %v2418_v30 }
 0x33c   : > { %v2864_v46 = vld [vmem:[#allocation3 + $0xc1] sm:$0xff] }
 0x33d   : > { %2796 = vst [vmem:[#allocation3 + $0xd8] sm:$0xff] %v2767_v29  ;;  %v2739_v37 = vadd.f32 %v7461_v38, %v2703_v55  ;;  %5662 = vmatprep.mubr.f32.mxu0 %v2864_v46  ;;  %5843 = vmatmul.mubr.f32.gmra.mxu1 %v7518_v49 }
 0x33e   : > { %5845 = vmatprep.mubr.f32.mxu1 %v7527_v45 }
 0x33f   : > { %v2768_v62 = vmax.f32 %v2739_v37, 0.0 }
 0x340   : > { %v2865_v59 = vld [vmem:[#allocation3 + $0xc9] sm:$0xff] }
 0x341   : > { %2797 = vst [vmem:[#allocation3 + $0xe0] sm:$0xff] %v2768_v62  ;;  %5663 = vmatmul.mubr.f32.gmra.mxu0 %v2865_v59  ;;  %5846 = vmatmul.mubr.f32.gmra.mxu1 %v7536_v9 }
 0x342   : > { %5768 = vmatprep.mubr.f32.mxu0 %v7470_v32  ;;  %5848 = vmatprep.mubr.f32.mxu1 %v7545_v4 }
 0x344   : > { %v3561_v38 = vld [vmem:[#allocation3 + $0xd1] sm:$0xff] }
 0x345   : > { %5769 = vmatmul.mubr.f32.vlgmr.msra.gmra.mxu0 %v7476_v12  ;;  %5849 = vmatmul.mubr.f32.gmra.mxu1 %v7554_v1 }
 0x346   : > { %5771 = vmatprep.mubr.f32.mxu0 %v7482_v39  ;;  %5851 = vmatprep.mubr.f32.mxu1 %v7563_v50 }
 0x348   : > { %v3562_v32 = vld [vmem:[#allocation3 + $0xd9] sm:$0xff] }
 0x349   : > { %5772 = vmatmul.mubr.f32.gmra.mxu0 %v7489_v57  ;;  %5852 = vmatmul.mubr.f32.gmra.mxu1 %v7572_v27 }
 0x34a   : > { %5774 = vmatprep.mubr.f32.mxu0 %v7498_v44  ;;  %5854 = vmatprep.mubr.f32.mxu1 %v7581_v63 }
 0x34d   : > { %5775 = vmatmul.mubr.f32.gmra.mxu0 %v7507_v11  ;;  %5855 = vmatmul.mubr.f32.gmra.mxu1 %v7590_v22 }
 0x34e   : > { %5777 = vmatprep.mubr.f32.mxu0 %v7516_v13  ;;  %5857 = vmatprep.mubr.f32.mxu1 %v7599_v60 }
 0x351   : > { %5778 = vmatmul.mubr.f32.gmra.mxu0 %v7525_v15  ;;  %5858 = vmatmul.mubr.f32.gmra.mxu1 %v7608_v42 }
 0x352   : > { %5780 = vmatprep.mubr.f32.mxu0 %v7534_v10  ;;  %5860 = vmatprep.mubr.f32.mxu1 %v7617_v18 }
 0x355   : > { %5781 = vmatmul.mubr.f32.gmra.mxu0 %v7543_v58  ;;  %5861 = vmatmul.mubr.f32.gmra.mxu1 %v7626_v20 }
 0x356   : > { %5783 = vmatprep.mubr.f32.mxu0 %v7552_v17  ;;  %5863 = vmatprep.mubr.f32.mxu1 %v7635_v48 }
 0x359   : > { %5784 = vmatmul.mubr.f32.gmra.mxu0 %v7561_v41  ;;  %5864 = vmatmul.mubr.f32.gmra.mxu1 %v7644_v19 }
 0x35a   : > { %5786 = vmatprep.mubr.f32.mxu0 %v7570_v36  ;;  %5866 = vmatprep.mubr.f32.mxu1 %v7653_v24 }
 0x35d   : > { %5787 = vmatmul.mubr.f32.gmra.mxu0 %v7579_v5  ;;  %5867 = vmatmul.mubr.f32.gmra.mxu1 %v7662_v31 }
 0x35e   : > { %5789 = vmatprep.mubr.f32.mxu0 %v7588_v16  ;;  %5869 = vmatprep.mubr.f32.mxu1 %v2862_v8 }
 0x361   : > { %5790 = vmatmul.mubr.f32.gmra.mxu0 %v7597_v25  ;;  %5870 = vmatmul.mubr.f32.gmra.mxu1 %v2863_v52 }
 0x362   : > { %5792 = vmatprep.mubr.f32.mxu0 %v7606_v14  ;;  %5872 = vmatprep.mubr.f32.mxu1 %v2864_v46 }
 0x365   : > { %5793 = vmatmul.mubr.f32.gmra.mxu0 %v7615_v56  ;;  %5873 = vmatmul.mubr.f32.gmra.mxu1 %v2865_v59 }
 0x366   : > { %5795 = vmatprep.mubr.f32.mxu0 %v7624_v54  ;;  %5875 = vmatprep.mubr.f32.mxu1 %v3561_v38 }
 0x369   : > { %5796 = vmatmul.mubr.f32.gmra.mxu0 %v7633_v3  ;;  %5876 = vmatmul.mubr.f32.gmra.mxu1 %v3562_v32  ;;  %v7824_v32 = vld [vmem:[#allocation12] ss:$0 sm:$0xff] }
 0x36a   : > { %5798 = vmatprep.mubr.f32.mxu0 %v7642_v0 }
 0x36d   : > { %5799 = vmatmul.mubr.f32.gmra.mxu0 %v7651_v6 }
 0x36e   : > { %5801 = vmatprep.mubr.f32.mxu0 %v7660_v40 }
 0x371   : > { %5802 = vmatmul.mubr.f32.gmra.mxu0 %v7669_v2 }
 0x372   : > { %5804 = vmatprep.mubr.f32.mxu0 %v2766_v47 }
 0x375   : > { %5805 = vmatmul.mubr.f32.gmra.mxu0 %v2767_v29 }
 0x395   : > { %v5699_v12 = vpop.f32.mrf.mxu1 }
 0x397   : > { %v3144_v39 = vpop.f32.mrf.mxu1 }
 0x39d   : > { %v7732_v57 = vpop.f32.mrf.mxu1 }
 0x39f   : > { %v7734_v44 = vpop.f32.mrf.mxu1 }
 0x3a1   : > { %v5628_v51 = vpop.f32.mrf.mxu0 }
 0x3a2   : > { %v3150_v46 = vadd.f32 %v5699_v12, %v5628_v51 }
 0x3a3   : > { %v2949_v43 = vpop.f32.mrf.mxu0 }
 0x3a4   : > { %v3145_v59 = vadd.f32 %v3144_v39, %v2949_v43 }
 0x3a5   : > { %v7736_v11 = vpop.f32.mrf.mxu1 }
 0x3a7   : > { %v7738_v13 = vpop.f32.mrf.mxu1 }
 0x3a9   : > { %v5631_v49 = vpop.f32.mrf.mxu0 }
 0x3ab   : > { %v2959_v45 = vpop.f32.mrf.mxu0 }
 0x3ad   : > { %v7740_v15 = vpop.f32.mrf.mxu1 }
 0x3af   : > { %v7742_v10 = vpop.f32.mrf.mxu1 }
 0x3b1   : > { %v7744_v9 = vpop.f32.mrf.mxu0 }
 0x3b2   : > { %v3170_v43 = vadd.f32 %v7736_v11, %v7744_v9 }
 0x3b3   : > { %v7748_v4 = vpop.f32.mrf.mxu0 }
 0x3b5   : > { %v7746_v58 = vpop.f32.mrf.mxu1 }
 0x3b7   : > { %v7750_v17 = vpop.f32.mrf.mxu1 }
 0x3b9   : > { %v7752_v1 = vpop.f32.mrf.mxu0 }
 0x3bb   : > { %v7756_v50 = vpop.f32.mrf.mxu0 }
 0x3bd   : > { %v7754_v41 = vpop.f32.mrf.mxu1 }
 0x3bf   : > { %v7758_v36 = vpop.f32.mrf.mxu1 }
 0x3c1   : > { %v7760_v27 = vpop.f32.mrf.mxu0 }
 0x3c3   : > { %v7764_v63 = vpop.f32.mrf.mxu0 }
 0x3c5   : > { %v7762_v5 = vpop.f32.mrf.mxu1 }
 0x3c7   : > { %v7766_v16 = vpop.f32.mrf.mxu1 }
 0x3c9   : > { %v7768_v22 = vpop.f32.mrf.mxu0 }
 0x3cb   : > { %v7772_v60 = vpop.f32.mrf.mxu0 }
 0x3cd   : > { %v7770_v25 = vpop.f32.mrf.mxu1 }
 0x3cf   : > { %v7774_v14 = vpop.f32.mrf.mxu1 }
 0x3d1   : > { %v7776_v42 = vpop.f32.mrf.mxu0 }
 0x3d3   : > { %v7780_v18 = vpop.f32.mrf.mxu0 }
 0x3d5   : > { %v7778_v56 = vpop.f32.mrf.mxu1 }
 0x3d7   : > { %v7782_v54 = vpop.f32.mrf.mxu1 }
 0x3d9   : > { %v7784_v20 = vpop.f32.mrf.mxu0 }
 0x3db   : > { %v7788_v48 = vpop.f32.mrf.mxu0 }
 0x3dd   : > { %v7786_v3 = vpop.f32.mrf.mxu1 }
 0x3df   : > { %v7790_v0 = vpop.f32.mrf.mxu1 }
 0x3e1   : > { %v7792_v19 = vpop.f32.mrf.mxu0 }
 0x3e3   : > { %v7796_v24 = vpop.f32.mrf.mxu0 }
 0x3e5   : > { %v7794_v6 = vpop.f32.mrf.mxu1 }
 0x3e7   : > { %v7798_v40 = vpop.f32.mrf.mxu1 }
 0x3e8   : > { %7969 = vst [vmem:[#allocation18_spill] sm:$0xff] %v7798_v40  ;;  %v3155_v40 = vadd.f32 %v7734_v44, %v2959_v45 }
 0x3e9   : > { %v7800_v31 = vpop.f32.mrf.mxu0 }
 0x3eb   : > { %v7804_v2 = vpop.f32.mrf.mxu0 }
 0x3ed   : > { %v7802_v35 = vpop.f32.mrf.mxu1 }
 0x3ee   : > { %7970 = vst [vmem:[#allocation19_spill] sm:$0xff] %v7802_v35 }
 0x3ef   : > { %v7806_v23 = vpop.f32.mrf.mxu1 }
 0x3f0   : > { %7971 = vst [vmem:[#allocation20_spill] sm:$0xff] %v7806_v23  ;;  %v3160_v23 = vadd.f32 %v7732_v57, %v5631_v49 }
 0x3f1   : > { %v7808_v53 = vpop.f32.mrf.mxu0 }
 0x3f3   : > { %v7814_v7 = vpop.f32.mrf.mxu0 }
 0x3f4   : > { %7974 = vst [vmem:[#allocation23_spill] sm:$0xff] %v7814_v7 }
 0x3f5   : > { %v7810_v8 = vpop.f32.mrf.mxu1 }
 0x3f6   : > { %7972 = vst [vmem:[#allocation21_spill] sm:$0xff] %v7810_v8 }
 0x3f7   : > { %v7812_v28 = vpop.f32.mrf.mxu1 }
 0x3f8   : > { %7973 = vst [vmem:[#allocation22_spill] sm:$0xff] %v7812_v28 }
 0x3f9   : > { %v5841_v61 = vpop.f32.mrf.mxu1  ;;  %v7816_v47 = vpop.f32.mrf.mxu0 }
 0x3fa   : > { %7975 = vst [vmem:[#allocation24_spill] sm:$0xff] %v7816_v47 }
 0x3fb   : > { %v3646_v21 = vpop.f32.mrf.mxu1  ;;  %v7818_v52 = vpop.f32.mrf.mxu0 }
 0x3fc   : > { %7976 = vst [vmem:[#allocation25_spill] sm:$0xff] %v7818_v52 }
 0x3fd   : > { %v5844_v33 = vpop.f32.mrf.mxu1 }
 0x3ff   : > { %v3656_v26 = vpop.f32.mrf.mxu1 }
 0x401   : > { %v7820_v30 = vpop.f32.mrf.mxu0  ;;  %v5847_v34 = vpop.f32.mrf.mxu1 }
 0x402   : > { %7977 = vst [vmem:[#allocation26_spill] sm:$0xff] %v7820_v30 }
 0x403   : > { %v7822_v29 = vpop.f32.mrf.mxu0  ;;  %v3666_v55 = vpop.f32.mrf.mxu1 }
 0x404   : > { %7978 = vst [vmem:[#allocation27_spill] sm:$0xff] %v7822_v29 }
 0x405   : > { %v5770_v37 = vpop.f32.mrf.mxu0  ;;  %v5850_v62 = vpop.f32.mrf.mxu1 }
 0x406   : > { %v3512_v38 = vadd.f32 %v5770_v37, %v3150_v46 }
 0x407   : > { %v3382_v28 = vpop.f32.mrf.mxu0  ;;  %v3676_v8 = vpop.f32.mrf.mxu1 }
 0x408   : > { %v3776_v52 = vadd.f32 %v5841_v61, %v3512_v38  ;;  %v3511_v35 = vadd.f32 %v3382_v28, %v3145_v59 }
 0x409   : > { %v5773_v47 = vpop.f32.mrf.mxu0  ;;  %v5853_v30 = vpop.f32.mrf.mxu1 }
 0x40a   : > { %v3809_v29 = vadd.f32 %v7824_v32, %v3776_v52  ;;  %v3775_v12 = vadd.f32 %v3646_v21, %v3511_v35  ;;  %v3514_v51 = vadd.f32 %v5773_v47, %v3160_v23  ;;  %v3165_v35 = vadd.f32 %v7738_v13, %v7748_v4 }
 0x40b   : > { %v3392_v7 = vpop.f32.mrf.mxu0  ;;  %v3686_v39 = vpop.f32.mrf.mxu1  ;;  %v3175_v13 = vadd.f32 %v7742_v10, %v7756_v50  ;;  %v3185_v50 = vadd.f32 %v7750_v17, %v7764_v63 }
 0x40c   : > { %v3808_v46 = vadd.f32 %v7824_v32, %v3775_v12  ;;  %v3778_v37 = vadd.f32 %v5844_v33, %v3514_v51  ;;  %v3513_v57 = vadd.f32 %v3392_v7, %v3155_v40  ;;  %v3835_v49 = vmax.f32 %v3809_v29, 0.0 }
 0x40d   : > { %v5776_v28 = vpop.f32.mrf.mxu0  ;;  %v5856_v61 = vpop.f32.mrf.mxu1  ;;  %v3180_v40 = vadd.f32 %v7740_v15, %v7752_v1  ;;  %v3190_v1 = vadd.f32 %v7746_v58, %v7760_v27  ;;  %v3200_v27 = vadd.f32 %v7754_v41, %v7768_v22  ;;  %v3210_v22 = vadd.f32 %v7762_v5, %v7776_v42 }
 0x40e   : > { %v3834_v59 = vmax.f32 %v3808_v46, 0.0  ;;  %v3811_v44 = vadd.f32 %v7824_v32, %v3778_v37  ;;  %v3777_v45 = vadd.f32 %v3656_v26, %v3513_v57  ;;  %v3516_v52 = vadd.f32 %v5776_v28, %v3170_v43 }
 0x40f   : > { %v3402_v11 = vpop.f32.mrf.mxu0  ;;  %v3696_v9 = vpop.f32.mrf.mxu1  ;;  %v3220_v5 = vadd.f32 %v7770_v25, %v7784_v20  ;;  %v3230_v25 = vadd.f32 %v7778_v56, %v7792_v19  ;;  %v3240_v56 = vadd.f32 %v7786_v3, %v7800_v31  ;;  %v3250_v3 = vadd.f32 %v7794_v6, %v7808_v53  ;;  %v7981_v6 = vld [vmem:[#allocation24_spill] sm:$0xff]  ;;  %v7982_v53 = vld [vmem:[#allocation19_spill] sm:$0xff] }
 0x410   : > { %v4184_v23 = vpack.c.bf16 %v3835_v49, %v3834_v59  ;;  %v3810_v7 = vadd.f32 %v7824_v32, %v3777_v45  ;;  %v3780_v47 = vadd.f32 %v5847_v34, %v3516_v52  ;;  %v3515_v21 = vadd.f32 %v3402_v11, %v3165_v35 }
 0x411   : > { %v5779_v33 = vpop.f32.mrf.mxu0  ;;  %v5859_v26 = vpop.f32.mrf.mxu1  ;;  %v3837_v4 = vmax.f32 %v3811_v44, 0.0 }
 0x412   : > { %4185 = vst [vmem:[%s7839_s29] sm:$0xff] %v4184_v23   ;;  %v3836_v29 = vmax.f32 %v3810_v7, 0.0  ;;  %v3518_v38 = vadd.f32 %v5779_v33, %v3180_v40  ;;  %v3813_v12 = vadd.f32 %v7824_v32, %v3780_v47  ;;  %v3779_v51 = vadd.f32 %v3666_v55, %v3515_v21 }
 0x413   : > { %v3412_v43 = vpop.f32.mrf.mxu0  ;;  %v3706_v15 = vpop.f32.mrf.mxu1  ;;  %v3195_v33 = vadd.f32 %v7758_v36, %v7772_v60 }
 0x414   : > { %v4189_v34 = vpack.c.bf16 %v3837_v4, %v3836_v29  ;;  %v3782_v46 = vadd.f32 %v5850_v62, %v3518_v38  ;;  %v3517_v37 = vadd.f32 %v3412_v43, %v3175_v13  ;;  %v3812_v57 = vadd.f32 %v7824_v32, %v3779_v51 }
 0x415   : > { %v5782_v49 = vpop.f32.mrf.mxu0  ;;  %v5862_v10 = vpop.f32.mrf.mxu1  ;;  %v3839_v44 = vmax.f32 %v3813_v12, 0.0 }
 0x416   : > { %4246 = vst [vmem:[%s7839_s29 + $0x8] sm:$0xff] %v4189_v34   ;;  %v3815_v28 = vadd.f32 %v7824_v32, %v3782_v46  ;;  %v3781_v59 = vadd.f32 %v3676_v8, %v3517_v37  ;;  %v3520_v55 = vadd.f32 %v5782_v49, %v3190_v1  ;;  %v3838_v45 = vmax.f32 %v3812_v57, 0.0 }
 0x417   : > { %v3422_v52 = vpop.f32.mrf.mxu0  ;;  %v3716_v58 = vpop.f32.mrf.mxu1 }
 0x418   : > { %v3814_v62 = vadd.f32 %v7824_v32, %v3781_v59  ;;  %v3784_v35 = vadd.f32 %v5853_v30, %v3520_v55  ;;  %v3519_v11 = vadd.f32 %v3422_v52, %v3185_v50  ;;  %v4194_v40 = vpack.c.bf16 %v3839_v44, %v3838_v45 }
 0x419   : > { %v3841_v23 = vmax.f32 %v3815_v28, 0.0  ;;  %v5785_v17 = vpop.f32.mrf.mxu0  ;;  %v5865_v63 = vpop.f32.mrf.mxu1 }
 0x41a   : > { %v3840_v7 = vmax.f32 %v3814_v62, 0.0  ;;  %v3817_v8 = vadd.f32 %v7824_v32, %v3784_v35  ;;  %v3783_v47 = vadd.f32 %v3686_v39, %v3519_v11  ;;  %v3522_v21 = vadd.f32 %v5785_v17, %v3200_v27  ;;  %4247 = vst [vmem:[%s7839_s29 + $0x10] sm:$0xff] %v4194_v40  }
 0x41b   : > { %v3432_v13 = vpop.f32.mrf.mxu0  ;;  %v3726_v41 = vpop.f32.mrf.mxu1  ;;  %v3205_v39 = vadd.f32 %v7766_v16, %v7780_v18  ;;  %v3215_v16 = vadd.f32 %v7774_v14, %v7788_v48  ;;  %v3225_v40 = vadd.f32 %v7782_v54, %v7796_v24 }
 0x41c   : > { %v4199_v30 = vpack.c.bf16 %v3841_v23, %v3840_v7  ;;  %v3816_v4 = vadd.f32 %v7824_v32, %v3783_v47  ;;  %v3786_v29 = vadd.f32 %v5856_v61, %v3522_v21  ;;  %v3521_v38 = vadd.f32 %v3432_v13, %v3195_v33 }
 0x41d   : > { %v5788_v12 = vpop.f32.mrf.mxu0  ;;  %v5868_v51 = vpop.f32.mrf.mxu1  ;;  %v3843_v43 = vmax.f32 %v3817_v8, 0.0  ;;  %v3235_v21 = vadd.f32 %v7790_v0, %v7804_v2  ;;  %v7979_v0 = vld [vmem:[#allocation23_spill] sm:$0xff]  ;;  %v7980_v2 = vld [vmem:[#allocation18_spill] sm:$0xff] }
 0x41e   : > { %4248 = vst [vmem:[%s7839_s29 + $0x18] sm:$0xff] %v4199_v30   ;;  %v3842_v36 = vmax.f32 %v3816_v4, 0.0  ;;  %v3524_v60 = vadd.f32 %v5788_v12, %v3210_v22  ;;  %v3819_v1 = vadd.f32 %v7824_v32, %v3786_v29  ;;  %v3785_v34 = vadd.f32 %v3696_v9, %v3521_v38 }
 0x41f   : > { %v3442_v46 = vpop.f32.mrf.mxu0  ;;  %v3736_v50 = vpop.f32.mrf.mxu1  ;;  %v3245_v12 = vadd.f32 %v7980_v2, %v7979_v0 }
 0x420   : > { %v4204_v42 = vpack.c.bf16 %v3843_v43, %v3842_v36  ;;  %v3788_v61 = vadd.f32 %v5859_v26, %v3524_v60  ;;  %v3523_v37 = vadd.f32 %v3442_v46, %v3205_v39  ;;  %v3818_v57 = vadd.f32 %v7824_v32, %v3785_v34 }
 0x421   : > { %v5791_v49 = vpop.f32.mrf.mxu0  ;;  %v3845_v9 = vmax.f32 %v3819_v1, 0.0  ;;  %v5871_v14 = vpop.f32.mrf.mxu1 }
 0x422   : > { %4249 = vst [vmem:[%s7839_s29 + $0x20] sm:$0xff] %v4204_v42   ;;  %v3821_v18 = vadd.f32 %v7824_v32, %v3788_v61  ;;  %v3787_v28 = vadd.f32 %v3706_v15, %v3523_v37  ;;  %v3526_v59 = vadd.f32 %v5791_v49, %v3220_v5  ;;  %v3844_v55 = vmax.f32 %v3818_v57, 0.0 }
 0x423   : > { %v3452_v44 = vpop.f32.mrf.mxu0  ;;  %v3746_v47 = vpop.f32.mrf.mxu1 }
 0x424   : > { %v3820_v20 = vadd.f32 %v7824_v32, %v3787_v28  ;;  %v3790_v26 = vadd.f32 %v5862_v10, %v3526_v59  ;;  %v3525_v45 = vadd.f32 %v3452_v44, %v3215_v16  ;;  %v4209_v52 = vpack.c.bf16 %v3845_v9, %v3844_v55  ;;  %v7983_v28 = vld [vmem:[#allocation25_spill] sm:$0xff]  ;;  %v7984_v59 = vld [vmem:[#allocation20_spill] sm:$0xff]  ;;  %v7985_v44 = vld [vmem:[#allocation26_spill] sm:$0xff] }
 0x425   : > { %v3847_v27 = vmax.f32 %v3821_v18, 0.0  ;;  %v5794_v62 = vpop.f32.mrf.mxu0  ;;  %v5874_v38 = vpop.f32.mrf.mxu1  ;;  %v3255_v9 = vadd.f32 %v7984_v59, %v7983_v28 }
 0x426   : > { %v3846_v48 = vmax.f32 %v3820_v20, 0.0  ;;  %v3823_v15 = vadd.f32 %v7824_v32, %v3790_v26  ;;  %v3789_v35 = vadd.f32 %v3716_v58, %v3525_v45  ;;  %v3528_v11 = vadd.f32 %v5794_v62, %v3230_v25  ;;  %4250 = vst [vmem:[%s7839_s29 + $0x28] sm:$0xff] %v4209_v52   ;;  %v7986_v25 = vld [vmem:[#allocation21_spill] sm:$0xff] }
 0x427   : > { %v3462_v23 = vpop.f32.mrf.mxu0  ;;  %v3756_v37 = vpop.f32.mrf.mxu1  ;;  %v3270_v20 = vadd.f32 %v7986_v25, %v7985_v44 }
 0x428   : > { %v4214_v19 = vpack.c.bf16 %v3847_v27, %v3846_v48  ;;  %v3822_v10 = vadd.f32 %v7824_v32, %v3789_v35  ;;  %v3792_v17 = vadd.f32 %v5865_v63, %v3528_v11  ;;  %v3527_v7 = vadd.f32 %v3462_v23, %v3225_v40  ;;  %v7987_v48 = vld [vmem:[#allocation27_spill] sm:$0xff] }
 0x429   : > { %v5797_v8 = vpop.f32.mrf.mxu0  ;;  %v3849_v58 = vmax.f32 %v3823_v15, 0.0  ;;  %v5877_v27 = vpop.f32.mrf.mxu1  ;;  %v7988_v15 = vld [vmem:[#allocation22_spill] sm:$0xff] }
 0x42a   : > { %4251 = vst [vmem:[%s7839_s29 + $0x30] sm:$0xff] %v4214_v19   ;;  %v3848_v33 = vmax.f32 %v3822_v10, 0.0  ;;  %v3530_v54 = vadd.f32 %v5797_v8, %v3240_v56  ;;  %v3825_v24 = vadd.f32 %v7824_v32, %v3792_v17  ;;  %v3791_v13 = vadd.f32 %v3726_v41, %v3527_v7 }
 0x42b   : > { %v3472_v22 = vpop.f32.mrf.mxu0  ;;  %v3265_v35 = vadd.f32 %v7988_v15, %v7987_v48 }
 0x42c   : > { %v4219_v31 = vpack.c.bf16 %v3849_v58, %v3848_v33  ;;  %v3794_v63 = vadd.f32 %v5868_v51, %v3530_v54  ;;  %v3529_v30 = vadd.f32 %v3472_v22, %v3235_v21  ;;  %v3824_v4 = vadd.f32 %v7824_v32, %v3791_v13  ;;  %v3766_v21 = vpop.f32.mrf.mxu1 }
 0x42d   : > { %v5800_v29 = vpop.f32.mrf.mxu0  ;;  %v3851_v41 = vmax.f32 %v3825_v24, 0.0  ;;  %v3260_v51 = vadd.f32 %v7982_v53, %v7981_v6 }
 0x42e   : > { %4252 = vst [vmem:[%s7839_s29 + $0x38] sm:$0xff] %v4219_v31   ;;  %v3827_v39 = vadd.f32 %v7824_v32, %v3794_v63  ;;  %v3793_v43 = vadd.f32 %v3736_v50, %v3529_v30  ;;  %v3532_v36 = vadd.f32 %v5800_v29, %v3250_v3  ;;  %v3850_v60 = vmax.f32 %v3824_v4, 0.0 }
 0x42f   : > { %v3482_v1 = vpop.f32.mrf.mxu0 }
 0x430   : > { %v3826_v34 = vadd.f32 %v7824_v32, %v3793_v43  ;;  %v3796_v46 = vadd.f32 %v5871_v14, %v3532_v36  ;;  %v3531_v5 = vadd.f32 %v3482_v1, %v3245_v12  ;;  %v4224_v42 = vpack.c.bf16 %v3851_v41, %v3850_v60 }
 0x431   : > { %v3853_v61 = vmax.f32 %v3827_v39, 0.0  ;;  %v5803_v57 = vpop.f32.mrf.mxu0 }
 0x432   : > { %v3852_v49 = vmax.f32 %v3826_v34, 0.0  ;;  %v3829_v50 = vadd.f32 %v7824_v32, %v3796_v46  ;;  %v3795_v16 = vadd.f32 %v3746_v47, %v3531_v5  ;;  %v3534_v18 = vadd.f32 %v5803_v57, %v3260_v51  ;;  %4253 = vst [vmem:[%s7839_s29 + $0x40] sm:$0xff] %v4224_v42  }
 0x433   : > { %v3492_v55 = vpop.f32.mrf.mxu0 }
 0x434   : > { %v4229_v26 = vpack.c.bf16 %v3853_v61, %v3852_v49  ;;  %v3828_v45 = vadd.f32 %v7824_v32, %v3795_v16  ;;  %v3798_v52 = vadd.f32 %v5874_v38, %v3534_v18  ;;  %v3533_v62 = vadd.f32 %v3492_v55, %v3255_v9 }
 0x435   : > { %v5806_v14 = vpop.f32.mrf.mxu0  ;;  %v3855_v11 = vmax.f32 %v3829_v50, 0.0 }
 0x436   : > { %4254 = vst [vmem:[%s7839_s29 + $0x48] sm:$0xff] %v4229_v26   ;;  %v3854_v40 = vmax.f32 %v3828_v45, 0.0  ;;  %v3536_v23 = vadd.f32 %v5806_v14, %v3270_v20  ;;  %v3831_v56 = vadd.f32 %v7824_v32, %v3798_v52  ;;  %v3797_v19 = vadd.f32 %v3756_v37, %v3533_v62 }
 0x437   : > { %v3502_v10 = vpop.f32.mrf.mxu0 }
 0x438   : > { %v4234_v17 = vpack.c.bf16 %v3855_v11, %v3854_v40  ;;  %v3800_v7 = vadd.f32 %v5877_v27, %v3536_v23  ;;  %v3535_v8 = vadd.f32 %v3502_v10, %v3265_v35  ;;  %v3830_v47 = vadd.f32 %v7824_v32, %v3797_v19 }
 0x439   : > { %v3857_v54 = vmax.f32 %v3831_v56, 0.0 }
 0x43a   : > { %4255 = vst [vmem:[%s7839_s29 + $0x50] sm:$0xff] %v4234_v17   ;;  %v3833_v58 = vadd.f32 %v7824_v32, %v3800_v7  ;;  %v3799_v33 = vadd.f32 %v3766_v21, %v3535_v8  ;;  %v3856_v24 = vmax.f32 %v3830_v47, 0.0 }
 0x43c   : > { %v3832_v13 = vadd.f32 %v7824_v32, %v3799_v33  ;;  %v4239_v22 = vpack.c.bf16 %v3857_v54, %v3856_v24  ;;  %v3859_v3 = vmax.f32 %v3833_v58, 0.0 }
 0x43e   : > { %v3858_v31 = vmax.f32 %v3832_v13, 0.0  ;;  %4256 = vst [vmem:[%s7839_s29 + $0x58] sm:$0xff] %v4239_v22  }
 0x440   : > { %v4244_v63 = vpack.c.bf16 %v3859_v3, %v3858_v31 }
 0x442   : > { %4257 = vst [vmem:[%s7839_s29 + $0x60] sm:$0xff] %v4244_v63  }
 0x443 PF: > { %s21_s24 = sadd.s32 1, %s6131_s24  }
 0x444   : > { %p18_p3 = scmp.ge.s32.totalorder %s21_s24, 4  }
 0x446   :  { %20 = sbr.rel (!%p18_p3) target bundleno = 4 (0x4), region = 112 }
 0x44b   :  { %4011 = vsyncpa [#allocation5], 1 }
 0x44c   :  { %4013 = vsyncpa [#allocation5 + $0x1], 1 }
 0x44d   :  { %4014 = vsyncpa [#allocation7], 1 }
 0x44e   :  { %4015 = vsyncpa [#allocation10], 1 }
 0x44f   :  { %4016 = vsyncpa [#allocation13], 1 }

// kernel: cnn_policy_forward.3
= control target key start
LH: loop header
LB: loop body
LE: loop exit
PB: predicated region body
PF: predicated region fallthrough
CT: control target
= control target key end

     0   :  { %14 = vsyncpa [#allocation4], 0  ;;  %s5197_s0 = inlined_call_operand.vmem [shape: bf16[2,26624], index: 0, kind: input, shape index: {}]   ;;  %s5198_s1 = inlined_call_operand.hbm [shape: bf16[26624,128], index: 1, kind: input, shape index: {}]   ;;  %s5199_s2 = inlined_call_operand.hbm [shape: f32[1,128], index: 2, kind: input, shape index: {}]   ;;  %s5200_s3 = inlined_call_operand.hbm [shape: f32[128,128], index: 3, kind: input, shape index: {}]   ;;  %s5201_s4 = inlined_call_operand.hbm [shape: f32[1,128], index: 4, kind: input, shape index: {}]   ;;  %s5202_s5 = inlined_call_operand.hbm [shape: f32[128,128], index: 5, kind: input, shape index: {}]   ;;  %s5203_s6 = inlined_call_operand.hbm [shape: f32[1,128], index: 6, kind: input, shape index: {}]   ;;  %s5204_s7 = inlined_call_operand.hbm [shape: f32[128,128], index: 7, kind: input, shape index: {}]   ;;  %s5205_s8 = inlined_call_operand.hbm [shape: f32[1,128], index: 8, kind: input, shape index: {}]   ;;  %s5206_s9 = inlined_call_operand.hbm [shape: f32[2,128], index: 9, kind: output, shape index: {}]  }
   0x1   :  { %16 = vsyncpa [#allocation4 + $0x1], 0 }
   0x2   :  { %17 = vsyncpa [#allocation7], 0 }
   0x3   :  { %18 = vsyncpa [#allocation10], 0 }
   0x4   :  { %19 = vsyncpa [#allocation13], 0 }
   0x5   :  { %20 = vsyncpa [#allocation16], 0 }
   0x6   :  { %21 = vsyncpa [#allocation5], 0  ;;  %s4658_s30 = smov 0   ;;  %s4660_s10 = smov 0  }
   0x7   :  { %s4662_s11 = smov 0   ;;  %s4664_s12 = smov 0  }
   0x8 LB: > { %s4591_s13 = smov [#allocation6]   ;;  %s4679_s15 = sadd.s32 4294967295, %s4589_s12   ;;  %s4589_s12 = sphi %s4664_s12, %s5229_s12   ;;  %s4585_s11 = sphi %s4662_s11, %s5228_s11   ;;  %s4581_s10 = sphi %s4660_s10, %s5227_s10   ;;  %s4577_s30 = sphi %s4658_s30, %s5226_s30  }
   0x9   : > { %s265_s14 = sshll.u32 %s4591_s13, 4  ;;  %p3279_p0 = scmp.ge.s32.totalorder %s4589_s12, 1  ;;  %s266_s14 = int_to_ptr.vmem [resolvable:$true] %s265_s14 }
   0xa   : > { %p5207_p1 = scmp.eq.s32.totalorder %s4679_s15, 0  ;;  %p252_p2 = scmp.lt.s32.totalorder %s4589_s12, 9 }
   0xb   : > { %s4592_s17 = smov [#allocation9]   ;;  %s4593_s19 = smov [#allocation12]  }
   0xc   : > { %p4685_p4 = pnand %p3279_p0, %p252_p2  ;;  %s289_s18 = sshll.u32 %s4592_s17, 4  ;;  %s4691_s18 = int_to_ptr.vmem [resolvable:$true] %s289_s18 }
   0xd   : > { %s313_s20 = sshll.u32 %s4593_s19, 4  ;;  %s4594_s22 = smov [#allocation8]   ;;  %s4699_s20 = int_to_ptr.vmem [resolvable:$true] %s313_s20 }
   0xe   : > { %s5210_s16 = scalar_select %p4685_p4, 1, 0 }
   0xf   : > { %p3995_p5 = pneg %p4685_p4  ;;  %s4701_s23 = sshll.u32 %s4594_s22, 4  ;;  %s276_s23 = int_to_ptr.vmem [resolvable:$true] %s4701_s23 }
  0x10   : > { %s4312_s25 = scalar_lea.vmem %s266_s14, 16  ;;  %s4319_s26 = scalar_lea.vmem %s266_s14, 32 }
  0x11   : > { %p4695_p6 = pnand %p3995_p5, %p5207_p1  ;;  %p4313_p8 = scmp.ne.s32.totalorder %s266_s14, %s4312_s25 }
  0x12   : > { %p4320_p11 = scmp.lt.s32.totalorder %s266_s14, %s266_s14  ;;  %p4321_p12 = scmp.lt.s32.totalorder %s4319_s26, %s4312_s25 }
  0x13   : > { %p4705_p7 = pneg %p4695_p6 }
  0x14   : > { %p4322_p13 = por %p4321_p12, %p4320_p11 }
  0x15   : > { %p4315_p9 = pnand %p4313_p8, %p4705_p7 }
  0x17   : > { %p4316_p10 = pneg %p4315_p9 }
  0x19   : > { %p4323_p0 = pnand %p4322_p13, %p4316_p10 }
  0x1b   : > { %4326 = shalt.err (!%p4323_p0)
}
  0x1c   : > { %3998 = dma.hbm_to_vmem [thread:$0]  (!%p4695_p6), %s5199_s2, 16, %s266_s14, [#allocation7]  }
  0x1d   : > { %s4338_s29 = scalar_lea.vmem %s4691_s18, 16  ;;  %s4345_s13 = scalar_lea.vmem %s4691_s18, 32 }
  0x1e   : > { %p4339_p2 = scmp.ne.s32.totalorder %s4691_s18, %s4338_s29  ;;  %p4346_p9 = scmp.lt.s32.totalorder %s4691_s18, %s4691_s18 }
  0x1f   : > { %p4347_p10 = scmp.lt.s32.totalorder %s4345_s13, %s4338_s29 }
  0x20   : > { %p4341_p5 = pnand %p4339_p2, %p4705_p7 }
  0x21   : > { %p4348_p11 = por %p4347_p10, %p4346_p9 }
  0x22   : > { %p4342_p8 = pneg %p4341_p5 }
  0x24   : > { %p4349_p12 = pnand %p4348_p11, %p4342_p8 }
  0x26   : > { %4352 = shalt.err (!%p4349_p12)
}
  0x27   : > { %4004 = dma.hbm_to_vmem [thread:$0]  (!%p4695_p6), %s5201_s4, 16, %s4691_s18, [#allocation10]  }
  0x28   : > { %s4364_s14 = scalar_lea.vmem %s4699_s20, 16  ;;  %s4371_s22 = scalar_lea.vmem %s4699_s20, 32 }
  0x29   : > { %p4365_p13 = scmp.ne.s32.totalorder %s4699_s20, %s4364_s14  ;;  %p4372_p5 = scmp.lt.s32.totalorder %s4699_s20, %s4699_s20 }
  0x2a   : > { %p4373_p8 = scmp.lt.s32.totalorder %s4371_s22, %s4364_s14 }
  0x2b   : > { %p4367_p0 = pnand %p4365_p13, %p4705_p7 }
  0x2c   : > { %p4374_p9 = por %p4373_p8, %p4372_p5 }
  0x2d   : > { %p4368_p2 = pneg %p4367_p0 }
  0x2f   : > { %p4375_p10 = pnand %p4374_p9, %p4368_p2 }
  0x31   : > { %4378 = shalt.err (!%p4375_p10)
}
  0x32   : > { %4010 = dma.hbm_to_vmem [thread:$0]  (!%p4695_p6), %s5203_s6, 16, %s4699_s20, [#allocation13]  }
  0x33   : > { %s4390_s18 = scalar_lea.vmem %s276_s23, 2048  ;;  %p4398_p0 = scmp.lt.s32.totalorder %s276_s23, %s276_s23 }
  0x34   : > { %p4391_p11 = scmp.ne.s32.totalorder %s276_s23, %s4390_s18  ;;  %p4399_p3 = scmp.lt.s32.totalorder %s4390_s18, %s4390_s18 }
  0x36   : > { %p4393_p12 = pnand %p4391_p11, %p4705_p7  ;;  %p4400_p5 = por %p4399_p3, %p4398_p0 }
  0x38   : > { %p4394_p13 = pneg %p4393_p12 }
  0x3a   : > { %p4401_p2 = pnand %p4400_p5, %p4394_p13 }
  0x3c   : > { %4404 = shalt.err (!%p4401_p2)
}
  0x3d   : > { %s4595_s27 = smov 128   ;;  %s4596_s28 = smov 8  }
  0x3e   : > { %4001 = dma.hbm_to_vmem [thread:$0]  (!%p4695_p6), %s5200_s3, 2048, %s276_s23, [#allocation7], %s4595_s27, %s4595_s27, %s4596_s28  }
  0x3f   : > { %s4597_s13 = smov [#allocation11]   ;;  %s4598_s19 = smov [#allocation14]  }
  0x40   : > { %s299_s17 = sshll.u32 %s4597_s13, 4  ;;  %s323_s14 = sshll.u32 %s4598_s19, 4  ;;  %s300_s17 = int_to_ptr.vmem [resolvable:$true] %s299_s17  ;;  %s324_s14 = int_to_ptr.vmem [resolvable:$true] %s323_s14 }
  0x41   : > { %s4416_s22 = scalar_lea.vmem %s300_s17, 2048  ;;  %p4424_p10 = scmp.lt.s32.totalorder %s300_s17, %s300_s17 }
  0x42   : > { %p4417_p3 = scmp.ne.s32.totalorder %s300_s17, %s4416_s22  ;;  %p4425_p11 = scmp.lt.s32.totalorder %s4416_s22, %s4416_s22 }
  0x44   : > { %p4419_p8 = pnand %p4417_p3, %p4705_p7  ;;  %p4426_p12 = por %p4425_p11, %p4424_p10 }
  0x46   : > { %p4420_p9 = pneg %p4419_p8 }
  0x48   : > { %p4427_p13 = pnand %p4426_p12, %p4420_p9 }
  0x4a   : > { %4430 = shalt.err (!%p4427_p13)
}
  0x4b   : > { %4007 = dma.hbm_to_vmem [thread:$0]  (!%p4695_p6), %s5202_s5, 2048, %s300_s17, [#allocation10], %s4595_s27, %s4595_s27, %s4596_s28  }
  0x4c   : > { %s4442_s26 = scalar_lea.vmem %s324_s14, 2048  ;;  %p4450_p3 = scmp.lt.s32.totalorder %s324_s14, %s324_s14 }
  0x4d   : > { %p4443_p0 = scmp.ne.s32.totalorder %s324_s14, %s4442_s26  ;;  %p4451_p8 = scmp.lt.s32.totalorder %s4442_s26, %s4442_s26 }
  0x4f   : > { %p4445_p5 = pnand %p4443_p0, %p4705_p7  ;;  %p4452_p10 = por %p4451_p8, %p4450_p3 }
  0x51   : > { %p4446_p2 = pneg %p4445_p5 }
  0x53   : > { %p4453_p9 = pnand %p4452_p10, %p4446_p2 }
  0x55   : > { %4456 = shalt.err (!%p4453_p9)
}
  0x56   : > { %4013 = dma.hbm_to_vmem [thread:$0]  (!%p4695_p6), %s5204_s7, 2048, %s324_s14, [#allocation13], %s4595_s27, %s4595_s27, %s4596_s28  }
  0x57   : > { %s4599_s29 = smov [#allocation15]  }
  0x58   : > { %s337_s13 = sshll.u32 %s4599_s29, 4  ;;  %s338_s13 = int_to_ptr.vmem [resolvable:$true] %s337_s13 }
  0x59   : > { %s4468_s17 = scalar_lea.vmem %s338_s13, 16  ;;  %s4475_s19 = scalar_lea.vmem %s338_s13, 32 }
  0x5a   : > { %p4469_p11 = scmp.ne.s32.totalorder %s338_s13, %s4468_s17  ;;  %p4476_p0 = scmp.lt.s32.totalorder %s338_s13, %s338_s13 }
  0x5b   : > { %p4477_p5 = scmp.lt.s32.totalorder %s4475_s19, %s4468_s17 }
  0x5c   : > { %p4471_p12 = pnand %p4469_p11, %p4705_p7 }
  0x5d   : > { %p4478_p2 = por %p4477_p5, %p4476_p0 }
  0x5e   : > { %p4472_p13 = pneg %p4471_p12 }
  0x60   : > { %p4479_p3 = pnand %p4478_p2, %p4472_p13 }
  0x62   : > { %4482 = shalt.err (!%p4479_p3)
}
  0x63   : > { %4016 = dma.hbm_to_vmem [thread:$0]  (!%p4695_p6), %s5205_s8, 16, %s338_s13, [#allocation16]  }
  0x64   : > { %s4781_s24 = sadd.s32 1, %s4589_s12   ;;  %s60_s27 = sadd.s32 1, %s4585_s11 }
  0x65   : > { %s57_s21 = ssub.s32 %s4589_s12, %s4781_s24  ;;  %p67_p8 = scmp.ne.s32.totalorder %s4585_s11, %s4581_s10 }
  0x66   : > { %p58_p7 = scmp.eq.s32.totalorder %s57_s21, 0  ;;  %p68_p10 = scmp.eq.s32.totalorder %s4589_s12, 0 }
  0x67   : > { %p73_p9 = scmp.ne.s32.totalorder %s4581_s10, %s4577_s30  ;;  %p4028_p13 = scmp.lt.s32.totalorder %s4589_s12, 8 }
  0x68   : > { %s4792_s28 = scalar_select %p58_p7, %s4585_s11, %s60_s27  }
  0x69   : > { %p69_p11 = por %p68_p10, %p67_p8  ;;  %p4796_p12 = por %p5207_p1, %p73_p9 }
  0x6a   : > { %s356_s25 = sand.u32 1, %s4585_s11   ;;  %s3516_s18 = smul.u32 26624, %s4589_s12 }
  0x6b   : > { %s5213_s14 = scalar_select %p4796_p12, 1, 0 }
  0x6c   : > { %s3959_s26 = smul.u32 1664, %s356_s25  ;;  %p4803_p6 = pnand %p4028_p13, %p69_p11 }
  0x6d   : > { %s4810_s30 = scalar_lea.hbm %s5198_s1, %s3516_s18  ;;  %s4814_s22 = scalar_lea.sflag [#allocation4], %s356_s25 }
  0x6e   : > { %s360_s17 = scalar_lea.vmem [#allocation3], %s3959_s26  ;;  %s4483_s12 = scalar_lea.hbm %s4810_s30, 26624 }
  0x6f   : > { %s367_s19 = sshll.u32 %s360_s17, 4  ;;  %p4484_p0 = scmp.ne.s32.totalorder %s4810_s30, %s4483_s12  ;;  %s4812_s19 = int_to_ptr.vmem [resolvable:$true] %s367_s19 }
  0x70   : > { %p4485_p5 = pneg %p4803_p6  ;;  %s4488_s27 = scalar_lea.hbm %s5198_s1, 212992 }
  0x71   : > { %p4489_p7 = scmp.lt.s32.totalorder %s4810_s30, %s5198_s1  ;;  %p4490_p8 = scmp.lt.s32.totalorder %s4488_s27, %s4483_s12 }
  0x72   : > { %p4486_p2 = pnand %p4485_p5, %p4484_p0 }
  0x73   : > { %p4491_p10 = por %p4490_p8, %p4489_p7 }
  0x74   : > { %p4487_p3 = pneg %p4486_p2 }
  0x76   : > { %p4492_p9 = pnand %p4491_p10, %p4487_p3 }
  0x78   : > { %4495 = shalt.err (!%p4492_p9)
}
  0x79   : > { %s4496_s25 = scalar_lea.vmem %s4812_s19, 26624  ;;  %s4600_s26 = smov [#allocation3]  }
  0x7a   : > { %p4497_p11 = scmp.ne.s32.totalorder %s4812_s19, %s4496_s25  ;;  %s4501_s13 = sshll.u32 %s4600_s26, 4  ;;  %s4502_s13 = int_to_ptr.vmem [resolvable:$false] %s4501_s13 }
  0x7b   : > { %s4503_s17 = scalar_lea.vmem %s4502_s13, 53248  ;;  %p4504_p2 = scmp.lt.s32.totalorder %s4812_s19, %s4502_s13 }
  0x7c   : > { %p4499_p13 = pnand %p4497_p11, %p4485_p5  ;;  %p4505_p1 = scmp.lt.s32.totalorder %s4503_s17, %s4496_s25 }
  0x7e   : > { %p4500_p0 = pneg %p4499_p13  ;;  %p4506_p12 = por %p4505_p1, %p4504_p2 }
  0x80   : > { %p4507_p4 = pnand %p4506_p12, %p4500_p0 }
  0x82   : > { %4510 = shalt.err (!%p4507_p4)
}
  0x83   : > { %s4601_s12 = smov 64   ;;  %s4602_s23 = smov 4  }
  0x84   : > { %4020 = dma.hbm_to_vmem [thread:$0]  (!%p4803_p6), %s4810_s30, 26624, %s4812_s19, %s4814_s22, %s4601_s12, %s4601_s12, %s4602_s23  }
  0x85   : > { %p5215_p5 = scmp.ne.s32.totalorder %s5210_s16, 0 }
  0x86   : > { %s381_s21 = sand.u32 (!%p5215_p5), 1, %s4581_s10   ;;  %p5216_p1 = scmp.ne.s32.totalorder (!%p5215_p5), %s5213_s14, 0 }
  0x87   : > { %379 = sbr.rel (%p5215_p5) target bundleno = 1253 (0x4e5), region = 56  ;;  %s382_s18 = scalar_lea.sflag (!%p5215_p5), [#allocation4], %s381_s21 }
  0x88   : > { %s3960_s27 = smul.u32 (!%p5215_p5), 1664, %s381_s21 }
  0x8a   : > { %s4838_s29 = scalar_lea.vmem (!%p5215_p5), [#allocation3], %s3960_s27 }
  0x8c   : > { %4552 = dma.done.wait (%p5216_p1), %s382_s18, 26624  }
  0x8d   : > { %4554 = vsyncadd (%p5216_p1), %s382_s18, 4294940672  ;;  %p5217_p4 = scmp.eq.s32.totalorder %s4679_s15, 0 }
  0x8f   : > { %4556 = dma.done.wait (%p5217_p4), [#allocation7], 2064   ;;  %p5218_p12 = pmov %p5217_p4 }
  0x90   : > { %p5219_p6 = pmov %p5217_p4 }
  0x91   : > { %4558 = vsyncadd (%p5218_p12), [#allocation7], 4294965232 }
  0x92   : > { %4560 = dma.done.wait (%p5219_p6), [#allocation10], 2064   ;;  %p5220_p3 = pmov %p5217_p4 }
  0x94   : > { %4562 = vsyncadd (%p5220_p3), [#allocation10], 4294965232  ;;  %p5221_p7 = pmov %p5220_p3 }
  0x95   : > { %p5222_p8 = pmov %p5220_p3 }
  0x96   : > { %4564 = dma.done.wait (%p5221_p7), [#allocation13], 2064  }
  0x97   : > { %4566 = vsyncadd (%p5222_p8), [#allocation13], 4294965232  ;;  %p5223_p10 = pmov %p5220_p3 }
  0x98   : > { %p5224_p9 = pmov %p5220_p3 }
  0x99   : > { %4568 = dma.done.wait (%p5223_p10), [#allocation16], 16  }
  0x9a   : > { %4570 = vsyncadd (%p5224_p9), [#allocation16], 4294967280  ;;  %s447_s16 = smul.u32 26, %s4679_s15  ;;  %p5225_p13 = scmp.ne.s32.totalorder %s4679_s15, 0 }
  0x9c   : > { %p448_p11 = scmp.lt.s32.totalorder %s447_s16, 207  ;;  %457 = sbr.rel (%p5225_p13) target bundleno = 163 (0xa3), region = 92 }
  0x9e   : > { %s5231_s16 = smov (!%p448_p11, %s447_s16), 207 }
  0x9f   : > { %s4864_s30 = scalar_lea.vmem %s5197_s0, %s5231_s16 }
  0xa1   : > { %v4603_v0 = vmov 0.0  }
  0xa2   : > { %458 = vst [vmem:[#allocation2] sm:$0x3] %v4603_v0 }
  0xa3 PF: > { %v4086_v1 = vld [vmem:[%s4838_s29 + $0x78] sm:$0xff]   ;;  %v4090_v5 = vld [vmem:[%s4838_s29 + $0x70] sm:$0xff]   ;;  %v4094_v9 = vld [vmem:[%s4838_s29 + $0x68] sm:$0xff]   ;;  %v888_v30 = vlaneseq  ;;  %v4604_v36 = vmov 1966171168   ;;  %p3507_p0 = scmp.ne.s32.totalorder %s4679_s15, 7 }
  0xa4   : > { %v4087_v2 = vld [vmem:[%s4838_s29 + $0xf8] sm:$0xff]   ;;  %3517 = vmatprep.subr.bf16.mxu0 %v4086_v1  ;;  %v4091_v6 = vld [vmem:[%s4838_s29 + $0xf0] sm:$0xff]   ;;  %v4095_v10 = vld [vmem:[%s4838_s29 + $0xe8] sm:$0xff]   ;;  %v886_v37 = vunpack.c.l.s4 %v4604_v36 }
  0xa5   : > { %v4088_v3 = vld [vmem:[%s4838_s29 + $0x38] sm:$0xff]   ;;  %3539 = vmatprep.subr.bf16.mxu1 %v4087_v2  ;;  %v4092_v7 = vld [vmem:[%s4838_s29 + $0x30] sm:$0xff]   ;;  %v4096_v11 = vld [vmem:[%s4838_s29 + $0x28] sm:$0xff]   ;;  %v889_v34 = vshrl.u32 %v888_v30, 7 }
  0xa6   : > { %v4089_v4 = vld [vmem:[%s4838_s29 + $0xb8] sm:$0xff]   ;;  %3518 = vmatpush3.bf16.msra.mxu0 %v4088_v3  ;;  %v4093_v8 = vld [vmem:[%s4838_s29 + $0xb0] sm:$0xff]   ;;  %v4097_v12 = vld [vmem:[%s4838_s29 + $0xa8] sm:$0xff]   ;;  %v887_v40 = vunpack.c.0.s8 %v886_v37 }
  0xa7   : > { %3540 = vmatpush3.bf16.msra.mxu1 %v4089_v4  ;;  %3519 = vmatprep.subr.bf16.mxu0 %v4090_v5  ;;  %v4098_v13 = vld [vmem:[%s4838_s29 + $0x60] sm:$0xff]   ;;  %v4102_v17 = vld [vmem:[%s4838_s29 + $0x58] sm:$0xff]   ;;  %v4106_v21 = vld [vmem:[%s4838_s29 + $0x50] sm:$0xff]  }
  0xa8   : > { %3541 = vmatprep.subr.bf16.mxu1 %v4091_v6  ;;  %v4099_v14 = vld [vmem:[%s4838_s29 + $0xe0] sm:$0xff]   ;;  %v4103_v18 = vld [vmem:[%s4838_s29 + $0xd8] sm:$0xff]   ;;  %v4107_v22 = vld [vmem:[%s4838_s29 + $0xd0] sm:$0xff]   ;;  %v4903_v42 = vsub.s32 %v887_v40, %v889_v34 }
  0xa9   : > { %v4100_v15 = vld [vmem:[%s4838_s29 + $0x20] sm:$0xff]   ;;  %v4104_v19 = vld [vmem:[%s4838_s29 + $0x18] sm:$0xff]   ;;  %v4108_v23 = vld [vmem:[%s4838_s29 + $0x10] sm:$0xff]  }
  0xaa   : > { %3520 = vmatpush3.bf16.msra.mxu0 %v4092_v7  ;;  %v4101_v16 = vld [vmem:[%s4838_s29 + $0xa0] sm:$0xff]   ;;  %v4105_v20 = vld [vmem:[%s4838_s29 + $0x98] sm:$0xff]   ;;  %v4109_v24 = vld [vmem:[%s4838_s29 + $0x90] sm:$0xff]  }
  0xab   : > { %3542 = vmatpush3.bf16.msra.mxu1 %v4093_v8  ;;  %3521 = vmatprep.subr.bf16.mxu0 %v4094_v9  ;;  %v4110_v25 = vld [vmem:[%s4838_s29 + $0x48] sm:$0xff]   ;;  %v4114_v29 = vld [vmem:[%s4838_s29 + $0x40] sm:$0xff]   ;;  %v4119_v35 = vld [vmem:[%s4838_s29 + $0x178] sm:$0xff]  }
  0xac   : > { %3543 = vmatprep.subr.bf16.mxu1 %v4095_v10  ;;  %v4111_v26 = vld [vmem:[%s4838_s29 + $0xc8] sm:$0xff]   ;;  %v4115_v31 = vld [vmem:[%s4838_s29 + $0xc0] sm:$0xff]   ;;  %v4121_v41 = vld [vmem:[%s4838_s29 + $0x1f8] sm:$0xff]  }
  0xad   : > { %v4112_v27 = vld [vmem:[%s4838_s29 + $0x8] sm:$0xff]   ;;  %v4116_v32 = vld [vmem:[%s4838_s29] sm:$0xff]   ;;  %v4120_v49 = vld [vmem:[%s4838_s29 + $0x138] sm:$0xff]  }
  0xae   : > { %3522 = vmatpush3.bf16.msra.mxu0 %v4096_v11  ;;  %v4113_v28 = vld [vmem:[%s4838_s29 + $0x88] sm:$0xff]   ;;  %v4117_v33 = vld [vmem:[%s4838_s29 + $0x80] sm:$0xff]   ;;  %v4123_v52 = vld [vmem:[%s4838_s29 + $0x170] sm:$0xff]  }
  0xaf   : > { %3544 = vmatpush3.bf16.msra.mxu1 %v4097_v12  ;;  %3523 = vmatprep.subr.bf16.mxu0 %v4098_v13  ;;  %v460_v38 = vld [vmem:[%s4864_s30] sm:$0xff]  ;;  %v4125_v55 = vld [vmem:[%s4838_s29 + $0x1f0] sm:$0xff]   ;;  %v4127_v58 = vld [vmem:[%s4838_s29 + $0x168] sm:$0xff]  }
  0xb0   : > { %3545 = vmatprep.subr.bf16.mxu1 %v4099_v14  ;;  %v884_v39 = vcombine.high %v460_v38, %v460_v38  ;;  %v891_v43 = vrot.slane %v460_v38, %v4903_v42  ;;  %v4122_v54 = vld [vmem:[%s4838_s29 + $0x1b8] sm:$0xff]   ;;  %v4124_v57 = vld [vmem:[%s4838_s29 + $0x130] sm:$0xff]   ;;  %v4129_v60 = vld [vmem:[%s4838_s29 + $0x1e8] sm:$0xff]  }
  0xb1   : > { %v4126_v59 = vld [vmem:[%s4838_s29 + $0x1b0] sm:$0xff]   ;;  %v4128_v61 = vld [vmem:[%s4838_s29 + $0x128] sm:$0xff]   ;;  %v4131_v62 = vld [vmem:[%s4838_s29 + $0x160] sm:$0xff]  }
  0xb2   : > { %3524 = vmatpush3.bf16.msra.mxu0 %v4100_v15  ;;  %v4907_v44 = vrot.slane %v884_v39, %v4903_v42  ;;  %v899_v45 = vcombine.high %v891_v43, %v891_v43  ;;  %v907_v46 = vrot.slane %v891_v43, %v4903_v42  ;;  %v4130_v63 = vld [vmem:[%s4838_s29 + $0x1a8] sm:$0xff]   ;;  %v4133_v0 = vld [vmem:[%s4838_s29 + $0x1e0] sm:$0xff]   ;;  %v4135_v2 = vld [vmem:[%s4838_s29 + $0x158] sm:$0xff]  }
  0xb3   : > { %3546 = vmatpush3.bf16.msra.mxu1 %v4101_v16  ;;  %3525 = vmatprep.subr.bf16.mxu0 %v4102_v17  ;;  %v4132_v1 = vld [vmem:[%s4838_s29 + $0x120] sm:$0xff]   ;;  %v4137_v4 = vld [vmem:[%s4838_s29 + $0x1d8] sm:$0xff]   ;;  %v4139_v6 = vld [vmem:[%s4838_s29 + $0x150] sm:$0xff]  }
  0xb4   : > { %3547 = vmatprep.subr.bf16.mxu1 %v4103_v18  ;;  %v900_v47 = vcombine.high %v4907_v44, %v4907_v44  ;;  %v921_v48 = vrot.slane %v899_v45, %v4903_v42  ;;  %v929_v51 = vcombine.high %v907_v46, %v907_v46  ;;  %v4134_v3 = vld [vmem:[%s4838_s29 + $0x1a0] sm:$0xff]   ;;  %v4136_v5 = vld [vmem:[%s4838_s29 + $0x118] sm:$0xff]   ;;  %v4141_v8 = vld [vmem:[%s4838_s29 + $0x1d0] sm:$0xff]   ;;  %v914_v18 = vrot.slane %v4907_v44, %v4903_v42 }
  0xb5   : > { %v4138_v7 = vld [vmem:[%s4838_s29 + $0x198] sm:$0xff]   ;;  %v4140_v9 = vld [vmem:[%s4838_s29 + $0x110] sm:$0xff]   ;;  %v4143_v10 = vld [vmem:[%s4838_s29 + $0x148] sm:$0xff]  }
  0xb6   : > { %3526 = vmatpush3.bf16.msra.mxu0 %v4104_v19  ;;  %v928_v50 = vrot.slane %v900_v47, %v4903_v42  ;;  %2359 = vmatprep.mubr.bf16.mxu0 %v921_v48  ;;  %v931_v53 = vcombine.high %v921_v48, %v921_v48  ;;  %v4142_v11 = vld [vmem:[%s4838_s29 + $0x190] sm:$0xff]   ;;  %v4145_v12 = vld [vmem:[%s4838_s29 + $0x1c8] sm:$0xff]   ;;  %v4147_v14 = vld [vmem:[%s4838_s29 + $0x140] sm:$0xff]  }
  0xb7   : > { %3548 = vmatpush3.bf16.msra.mxu1 %v4105_v20  ;;  %3527 = vmatprep.subr.bf16.mxu0 %v4106_v21  ;;  %v4144_v13 = vld [vmem:[%s4838_s29 + $0x108] sm:$0xff]   ;;  %v4149_v16 = vld [vmem:[%s4838_s29 + $0x1c0] sm:$0xff]   ;;  %v4151_v19 = vld [vmem:[%s4838_s29 + $0x278] sm:$0xff]  }
  0xb8   : > { %3549 = vmatprep.subr.bf16.mxu1 %v4107_v22  ;;  %v932_v56 = vcombine.high %v928_v50, %v928_v50  ;;  %2399 = vmatprep.mubr.bf16.mxu1 %v931_v53  ;;  %v4146_v15 = vld [vmem:[%s4838_s29 + $0x188] sm:$0xff]   ;;  %v4148_v17 = vld [vmem:[%s4838_s29 + $0x100] sm:$0xff]   ;;  %v4153_v21 = vld [vmem:[%s4838_s29 + $0x2f8] sm:$0xff]  }
  0xb9   : > { %v4150_v20 = vld [vmem:[%s4838_s29 + $0x180] sm:$0xff]   ;;  %v4152_v22 = vld [vmem:[%s4838_s29 + $0x238] sm:$0xff]   ;;  %v4161_v30 = vld [vmem:[%s4838_s29 + $0x2e8] sm:$0xff]  }
  0xba   : > { %3528 = vmatpush3.bf16.msra.mxu0 %v4108_v23  ;;  %v930_v23 = vcombine.high %v914_v18, %v914_v18  ;;  %v4165_v34 = vld [vmem:[%s4838_s29 + $0x2e0] sm:$0xff]   ;;  %v4167_v36 = vld [vmem:[%s4838_s29 + $0x258] sm:$0xff]   ;;  %v4171_v40 = vld [vmem:[%s4838_s29 + $0x250] sm:$0xff]  }
  0xbb   : > { %3550 = vmatpush3.bf16.msra.mxu1 %v4109_v24  ;;  %3529 = vmatprep.subr.bf16.mxu0 %v4110_v25  ;;  %v4155_v24 = vld [vmem:[%s4838_s29 + $0x270] sm:$0xff]   ;;  %v4154_v25 = vld [vmem:[%s4838_s29 + $0x2b8] sm:$0xff]   ;;  %v4166_v37 = vld [vmem:[%s4838_s29 + $0x2a0] sm:$0xff]  }
  0xbc   : > { %3551 = vmatprep.subr.bf16.mxu1 %v4111_v26  ;;  %v4157_v26 = vld [vmem:[%s4838_s29 + $0x2f0] sm:$0xff]   ;;  %v4169_v38 = vld [vmem:[%s4838_s29 + $0x2d8] sm:$0xff]   ;;  %v461_v45 = vld [vmem:[%s4864_s30 + $0x8] sm:$0xff] }
  0xbd   : > { %v4168_v39 = vld [vmem:[%s4838_s29 + $0x218] sm:$0xff]   ;;  %v4173_v43 = vld [vmem:[%s4838_s29 + $0x2d0] sm:$0xff]   ;;  %v940_v47 = vrot.slane %v461_v45, %v4903_v42  ;;  %v933_v48 = vcombine.high %v461_v45, %v461_v45  ;;  %v4176_v53 = vld [vmem:[%s4838_s29 + $0x208] sm:$0xff]  }
  0xbe   : > { %3530 = vmatpush3.bf16.msra.mxu0 %v4112_v27  ;;  %v4156_v27 = vld [vmem:[%s4838_s29 + $0x230] sm:$0xff]  }
  0xbf   : > { %3552 = vmatpush3.bf16.msra.mxu1 %v4113_v28  ;;  %3531 = vmatprep.subr.bf16.mxu0 %v4114_v29  ;;  %v4159_v28 = vld [vmem:[%s4838_s29 + $0x268] sm:$0xff]   ;;  %v4158_v29 = vld [vmem:[%s4838_s29 + $0x2b0] sm:$0xff]  }
  0xc0   : > { %3553 = vmatprep.subr.bf16.mxu1 %v4115_v31  ;;  %v4160_v31 = vld [vmem:[%s4838_s29 + $0x228] sm:$0xff]   ;;  %v4172_v44 = vld [vmem:[%s4838_s29 + $0x210] sm:$0xff]  }
  0xc1   : > { %v4223_v45 = vld [vmem:[%s4838_s29 + $0x4b0] sm:$0xff]  }
  0xc2   : > { %3532 = vmatpush3.bf16.msra.mxu0 %v4116_v32  ;;  %v4163_v32 = vld [vmem:[%s4838_s29 + $0x260] sm:$0xff]  }
  0xc3   : > { %3554 = vmatpush3.bf16.msra.mxu1 %v4117_v33  ;;  %3561 = vmatprep.subr.bf16.mxu0 %v4119_v35  ;;  %v4162_v33 = vld [vmem:[%s4838_s29 + $0x2a8] sm:$0xff]   ;;  %v4164_v35 = vld [vmem:[%s4838_s29 + $0x220] sm:$0xff]  }
  0xc4   : > { %3583 = vmatprep.subr.bf16.mxu1 %v4121_v41  ;;  %v4170_v41 = vld [vmem:[%s4838_s29 + $0x298] sm:$0xff]  }
  0xc5   : > { %2360 = vmatmul.mubr.bf16.vlgmr.msra.gmra.mxu0 %v907_v46  ;;  %v4175_v46 = vld [vmem:[%s4838_s29 + $0x248] sm:$0xff]  }
  0xc6   : > { %3562 = vmatpush3.bf16.msra.mxu0 %v4120_v49  ;;  %2400 = vmatmul.mubr.bf16.vlgmr.msra.gmra.mxu1 %v929_v51  ;;  %v4174_v49 = vld [vmem:[%s4838_s29 + $0x290] sm:$0xff]   ;;  %v948_v51 = vcombine.high %v940_v47, %v940_v47 }
  0xc7   : > { %3563 = vmatprep.subr.bf16.mxu0 %v4123_v52  ;;  %3584 = vmatpush3.bf16.msra.mxu1 %v4122_v54  ;;  %v4975_v52 = vrot.slane %v933_v48, %v4903_v42  ;;  %v4179_v54 = vld [vmem:[%s4838_s29 + $0x240] sm:$0xff]  }
  0xc8   : > { %2439 = vmatprep.mubr.bf16.mxu0 %v928_v50  ;;  %3585 = vmatprep.subr.bf16.mxu1 %v4125_v55  ;;  %v4177_v50 = vld [vmem:[%s4838_s29 + $0x2c8] sm:$0xff]   ;;  %v970_v55 = vrot.slane %v948_v51, %v4903_v42  ;;  %v4228_v48 = vld [vmem:[%s4838_s29 + $0x460] sm:$0xff]  }
  0xc9   : > { %2479 = vmatprep.mubr.bf16.mxu1 %v932_v56  ;;  %v4178_v56 = vld [vmem:[%s4838_s29 + $0x288] sm:$0xff]   ;;  %v4229_v51 = vld [vmem:[%s4838_s29 + $0x420] sm:$0xff]  }
  0xca   : > { %3564 = vmatpush3.bf16.msra.mxu0 %v4124_v57  ;;  %v949_v57 = vcombine.high %v4975_v52, %v4975_v52 }
  0xcb   : > { %3565 = vmatprep.subr.bf16.mxu0 %v4127_v58  ;;  %3586 = vmatpush3.bf16.msra.mxu1 %v4126_v59  ;;  %v4181_v58 = vld [vmem:[%s4838_s29 + $0x2c0] sm:$0xff]   ;;  %v980_v59 = vcombine.high %v970_v55, %v970_v55 }
  0xcc   : > { %3587 = vmatprep.subr.bf16.mxu1 %v4129_v60  ;;  %v4180_v60 = vld [vmem:[%s4838_s29 + $0x200] sm:$0xff]  }
  0xce   : > { %3566 = vmatpush3.bf16.msra.mxu0 %v4128_v61  ;;  %v956_v61 = vrot.slane %v940_v47, %v4903_v42  ;;  %v4225_v47 = vld [vmem:[%s4838_s29 + $0x428] sm:$0xff]  }
  0xcf   : > { %3567 = vmatprep.subr.bf16.mxu0 %v4131_v62  ;;  %3588 = vmatpush3.bf16.msra.mxu1 %v4130_v63  ;;  %v4183_v62 = vld [vmem:[%s4838_s29 + $0x378] sm:$0xff]   ;;  %v4182_v63 = vld [vmem:[%s4838_s29 + $0x280] sm:$0xff]  }
  0xd0   : > { %3589 = vmatprep.subr.bf16.mxu1 %v4133_v0  ;;  %v977_v0 = vrot.slane %v949_v57, %v4903_v42  ;;  %v4235_v57 = vld [vmem:[%s4838_s29 + $0x498] sm:$0xff]  }
  0xd2   : > { %3568 = vmatpush3.bf16.msra.mxu0 %v4132_v1  ;;  %v4185_v1 = vld [vmem:[%s4838_s29 + $0x3f8] sm:$0xff]  }
  0xd3   : > { %3569 = vmatprep.subr.bf16.mxu0 %v4135_v2  ;;  %3590 = vmatpush3.bf16.msra.mxu1 %v4134_v3  ;;  %v4184_v2 = vld [vmem:[%s4838_s29 + $0x338] sm:$0xff]   ;;  %v978_v3 = vcombine.high %v956_v61, %v956_v61 }
  0xd4   : > { %3591 = vmatprep.subr.bf16.mxu1 %v4137_v4  ;;  %v4187_v4 = vld [vmem:[%s4838_s29 + $0x370] sm:$0xff]  }
  0xd6   : > { %3570 = vmatpush3.bf16.msra.mxu0 %v4136_v5  ;;  %v4186_v5 = vld [vmem:[%s4838_s29 + $0x3b8] sm:$0xff]  }
  0xd7   : > { %3571 = vmatprep.subr.bf16.mxu0 %v4139_v6  ;;  %3592 = vmatpush3.bf16.msra.mxu1 %v4138_v7  ;;  %v981_v6 = vcombine.high %v977_v0, %v977_v0  ;;  %v4189_v7 = vld [vmem:[%s4838_s29 + $0x3f0] sm:$0xff]  }
  0xd8   : > { %3593 = vmatprep.subr.bf16.mxu1 %v4141_v8  ;;  %v4188_v8 = vld [vmem:[%s4838_s29 + $0x330] sm:$0xff]  }
  0xda   : > { %3572 = vmatpush3.bf16.msra.mxu0 %v4140_v9  ;;  %v4191_v9 = vld [vmem:[%s4838_s29 + $0x368] sm:$0xff]  }
  0xdb   : > { %3573 = vmatprep.subr.bf16.mxu0 %v4143_v10  ;;  %3594 = vmatpush3.bf16.msra.mxu1 %v4142_v11  ;;  %v4190_v10 = vld [vmem:[%s4838_s29 + $0x3b0] sm:$0xff]   ;;  %v4193_v11 = vld [vmem:[%s4838_s29 + $0x3e8] sm:$0xff]  }
  0xdc   : > { %3595 = vmatprep.subr.bf16.mxu1 %v4145_v12  ;;  %v4192_v12 = vld [vmem:[%s4838_s29 + $0x328] sm:$0xff]  }
  0xde   : > { %3574 = vmatpush3.bf16.msra.mxu0 %v4144_v13  ;;  %v4195_v13 = vld [vmem:[%s4838_s29 + $0x360] sm:$0xff]  }
  0xdf   : > { %3575 = vmatprep.subr.bf16.mxu0 %v4147_v14  ;;  %3596 = vmatpush3.bf16.msra.mxu1 %v4146_v15  ;;  %v4194_v14 = vld [vmem:[%s4838_s29 + $0x3a8] sm:$0xff]   ;;  %v4197_v15 = vld [vmem:[%s4838_s29 + $0x3e0] sm:$0xff]  }
  0xe0   : > { %3597 = vmatprep.subr.bf16.mxu1 %v4149_v16  ;;  %v4196_v16 = vld [vmem:[%s4838_s29 + $0x320] sm:$0xff]  }
  0xe2   : > { %3576 = vmatpush3.bf16.msra.mxu0 %v4148_v17  ;;  %v4199_v17 = vld [vmem:[%s4838_s29 + $0x358] sm:$0xff]  }
  0xe3   : > { %3605 = vmatprep.subr.bf16.mxu0 %v4151_v19  ;;  %3598 = vmatpush3.bf16.msra.mxu1 %v4150_v20  ;;  %v4201_v19 = vld [vmem:[%s4838_s29 + $0x3d8] sm:$0xff]  }
  0xe4   : > { %3627 = vmatprep.subr.bf16.mxu1 %v4153_v21  ;;  %v4200_v20 = vld [vmem:[%s4838_s29 + $0x318] sm:$0xff]   ;;  %v4203_v21 = vld [vmem:[%s4838_s29 + $0x350] sm:$0xff]  }
  0xe5   : > { %2440 = vmatmul.mubr.bf16.vlgmr.msra.gmra.mxu0 %v914_v18  ;;  %v4198_v18 = vld [vmem:[%s4838_s29 + $0x3a0] sm:$0xff]  }
  0xe6   : > { %3606 = vmatpush3.bf16.msra.mxu0 %v4152_v22  ;;  %2480 = vmatmul.mubr.bf16.vlgmr.msra.gmra.mxu1 %v930_v23  ;;  %v4202_v22 = vld [vmem:[%s4838_s29 + $0x398] sm:$0xff]   ;;  %v4205_v23 = vld [vmem:[%s4838_s29 + $0x3d0] sm:$0xff]  }
  0xe7   : > { %3607 = vmatprep.subr.bf16.mxu0 %v4155_v24  ;;  %3628 = vmatpush3.bf16.msra.mxu1 %v4154_v25  ;;  %v4204_v24 = vld [vmem:[%s4838_s29 + $0x310] sm:$0xff]   ;;  %v4207_v25 = vld [vmem:[%s4838_s29 + $0x348] sm:$0xff]  }
  0xe8   : > { %3629 = vmatprep.subr.bf16.mxu1 %v4157_v26  ;;  %2519 = vmatprep.mubr.bf16.mxu0 %v970_v55  ;;  %v4206_v26 = vld [vmem:[%s4838_s29 + $0x390] sm:$0xff]   ;;  %v4233_v55 = vld [vmem:[%s4838_s29 + $0x418] sm:$0xff]  }
  0xe9   : > { %2559 = vmatprep.mubr.bf16.mxu1 %v980_v59  ;;  %v4237_v59 = vld [vmem:[%s4838_s29 + $0x410] sm:$0xff]  }
  0xea   : > { %3608 = vmatpush3.bf16.msra.mxu0 %v4156_v27  ;;  %v4209_v27 = vld [vmem:[%s4838_s29 + $0x3c8] sm:$0xff]  }
  0xeb   : > { %3609 = vmatprep.subr.bf16.mxu0 %v4159_v28  ;;  %3630 = vmatpush3.bf16.msra.mxu1 %v4158_v29  ;;  %v4208_v28 = vld [vmem:[%s4838_s29 + $0x308] sm:$0xff]   ;;  %v4211_v29 = vld [vmem:[%s4838_s29 + $0x340] sm:$0xff]  }
  0xec   : > { %3631 = vmatprep.subr.bf16.mxu1 %v4161_v30  ;;  %v4210_v30 = vld [vmem:[%s4838_s29 + $0x388] sm:$0xff]  }
  0xee   : > { %3610 = vmatpush3.bf16.msra.mxu0 %v4160_v31  ;;  %v4213_v31 = vld [vmem:[%s4838_s29 + $0x3c0] sm:$0xff]  }
  0xef   : > { %3611 = vmatprep.subr.bf16.mxu0 %v4163_v32  ;;  %3632 = vmatpush3.bf16.msra.mxu1 %v4162_v33  ;;  %v4212_v32 = vld [vmem:[%s4838_s29 + $0x300] sm:$0xff]   ;;  %v963_v33 = vrot.slane %v4975_v52, %v4903_v42  ;;  %v4232_v52 = vld [vmem:[%s4838_s29 + $0x458] sm:$0xff]  }
  0xf0   : > { %3633 = vmatprep.subr.bf16.mxu1 %v4165_v34  ;;  %v4216_v34 = vld [vmem:[%s4838_s29 + $0x478] sm:$0xff]  }
  0xf2   : > { %3612 = vmatpush3.bf16.msra.mxu0 %v4164_v35  ;;  %v4215_v35 = vld [vmem:[%s4838_s29 + $0x380] sm:$0xff]  }
  0xf3   : > { %3613 = vmatprep.subr.bf16.mxu0 %v4167_v36  ;;  %3634 = vmatpush3.bf16.msra.mxu1 %v4166_v37  ;;  %v4218_v36 = vld [vmem:[%s4838_s29 + $0x4f8] sm:$0xff]  }
  0xf4   : > { %3635 = vmatprep.subr.bf16.mxu1 %v4169_v38  ;;  %v4217_v37 = vld [vmem:[%s4838_s29 + $0x438] sm:$0xff]   ;;  %v979_v38 = vcombine.high %v963_v33, %v963_v33 }
  0xf6   : > { %3614 = vmatpush3.bf16.msra.mxu0 %v4168_v39  ;;  %v4220_v39 = vld [vmem:[%s4838_s29 + $0x470] sm:$0xff]  }
  0xf7   : > { %3615 = vmatprep.subr.bf16.mxu0 %v4171_v40  ;;  %3636 = vmatpush3.bf16.msra.mxu1 %v4170_v41  ;;  %v4219_v40 = vld [vmem:[%s4838_s29 + $0x4b8] sm:$0xff]   ;;  %v4222_v41 = vld [vmem:[%s4838_s29 + $0x4f0] sm:$0xff]  }
  0xf8   : > { %3637 = vmatprep.subr.bf16.mxu1 %v4173_v43  ;;  %v4221_v43 = vld [vmem:[%s4838_s29 + $0x430] sm:$0xff]  }
  0xfa   : > { %3616 = vmatpush3.bf16.msra.mxu0 %v4172_v44  ;;  %v4224_v44 = vld [vmem:[%s4838_s29 + $0x468] sm:$0xff]  }
  0xfb   : > { %3617 = vmatprep.subr.bf16.mxu0 %v4175_v46  ;;  %3638 = vmatpush3.bf16.msra.mxu1 %v4174_v49  ;;  %v4226_v46 = vld [vmem:[%s4838_s29 + $0x4e8] sm:$0xff]  }
  0xfc   : > { %3639 = vmatprep.subr.bf16.mxu1 %v4177_v50  ;;  %v4227_v49 = vld [vmem:[%s4838_s29 + $0x4a8] sm:$0xff]   ;;  %v4230_v50 = vld [vmem:[%s4838_s29 + $0x4e0] sm:$0xff]  }
  0xfe   : > { %3618 = vmatpush3.bf16.msra.mxu0 %v4176_v53  ;;  %v4231_v53 = vld [vmem:[%s4838_s29 + $0x4a0] sm:$0xff]  }
  0xff   : > { %3619 = vmatprep.subr.bf16.mxu0 %v4179_v54  ;;  %3640 = vmatpush3.bf16.msra.mxu1 %v4178_v56  ;;  %v4234_v54 = vld [vmem:[%s4838_s29 + $0x4d8] sm:$0xff]   ;;  %v4236_v56 = vld [vmem:[%s4838_s29 + $0x450] sm:$0xff]  }
 0x100   : > { %3641 = vmatprep.subr.bf16.mxu1 %v4181_v58  ;;  %v4238_v58 = vld [vmem:[%s4838_s29 + $0x4d0] sm:$0xff]  }
 0x102   : > { %3620 = vmatpush3.bf16.msra.mxu0 %v4180_v60  ;;  %v462_v60 = vld [vmem:[%s4864_s30 + $0x10] sm:$0xff] }
 0x103   : > { %3649 = vmatprep.subr.bf16.mxu0 %v4183_v62  ;;  %3642 = vmatpush3.bf16.msra.mxu1 %v4182_v63  ;;  %v989_v62 = vrot.slane %v462_v60, %v4903_v42  ;;  %v982_v63 = vcombine.high %v462_v60, %v462_v60  ;;  %v4287_v60 = vld [vmem:[%s4838_s29 + $0x660] sm:$0xff]  }
 0x104   : > { %3671 = vmatprep.subr.bf16.mxu1 %v4185_v1  ;;  %v4242_v1 = vld [vmem:[%s4838_s29 + $0x4c8] sm:$0xff]  }
 0x105   : > { %2520 = vmatmul.mubr.bf16.vlgmr.msra.gmra.mxu0 %v956_v61  ;;  %v4240_v61 = vld [vmem:[%s4838_s29 + $0x448] sm:$0xff]  }
 0x106   : > { %3650 = vmatpush3.bf16.msra.mxu0 %v4184_v2  ;;  %2599 = vmatprep.mubr.bf16.mxu0 %v977_v0  ;;  %v4239_v0 = vld [vmem:[%s4838_s29 + $0x490] sm:$0xff]   ;;  %v997_v2 = vcombine.high %v989_v62, %v989_v62 }
 0x107   : > { %2560 = vmatmul.mubr.bf16.vlgmr.msra.gmra.mxu1 %v978_v3  ;;  %3651 = vmatprep.subr.bf16.mxu0 %v4187_v4  ;;  %v5051_v3 = vrot.slane %v982_v63, %v4903_v42  ;;  %v4241_v4 = vld [vmem:[%s4838_s29 + $0x408] sm:$0xff]   ;;  %v4289_v63 = vld [vmem:[%s4838_s29 + $0x658] sm:$0xff]  }
 0x108   : > { %3672 = vmatpush3.bf16.msra.mxu1 %v4186_v5  ;;  %2639 = vmatprep.mubr.bf16.mxu1 %v981_v6  ;;  %v4244_v5 = vld [vmem:[%s4838_s29 + $0x440] sm:$0xff]   ;;  %v1019_v6 = vrot.slane %v997_v2, %v4903_v42  ;;  %v4292_v2 = vld [vmem:[%s4838_s29 + $0x610] sm:$0xff]  }
 0x109   : > { %3673 = vmatprep.subr.bf16.mxu1 %v4189_v7  ;;  %v4243_v7 = vld [vmem:[%s4838_s29 + $0x488] sm:$0xff]  }
 0x10a   : > { %3652 = vmatpush3.bf16.msra.mxu0 %v4188_v8  ;;  %v998_v8 = vcombine.high %v5051_v3, %v5051_v3 }
 0x10b   : > { %3653 = vmatprep.subr.bf16.mxu0 %v4191_v9  ;;  %v4246_v9 = vld [vmem:[%s4838_s29 + $0x4c0] sm:$0xff]  }
 0x10c   : > { %3674 = vmatpush3.bf16.msra.mxu1 %v4190_v10  ;;  %v1029_v10 = vcombine.high %v1019_v6, %v1019_v6 }
 0x10d   : > { %3675 = vmatprep.subr.bf16.mxu1 %v4193_v11  ;;  %v4245_v11 = vld [vmem:[%s4838_s29 + $0x400] sm:$0xff]  }
 0x10e   : > { %3654 = vmatpush3.bf16.msra.mxu0 %v4192_v12  ;;  %v1005_v12 = vrot.slane %v989_v62, %v4903_v42  ;;  %v4288_v62 = vld [vmem:[%s4838_s29 + $0x620] sm:$0xff]  }
 0x10f   : > { %3655 = vmatprep.subr.bf16.mxu0 %v4195_v13  ;;  %v4248_v13 = vld [vmem:[%s4838_s29 + $0x578] sm:$0xff]  }
 0x110   : > { %3676 = vmatpush3.bf16.msra.mxu1 %v4194_v14  ;;  %v4247_v14 = vld [vmem:[%s4838_s29 + $0x480] sm:$0xff]  }
 0x111   : > { %3677 = vmatprep.subr.bf16.mxu1 %v4197_v15  ;;  %v1026_v15 = vrot.slane %v998_v8, %v4903_v42 }
 0x112   : > { %3656 = vmatpush3.bf16.msra.mxu0 %v4196_v16  ;;  %v4250_v16 = vld [vmem:[%s4838_s29 + $0x5f8] sm:$0xff]  }
 0x113   : > { %3657 = vmatprep.subr.bf16.mxu0 %v4199_v17  ;;  %v4249_v17 = vld [vmem:[%s4838_s29 + $0x538] sm:$0xff]  }
 0x114   : > { %3678 = vmatpush3.bf16.msra.mxu1 %v4198_v18  ;;  %v1027_v18 = vcombine.high %v1005_v12, %v1005_v12 }
 0x115   : > { %3679 = vmatprep.subr.bf16.mxu1 %v4201_v19  ;;  %v4252_v19 = vld [vmem:[%s4838_s29 + $0x570] sm:$0xff]  }
 0x116   : > { %3658 = vmatpush3.bf16.msra.mxu0 %v4200_v20  ;;  %v4251_v20 = vld [vmem:[%s4838_s29 + $0x5b8] sm:$0xff]  }
 0x117   : > { %3659 = vmatprep.subr.bf16.mxu0 %v4203_v21  ;;  %v1030_v21 = vcombine.high %v1026_v15, %v1026_v15 }
 0x118   : > { %3680 = vmatpush3.bf16.msra.mxu1 %v4202_v22  ;;  %v4254_v22 = vld [vmem:[%s4838_s29 + $0x5f0] sm:$0xff]  }
 0x119   : > { %3681 = vmatprep.subr.bf16.mxu1 %v4205_v23  ;;  %v4253_v23 = vld [vmem:[%s4838_s29 + $0x530] sm:$0xff]  }
 0x11a   : > { %3660 = vmatpush3.bf16.msra.mxu0 %v4204_v24  ;;  %v4256_v24 = vld [vmem:[%s4838_s29 + $0x568] sm:$0xff]  }
 0x11b   : > { %3661 = vmatprep.subr.bf16.mxu0 %v4207_v25  ;;  %v4255_v25 = vld [vmem:[%s4838_s29 + $0x5b0] sm:$0xff]  }
 0x11c   : > { %3682 = vmatpush3.bf16.msra.mxu1 %v4206_v26  ;;  %v4258_v26 = vld [vmem:[%s4838_s29 + $0x5e8] sm:$0xff]  }
 0x11d   : > { %3683 = vmatprep.subr.bf16.mxu1 %v4209_v27  ;;  %v4257_v27 = vld [vmem:[%s4838_s29 + $0x528] sm:$0xff]  }
 0x11e   : > { %3662 = vmatpush3.bf16.msra.mxu0 %v4208_v28  ;;  %v4260_v28 = vld [vmem:[%s4838_s29 + $0x560] sm:$0xff]  }
 0x11f   : > { %3663 = vmatprep.subr.bf16.mxu0 %v4211_v29  ;;  %v4259_v29 = vld [vmem:[%s4838_s29 + $0x5a8] sm:$0xff]  }
 0x120   : > { %3684 = vmatpush3.bf16.msra.mxu1 %v4210_v30  ;;  %v4262_v30 = vld [vmem:[%s4838_s29 + $0x5e0] sm:$0xff]  }
 0x121   : > { %3685 = vmatprep.subr.bf16.mxu1 %v4213_v31  ;;  %v4261_v31 = vld [vmem:[%s4838_s29 + $0x520] sm:$0xff]  }
 0x122   : > { %3664 = vmatpush3.bf16.msra.mxu0 %v4212_v32  ;;  %v4264_v32 = vld [vmem:[%s4838_s29 + $0x558] sm:$0xff]  }
 0x123   : > { %3693 = vmatprep.subr.bf16.mxu0 %v4216_v34  ;;  %v4266_v34 = vld [vmem:[%s4838_s29 + $0x5d8] sm:$0xff]  }
 0x124   : > { %3686 = vmatpush3.bf16.msra.mxu1 %v4215_v35  ;;  %v4265_v35 = vld [vmem:[%s4838_s29 + $0x518] sm:$0xff]  }
 0x125   : > { %2600 = vmatmul.mubr.bf16.vlgmr.msra.gmra.mxu0 %v963_v33  ;;  %3715 = vmatprep.subr.bf16.mxu1 %v4218_v36  ;;  %v4263_v33 = vld [vmem:[%s4838_s29 + $0x5a0] sm:$0xff]   ;;  %v4268_v36 = vld [vmem:[%s4838_s29 + $0x550] sm:$0xff]  }
 0x126   : > { %3694 = vmatpush3.bf16.msra.mxu0 %v4217_v37  ;;  %2679 = vmatprep.mubr.bf16.mxu0 %v1019_v6  ;;  %v4267_v37 = vld [vmem:[%s4838_s29 + $0x598] sm:$0xff]   ;;  %v4296_v6 = vld [vmem:[%s4838_s29 + $0x600] sm:$0xff]  }
 0x127   : > { %2640 = vmatmul.mubr.bf16.vlgmr.msra.gmra.mxu1 %v979_v38  ;;  %3695 = vmatprep.subr.bf16.mxu0 %v4220_v39  ;;  %v4270_v38 = vld [vmem:[%s4838_s29 + $0x5d0] sm:$0xff]  }
 0x128   : > { %3716 = vmatpush3.bf16.msra.mxu1 %v4219_v40  ;;  %2719 = vmatprep.mubr.bf16.mxu1 %v1029_v10  ;;  %v4269_v39 = vld [vmem:[%s4838_s29 + $0x510] sm:$0xff]   ;;  %v4272_v40 = vld [vmem:[%s4838_s29 + $0x548] sm:$0xff]  }
 0x129   : > { %3717 = vmatprep.subr.bf16.mxu1 %v4222_v41  ;;  %v4271_v41 = vld [vmem:[%s4838_s29 + $0x590] sm:$0xff]  }
 0x12a   : > { %3696 = vmatpush3.bf16.msra.mxu0 %v4221_v43  ;;  %v4274_v43 = vld [vmem:[%s4838_s29 + $0x5c8] sm:$0xff]  }
 0x12b   : > { %3697 = vmatprep.subr.bf16.mxu0 %v4224_v44  ;;  %v4273_v44 = vld [vmem:[%s4838_s29 + $0x508] sm:$0xff]  }
 0x12c   : > { %3718 = vmatpush3.bf16.msra.mxu1 %v4223_v45  ;;  %v4276_v45 = vld [vmem:[%s4838_s29 + $0x540] sm:$0xff]  }
 0x12d   : > { %3719 = vmatprep.subr.bf16.mxu1 %v4226_v46  ;;  %v4275_v46 = vld [vmem:[%s4838_s29 + $0x588] sm:$0xff]  }
 0x12e   : > { %3698 = vmatpush3.bf16.msra.mxu0 %v4225_v47  ;;  %v4278_v47 = vld [vmem:[%s4838_s29 + $0x5c0] sm:$0xff]  }
 0x12f   : > { %3699 = vmatprep.subr.bf16.mxu0 %v4228_v48  ;;  %v4277_v48 = vld [vmem:[%s4838_s29 + $0x500] sm:$0xff]  }
 0x130   : > { %3720 = vmatpush3.bf16.msra.mxu1 %v4227_v49  ;;  %v1012_v49 = vrot.slane %v5051_v3, %v4903_v42  ;;  %v4293_v3 = vld [vmem:[%s4838_s29 + $0x648] sm:$0xff]  }
 0x131   : > { %3721 = vmatprep.subr.bf16.mxu1 %v4230_v50  ;;  %v4281_v50 = vld [vmem:[%s4838_s29 + $0x678] sm:$0xff]  }
 0x132   : > { %3700 = vmatpush3.bf16.msra.mxu0 %v4229_v51  ;;  %v4280_v51 = vld [vmem:[%s4838_s29 + $0x580] sm:$0xff]  }
 0x133   : > { %3701 = vmatprep.subr.bf16.mxu0 %v4232_v52  ;;  %v4282_v52 = vld [vmem:[%s4838_s29 + $0x638] sm:$0xff]  }
 0x134   : > { %3722 = vmatpush3.bf16.msra.mxu1 %v4231_v53  ;;  %v1028_v53 = vcombine.high %v1012_v49, %v1012_v49 }
 0x135   : > { %3723 = vmatprep.subr.bf16.mxu1 %v4234_v54  ;;  %v4283_v54 = vld [vmem:[%s4838_s29 + $0x670] sm:$0xff]  }
 0x136   : > { %3702 = vmatpush3.bf16.msra.mxu0 %v4233_v55  ;;  %v4284_v55 = vld [vmem:[%s4838_s29 + $0x630] sm:$0xff]  }
 0x137   : > { %3703 = vmatprep.subr.bf16.mxu0 %v4236_v56  ;;  %v4285_v56 = vld [vmem:[%s4838_s29 + $0x668] sm:$0xff]  }
 0x138   : > { %3724 = vmatpush3.bf16.msra.mxu1 %v4235_v57  ;;  %v3298_v57 = vld.sshfl [vmem:[%s4864_s30 + $0x18] sm:$0x11 pattern:$0x75316420] }
 0x139   : > { %3725 = vmatprep.subr.bf16.mxu1 %v4238_v58  ;;  %v1038_v58 = vcombine.high %v3298_v57, %v3298_v57 }
 0x13a   : > { %3704 = vmatpush3.bf16.msra.mxu0 %v4237_v59  ;;  %v4286_v59 = vld [vmem:[%s4838_s29 + $0x628] sm:$0xff]  }
 0x13b   : > { %3705 = vmatprep.subr.bf16.mxu0 %v4240_v61  ;;  %v1052_v61 = vrot.slane %v1038_v58, %v4903_v42 }
 0x13c   : > { %3726 = vmatpush3.bf16.msra.mxu1 %v4239_v0  ;;  %v4290_v0 = vld [vmem:[%s4838_s29 + $0x618] sm:$0xff]  }
 0x13d   : > { %3727 = vmatprep.subr.bf16.mxu1 %v4242_v1  ;;  %v4291_v1 = vld [vmem:[%s4838_s29 + $0x650] sm:$0xff]  }
 0x13e   : > { %3706 = vmatpush3.bf16.msra.mxu0 %v4241_v4  ;;  %v4294_v4 = vld [vmem:[%s4838_s29 + $0x608] sm:$0xff]  }
 0x13f   : > { %3707 = vmatprep.subr.bf16.mxu0 %v4244_v5  ;;  %v4295_v5 = vld [vmem:[%s4838_s29 + $0x640] sm:$0xff]  }
 0x140   : > { %3728 = vmatpush3.bf16.msra.mxu1 %v4243_v7  ;;  %v1045_v7 = vrot.slane %v3298_v57, %v4903_v42 }
 0x141   : > { %3729 = vmatprep.subr.bf16.mxu1 %v4246_v9 }
 0x142   : > { %3708 = vmatpush3.bf16.msra.mxu0 %v4245_v11 }
 0x143   : > { %3737 = vmatprep.subr.bf16.mxu0 %v4248_v13 }
 0x144   : > { %3730 = vmatpush3.bf16.msra.mxu1 %v4247_v14 }
 0x145   : > { %2680 = vmatmul.mubr.bf16.vlgmr.msra.gmra.mxu0 %v1005_v12  ;;  %3759 = vmatprep.subr.bf16.mxu1 %v4250_v16 }
 0x146   : > { %3738 = vmatpush3.bf16.msra.mxu0 %v4249_v17  ;;  %2759 = vmatprep.mubr.bf16.mxu0 %v1026_v15 }
 0x147   : > { %2720 = vmatmul.mubr.bf16.vlgmr.msra.gmra.mxu1 %v1027_v18  ;;  %3739 = vmatprep.subr.bf16.mxu0 %v4252_v19 }
 0x148   : > { %3760 = vmatpush3.bf16.msra.mxu1 %v4251_v20  ;;  %2799 = vmatprep.mubr.bf16.mxu1 %v1030_v21 }
 0x149   : > { %3761 = vmatprep.subr.bf16.mxu1 %v4254_v22 }
 0x14a   : > { %3740 = vmatpush3.bf16.msra.mxu0 %v4253_v23 }
 0x14b   : > { %3741 = vmatprep.subr.bf16.mxu0 %v4256_v24 }
 0x14c   : > { %3762 = vmatpush3.bf16.msra.mxu1 %v4255_v25 }
 0x14d   : > { %3763 = vmatprep.subr.bf16.mxu1 %v4258_v26 }
 0x14e   : > { %3742 = vmatpush3.bf16.msra.mxu0 %v4257_v27 }
 0x14f   : > { %3743 = vmatprep.subr.bf16.mxu0 %v4260_v28 }
 0x150   : > { %3764 = vmatpush3.bf16.msra.mxu1 %v4259_v29 }
 0x151   : > { %3765 = vmatprep.subr.bf16.mxu1 %v4262_v30 }
 0x152   : > { %3744 = vmatpush3.bf16.msra.mxu0 %v4261_v31 }
 0x153   : > { %3745 = vmatprep.subr.bf16.mxu0 %v4264_v32 }
 0x154   : > { %3766 = vmatpush3.bf16.msra.mxu1 %v4263_v33 }
 0x155   : > { %3767 = vmatprep.subr.bf16.mxu1 %v4266_v34 }
 0x156   : > { %3746 = vmatpush3.bf16.msra.mxu0 %v4265_v35 }
 0x157   : > { %3747 = vmatprep.subr.bf16.mxu0 %v4268_v36 }
 0x158   : > { %3768 = vmatpush3.bf16.msra.mxu1 %v4267_v37 }
 0x159   : > { %3769 = vmatprep.subr.bf16.mxu1 %v4270_v38 }
 0x15a   : > { %3748 = vmatpush3.bf16.msra.mxu0 %v4269_v39 }
 0x15b   : > { %3749 = vmatprep.subr.bf16.mxu0 %v4272_v40 }
 0x15c   : > { %3770 = vmatpush3.bf16.msra.mxu1 %v4271_v41 }
 0x15d   : > { %3771 = vmatprep.subr.bf16.mxu1 %v4274_v43 }
 0x15e   : > { %3750 = vmatpush3.bf16.msra.mxu0 %v4273_v44 }
 0x15f   : > { %3751 = vmatprep.subr.bf16.mxu0 %v4276_v45 }
 0x160   : > { %3772 = vmatpush3.bf16.msra.mxu1 %v4275_v46 }
 0x161   : > { %3773 = vmatprep.subr.bf16.mxu1 %v4278_v47 }
 0x162   : > { %3752 = vmatpush3.bf16.msra.mxu0 %v4277_v48 }
 0x163   : > { %3781 = vmatprep.subr.bf16.mxu0 %v4281_v50 }
 0x164   : > { %3774 = vmatpush3.bf16.msra.mxu1 %v4280_v51 }
 0x165   : > { %2760 = vmatmul.mubr.bf16.vlgmr.msra.gmra.mxu0 %v1012_v49 }
 0x166   : > { %3782 = vmatpush3.bf16.msra.mxu0 %v4282_v52  ;;  %2839 = vmatprep.mubr.bf16.mxu0 %v1052_v61 }
 0x167   : > { %2800 = vmatmul.mubr.bf16.vlgmr.msra.gmra.mxu1 %v1028_v53  ;;  %3783 = vmatprep.subr.bf16.mxu0 %v4283_v54 }
 0x16a   : > { %3784 = vmatpush3.bf16.msra.mxu0 %v4284_v55 }
 0x16b   : > { %3785 = vmatprep.subr.bf16.mxu0 %v4285_v56 }
 0x16e   : > { %3786 = vmatpush3.bf16.msra.mxu0 %v4286_v59 }
 0x16f   : > { %3787 = vmatprep.subr.bf16.mxu0 %v4287_v60 }
 0x172   : > { %3788 = vmatpush3.bf16.msra.mxu0 %v4288_v62 }
 0x173   : > { %3789 = vmatprep.subr.bf16.mxu0 %v4289_v63 }
 0x176   : > { %3790 = vmatpush3.bf16.msra.mxu0 %v4290_v0 }
 0x177   : > { %3791 = vmatprep.subr.bf16.mxu0 %v4291_v1 }
 0x17a   : > { %3792 = vmatpush3.bf16.msra.mxu0 %v4292_v2 }
 0x17b   : > { %3793 = vmatprep.subr.bf16.mxu0 %v4293_v3 }
 0x17e   : > { %3794 = vmatpush3.bf16.msra.mxu0 %v4294_v4 }
 0x17f   : > { %3795 = vmatprep.subr.bf16.mxu0 %v4295_v5 }
 0x182   : > { %3796 = vmatpush3.bf16.msra.mxu0 %v4296_v6 }
 0x185   : > { %v3533_v8 = vpop.f32.mrf.mxu0  ;;  %2840 = vmatmul.mubr.bf16.vlgmr.msra.gmra.mxu0 %v1045_v7 }
 0x186   : > { %v3555_v9 = vpop.f32.mrf.mxu1 }
 0x187   : > { %v3534_v10 = vpop.f32.mrf.mxu0 }
 0x188   : > { %v3535_v11 = vadd.f32 %v3534_v10, %v3533_v8  ;;  %v3556_v12 = vpop.f32.mrf.mxu1 }
 0x189   : > { %v3536_v13 = vpop.f32.mrf.mxu0  ;;  %v3557_v14 = vadd.f32 %v3556_v12, %v3555_v9 }
 0x18a   : > { %v3558_v16 = vpop.f32.mrf.mxu1 }
 0x18b   : > { %v3537_v15 = vpop.f32.mrf.mxu0  ;;  %v2402_v17 = vadd.f32 %v3557_v14, %v3535_v11 }
 0x18c   : > { %v3559_v18 = vpop.f32.mrf.mxu1 }
 0x18d   : > { %v459_v18 = vld [vmem:[#allocation2] sm:$0x3] }
 0x1a5   : > { %v3577_v19 = vpop.f32.mrf.mxu0 }
 0x1a6   : > { %v3599_v21 = vpop.f32.mrf.mxu1 }
 0x1a7   : > { %v3578_v20 = vpop.f32.mrf.mxu0 }
 0x1a8   : > { %v3579_v22 = vadd.f32 %v3578_v20, %v3577_v19  ;;  %v3600_v24 = vpop.f32.mrf.mxu1 }
 0x1a9   : > { %v3580_v23 = vpop.f32.mrf.mxu0  ;;  %v3601_v25 = vadd.f32 %v3600_v24, %v3599_v21 }
 0x1aa   : > { %v2442_v42 = vadd.f32 %v3579_v22, %v2402_v17  ;;  %v3602_v27 = vpop.f32.mrf.mxu1 }
 0x1ab   : > { %v3581_v26 = vpop.f32.mrf.mxu0 }
 0x1ac   : > { %v2482_v28 = vadd.f32 %v3601_v25, %v2442_v42  ;;  %v3603_v29 = vpop.f32.mrf.mxu1 }
 0x1c5   : > { %v3621_v30 = vpop.f32.mrf.mxu0 }
 0x1c7   : > { %v3622_v31 = vpop.f32.mrf.mxu0  ;;  %v3643_v32 = vpop.f32.mrf.mxu1 }
 0x1c8   : > { %v3623_v33 = vadd.f32 %v3622_v31, %v3621_v30 }
 0x1c9   : > { %v3624_v34 = vpop.f32.mrf.mxu0  ;;  %v3644_v35 = vpop.f32.mrf.mxu1 }
 0x1ca   : > { %v2522_v36 = vadd.f32 %v3623_v33, %v2482_v28  ;;  %v3645_v37 = vadd.f32 %v3644_v35, %v3643_v32 }
 0x1cb   : > { %v3625_v38 = vpop.f32.mrf.mxu0  ;;  %v3646_v39 = vpop.f32.mrf.mxu1 }
 0x1cc   : > { %v2562_v40 = vadd.f32 %v3645_v37, %v2522_v36 }
 0x1cd   : > { %v3647_v41 = vpop.f32.mrf.mxu1 }
 0x1e5   : > { %v3665_v43 = vpop.f32.mrf.mxu0 }
 0x1e7   : > { %v3666_v44 = vpop.f32.mrf.mxu0  ;;  %v3687_v45 = vpop.f32.mrf.mxu1 }
 0x1e8   : > { %v3667_v46 = vadd.f32 %v3666_v44, %v3665_v43 }
 0x1e9   : > { %v3668_v47 = vpop.f32.mrf.mxu0  ;;  %v3688_v48 = vpop.f32.mrf.mxu1 }
 0x1ea   : > { %v2602_v49 = vadd.f32 %v3667_v46, %v2562_v40  ;;  %v3689_v50 = vadd.f32 %v3688_v48, %v3687_v45 }
 0x1eb   : > { %v3669_v51 = vpop.f32.mrf.mxu0  ;;  %v3690_v52 = vpop.f32.mrf.mxu1 }
 0x1ec   : > { %v2642_v53 = vadd.f32 %v3689_v50, %v2602_v49 }
 0x1ed   : > { %v3691_v54 = vpop.f32.mrf.mxu1 }
 0x205   : > { %v3709_v55 = vpop.f32.mrf.mxu0 }
 0x207   : > { %v3710_v56 = vpop.f32.mrf.mxu0  ;;  %v3731_v57 = vpop.f32.mrf.mxu1 }
 0x208   : > { %v3711_v7 = vadd.f32 %v3710_v56, %v3709_v55 }
 0x209   : > { %v3712_v58 = vpop.f32.mrf.mxu0  ;;  %v3732_v59 = vpop.f32.mrf.mxu1 }
 0x20a   : > { %v2682_v8 = vadd.f32 %v3711_v7, %v2642_v53  ;;  %v3733_v9 = vadd.f32 %v3732_v59, %v3731_v57 }
 0x20b   : > { %v3713_v60 = vpop.f32.mrf.mxu0  ;;  %v3734_v61 = vpop.f32.mrf.mxu1 }
 0x20c   : > { %v2722_v11 = vadd.f32 %v3733_v9, %v2682_v8 }
 0x20d   : > { %v3735_v62 = vpop.f32.mrf.mxu1 }
 0x225   : > { %v3753_v63 = vpop.f32.mrf.mxu0 }
 0x227   : > { %v3754_v0 = vpop.f32.mrf.mxu0  ;;  %v3775_v1 = vpop.f32.mrf.mxu1 }
 0x228   : > { %v3755_v10 = vadd.f32 %v3754_v0, %v3753_v63 }
 0x229   : > { %v3756_v2 = vpop.f32.mrf.mxu0  ;;  %v3776_v3 = vpop.f32.mrf.mxu1 }
 0x22a   : > { %v2762_v12 = vadd.f32 %v3755_v10, %v2722_v11  ;;  %v3777_v13 = vadd.f32 %v3776_v3, %v3775_v1 }
 0x22b   : > { %v3757_v4 = vpop.f32.mrf.mxu0  ;;  %v3778_v5 = vpop.f32.mrf.mxu1 }
 0x22c   : > { %v2802_v16 = vadd.f32 %v3777_v13, %v2762_v12 }
 0x22d   : > { %v3779_v6 = vpop.f32.mrf.mxu1 }
 0x245   : > { %v3797_v14 = vpop.f32.mrf.mxu0 }
 0x247   : > { %v3798_v15 = vpop.f32.mrf.mxu0 }
 0x248   : > { %v3799_v17 = vadd.f32 %v3798_v15, %v3797_v14 }
 0x249   : > { %v3800_v19 = vpop.f32.mrf.mxu0 }
 0x24a   : > { %v2842_v20 = vadd.f32 %v3799_v17, %v2802_v16  ;;  %2852 = sbr.rel (%p3507_p0) target bundleno = 1238 (0x4d6), region = 96 }
 0x24b   : > { %v3801_v21 = vpop.f32.mrf.mxu0 }
 0x24c   : > { %v2847_v22 = vadd.f32 %v2842_v20, %v459_v18 }
 0x24e   : > { %2848 = vst [vmem:[#allocation2] sm:$0x3] %v2847_v22 }
 0x24f   : > { %v2878_v23 = vld [vmem:[#allocation8 + $0x78] sm:$0xff]  ;;  %v4605_v24 = vmov 0.0   ;;  %v2877_v42 = vld [vmem:[#allocation8 + $0x70] sm:$0xff]  ;;  %vm4606_vm0 = vmmov 0   ;;  %v2876_v25 = vld [vmem:[#allocation8 + $0x68] sm:$0xff] }
 0x250   : > { %3854 = vmatprep.subr.mxu0 %v4605_v24  ;;  %3886 = vmatprep.mubr.msk.f32.mxu0 %vm4606_vm0, %v4605_v24  ;;  %v2875_v26 = vld [vmem:[#allocation8 + $0x60] sm:$0xff]  ;;  %v2971_v28 = vld [vmem:[#allocation11 + $0x70] sm:$0xff]  ;;  %v2970_v30 = vld [vmem:[#allocation11 + $0x68] sm:$0xff] }
 0x251   : > { %3855 = vmatpush3.msra.mxu0 %v2878_v23  ;;  %3889 = vmatprep.subr.mxu1 %v4605_v24  ;;  %v2972_v27 = vld [vmem:[#allocation11 + $0x78] sm:$0xff]  ;;  %v2873_v31 = vld [vmem:[#allocation8 + $0x50] sm:$0xff]  ;;  %v2969_v32 = vld [vmem:[#allocation11 + $0x60] sm:$0xff] }
 0x252   : > { %3856 = vmatprep.subr.mxu0 %v4605_v24  ;;  %3921 = vmatprep.mubr.msk.f32.mxu1 %vm4606_vm0, %v4605_v24  ;;  %v2874_v29 = vld [vmem:[#allocation8 + $0x58] sm:$0xff]  ;;  %v2872_v33 = vld [vmem:[#allocation8 + $0x48] sm:$0xff]  ;;  %v2871_v35 = vld [vmem:[#allocation8 + $0x40] sm:$0xff] }
 0x253   : > { %3857 = vmatpush3.msra.mxu0 %v2877_v42  ;;  %3890 = vmatpush3.msra.mxu1 %v2972_v27  ;;  %v2968_v34 = vld [vmem:[#allocation11 + $0x58] sm:$0xff]  ;;  %v2967_v36 = vld [vmem:[#allocation11 + $0x50] sm:$0xff]  ;;  %v2966_v38 = vld [vmem:[#allocation11 + $0x48] sm:$0xff] }
 0x254   : > { %3858 = vmatprep.subr.mxu0 %v4605_v24  ;;  %3891 = vmatprep.subr.mxu1 %v4605_v24  ;;  %v2870_v37 = vld [vmem:[#allocation8 + $0x38] sm:$0xff]  ;;  %v2869_v39 = vld [vmem:[#allocation8 + $0x30] sm:$0xff]  ;;  %v2868_v40 = vld [vmem:[#allocation8 + $0x28] sm:$0xff] }
 0x255   : > { %3859 = vmatpush3.msra.mxu0 %v2876_v25  ;;  %3892 = vmatpush3.msra.mxu1 %v2971_v28  ;;  %v2867_v41 = vld [vmem:[#allocation8 + $0x20] sm:$0xff]  ;;  %v2853_v43 = vld [vmem:[#allocation2] sm:$0x3]  ;;  %v3508_v44 = vld [vmem:[#allocation6] ss:$0 sm:$0xff] }
 0x256   : > { %3860 = vmatprep.subr.mxu0 %v4605_v24  ;;  %3893 = vmatprep.subr.mxu1 %v4605_v24  ;;  %v2866_v45 = vld [vmem:[#allocation8 + $0x18] sm:$0xff]  ;;  %v2865_v46 = vld [vmem:[#allocation8 + $0x10] sm:$0xff]  ;;  %v2861_v47 = vadd.f32 %v3508_v44, %v2853_v43  ;;  %v2864_v48 = vld [vmem:[#allocation8 + $0x8] sm:$0xff] }
 0x257   : > { %3861 = vmatpush3.msra.mxu0 %v2875_v26  ;;  %3894 = vmatpush3.msra.mxu1 %v2970_v30  ;;  %v2863_v49 = vld [vmem:[#allocation8] sm:$0xff]  ;;  %v2963_v53 = vld [vmem:[#allocation11 + $0x30] sm:$0xff]  ;;  %v2962_v54 = vld [vmem:[#allocation11 + $0x28] sm:$0xff] }
 0x258   : > { %3862 = vmatprep.subr.mxu0 %v4605_v24  ;;  %3895 = vmatprep.subr.mxu1 %v4605_v24  ;;  %v2862_v50 = vmax.f32 %v2861_v47, 0.0  ;;  %v2965_v51 = vld [vmem:[#allocation11 + $0x40] sm:$0xff]  ;;  %v2964_v52 = vld [vmem:[#allocation11 + $0x38] sm:$0xff]  ;;  %v2959_v57 = vld [vmem:[#allocation11 + $0x10] sm:$0xff] }
 0x259   : > { %3863 = vmatpush3.msra.mxu0 %v2874_v29  ;;  %3896 = vmatpush3.msra.mxu1 %v2969_v32  ;;  %v2961_v55 = vld [vmem:[#allocation11 + $0x20] sm:$0xff]  ;;  %v2960_v56 = vld [vmem:[#allocation11 + $0x18] sm:$0xff]  ;;  %v2958_v58 = vld [vmem:[#allocation11 + $0x8] sm:$0xff] }
 0x25a   : > { %3864 = vmatprep.subr.mxu0 %v4605_v24  ;;  %3897 = vmatprep.subr.mxu1 %v4605_v24  ;;  %v2957_v59 = vld [vmem:[#allocation11] sm:$0xff]  ;;  %v3065_v61 = vld [vmem:[#allocation14 + $0x70] sm:$0xff]  ;;  %v3064_v62 = vld [vmem:[#allocation14 + $0x68] sm:$0xff] }
 0x25b   : > { %3865 = vmatpush3.msra.mxu0 %v2873_v31  ;;  %3898 = vmatpush3.msra.mxu1 %v2968_v34  ;;  %v3066_v60 = vld [vmem:[#allocation14 + $0x78] sm:$0xff]  ;;  %v3063_v63 = vld [vmem:[#allocation14 + $0x60] sm:$0xff]  ;;  %v3061_v1 = vld [vmem:[#allocation14 + $0x50] sm:$0xff] }
 0x25c   : > { %3866 = vmatprep.subr.mxu0 %v4605_v24  ;;  %3899 = vmatprep.subr.mxu1 %v4605_v24  ;;  %v3062_v0 = vld [vmem:[#allocation14 + $0x58] sm:$0xff]  ;;  %v3060_v2 = vld [vmem:[#allocation14 + $0x48] sm:$0xff]  ;;  %v3059_v8 = vld [vmem:[#allocation14 + $0x40] sm:$0xff] }
 0x25d   : > { %3867 = vmatpush3.msra.mxu0 %v2872_v33  ;;  %3900 = vmatpush3.msra.mxu1 %v2967_v36  ;;  %v3509_v3 = vld [vmem:[#allocation9] ss:$0 sm:$0xff]  ;;  %v3057_v10 = vld [vmem:[#allocation14 + $0x30] sm:$0xff]  ;;  %v3056_v11 = vld [vmem:[#allocation14 + $0x28] sm:$0xff] }
 0x25e   : > { %3868 = vmatprep.subr.mxu0 %v4605_v24  ;;  %3901 = vmatprep.subr.mxu1 %v4605_v24  ;;  %v3058_v9 = vld [vmem:[#allocation14 + $0x38] sm:$0xff]  ;;  %v3055_v12 = vld [vmem:[#allocation14 + $0x20] sm:$0xff]  ;;  %v3053_v14 = vld [vmem:[#allocation14 + $0x10] sm:$0xff] }
 0x25f   : > { %3869 = vmatpush3.msra.mxu0 %v2871_v35  ;;  %3902 = vmatpush3.msra.mxu1 %v2966_v38  ;;  %v3054_v13 = vld [vmem:[#allocation14 + $0x18] sm:$0xff]  ;;  %v3052_v15 = vld [vmem:[#allocation14 + $0x8] sm:$0xff]  ;;  %v3051_v16 = vld [vmem:[#allocation14] sm:$0xff] }
 0x260   : > { %3870 = vmatprep.subr.mxu0 %v4605_v24  ;;  %3903 = vmatprep.subr.mxu1 %v4605_v24  ;;  %v3510_v17 = vld [vmem:[#allocation12] ss:$0 sm:$0xff]  ;;  %v3511_v22 = vld [vmem:[#allocation15] ss:$0 sm:$0xff] }
 0x261   : > { %3871 = vmatpush3.msra.mxu0 %v2870_v37  ;;  %3904 = vmatpush3.msra.mxu1 %v2965_v51 }
 0x262   : > { %3872 = vmatprep.subr.mxu0 %v4605_v24  ;;  %3905 = vmatprep.subr.mxu1 %v4605_v24 }
 0x263   : > { %3873 = vmatpush3.msra.mxu0 %v2869_v39  ;;  %3906 = vmatpush3.msra.mxu1 %v2964_v52 }
 0x264   : > { %3874 = vmatprep.subr.mxu0 %v4605_v24  ;;  %3907 = vmatprep.subr.mxu1 %v4605_v24 }
 0x265   : > { %3875 = vmatpush3.msra.mxu0 %v2868_v40  ;;  %3908 = vmatpush3.msra.mxu1 %v2963_v53 }
 0x266   : > { %3876 = vmatprep.subr.mxu0 %v4605_v24  ;;  %3909 = vmatprep.subr.mxu1 %v4605_v24 }
 0x267   : > { %3877 = vmatpush3.msra.mxu0 %v2867_v41  ;;  %3910 = vmatpush3.msra.mxu1 %v2962_v54 }
 0x268   : > { %3878 = vmatprep.subr.mxu0 %v4605_v24  ;;  %3911 = vmatprep.subr.mxu1 %v4605_v24 }
 0x269   : > { %3879 = vmatpush3.msra.mxu0 %v2866_v45  ;;  %3912 = vmatpush3.msra.mxu1 %v2961_v55 }
 0x26a   : > { %3880 = vmatprep.subr.mxu0 %v4605_v24  ;;  %3913 = vmatprep.subr.mxu1 %v4605_v24 }
 0x26b   : > { %3881 = vmatpush3.msra.mxu0 %v2865_v46  ;;  %3914 = vmatpush3.msra.mxu1 %v2960_v56 }
 0x26c   : > { %3882 = vmatprep.subr.mxu0 %v4605_v24  ;;  %3915 = vmatprep.subr.mxu1 %v4605_v24 }
 0x26d   : > { %3883 = vmatpush3.msra.mxu0 %v2864_v48  ;;  %3916 = vmatpush3.msra.mxu1 %v2959_v57 }
 0x26e   : > { %3884 = vmatprep.subr.mxu0 %v4605_v24  ;;  %3917 = vmatprep.subr.mxu1 %v4605_v24 }
 0x26f   : > { %3885 = vmatpush3.msra.mxu0 %v2863_v49  ;;  %3918 = vmatpush3.msra.mxu1 %v2958_v58 }
 0x270   : > { %3887 = vmatmul.mubr.f32.vlgmr.msra.gmra.mxu0 %v2862_v50  ;;  %3924 = vmatprep.subr.mxu0 %v4605_v24 }
 0x271   : > { %3956 = vmatprep.mubr.msk.f32.mxu0 %vm4606_vm0, %v4605_v24  ;;  %3919 = vmatprep.subr.mxu1 %v4605_v24 }
 0x272   : > { %3920 = vmatpush3.msra.mxu1 %v2957_v59  ;;  %3925 = vmatpush3.msra.mxu0 %v3066_v60 }
 0x273   : > { %3926 = vmatprep.subr.mxu0 %v4605_v24 }
 0x274   : > { %3927 = vmatpush3.msra.mxu0 %v3065_v61 }
 0x275   : > { %3928 = vmatprep.subr.mxu0 %v4605_v24 }
 0x276   : > { %3929 = vmatpush3.msra.mxu0 %v3064_v62 }
 0x277   : > { %3930 = vmatprep.subr.mxu0 %v4605_v24 }
 0x278   : > { %3931 = vmatpush3.msra.mxu0 %v3063_v63 }
 0x279   : > { %3932 = vmatprep.subr.mxu0 %v4605_v24 }
 0x27a   : > { %3933 = vmatpush3.msra.mxu0 %v3062_v0 }
 0x27b   : > { %3934 = vmatprep.subr.mxu0 %v4605_v24 }
 0x27c   : > { %3935 = vmatpush3.msra.mxu0 %v3061_v1 }
 0x27d   : > { %3936 = vmatprep.subr.mxu0 %v4605_v24 }
 0x27e   : > { %3937 = vmatpush3.msra.mxu0 %v3060_v2 }
 0x27f   : > { %3938 = vmatprep.subr.mxu0 %v4605_v24 }
 0x280   : > { %3939 = vmatpush3.msra.mxu0 %v3059_v8 }
 0x281   : > { %3940 = vmatprep.subr.mxu0 %v4605_v24 }
 0x282   : > { %3941 = vmatpush3.msra.mxu0 %v3058_v9 }
 0x283   : > { %3942 = vmatprep.subr.mxu0 %v4605_v24 }
 0x284   : > { %3943 = vmatpush3.msra.mxu0 %v3057_v10 }
 0x285   : > { %3944 = vmatprep.subr.mxu0 %v4605_v24 }
 0x286   : > { %3945 = vmatpush3.msra.mxu0 %v3056_v11 }
 0x287   : > { %3946 = vmatprep.subr.mxu0 %v4605_v24 }
 0x288   : > { %3947 = vmatpush3.msra.mxu0 %v3055_v12 }
 0x289   : > { %3948 = vmatprep.subr.mxu0 %v4605_v24 }
 0x28a   : > { %3949 = vmatpush3.msra.mxu0 %v3054_v13 }
 0x28b   : > { %3950 = vmatprep.subr.mxu0 %v4605_v24 }
 0x28c   : > { %3951 = vmatpush3.msra.mxu0 %v3053_v14 }
 0x28d   : > { %3952 = vmatprep.subr.mxu0 %v4605_v24 }
 0x28e   : > { %3953 = vmatpush3.msra.mxu0 %v3052_v15 }
 0x28f   : > { %3954 = vmatprep.subr.mxu0 %v4605_v24 }
 0x290   : > { %3955 = vmatpush3.msra.mxu0 %v3051_v16 }
 0x330   : > { %v2952_v4 = vpop.f32.mrf.mxu0 }
 0x331   : > { %v2953_v5 = vadd.f32 %v3509_v3, %v2952_v4 }
 0x332   : > { %v3888_v6 = vpop.f32.mrf.mxu0 }
 0x333   : > { %4297 = vtanh.f32 %v2953_v5 }
 0x340   : > { %v4298_v7 = vpop.eup %4297 }
 0x341   : > { %3922 = vmatmul.mubr.f32.vlgmr.msra.gmra.mxu1 %v4298_v7 }
 0x401   : > { %v3046_v18 = vpop.f32.mrf.mxu1 }
 0x402   : > { %v3047_v19 = vadd.f32 %v3510_v17, %v3046_v18 }
 0x403   : > { %v3923_v20 = vpop.f32.mrf.mxu1 }
 0x404   : > { %4299 = vtanh.f32 %v3047_v19 }
 0x411   : > { %v4300_v21 = vpop.eup %4299 }
 0x412   : > { %3957 = vmatmul.mubr.f32.vlgmr.msra.gmra.mxu0 %v4300_v21 }
 0x4d2   : > { %v3140_v23 = vpop.f32.mrf.mxu0 }
 0x4d3   : > { %v3141_v42 = vadd.f32 %v3511_v22, %v3140_v23 }
 0x4d4   : > { %v3958_v25 = vpop.f32.mrf.mxu0 }
 0x4d5   : > { %3144 = vst [vmem:[#allocation17] sm:$0x3] %v3141_v42 }
 0x4d6 PF: > { %p4036_p2 = scmp.eq.s32.totalorder %s4679_s15, 7  ;;  %s4607_s19 = smov [#allocation17]  }
 0x4d7   : > { %s3152_s22 = sshll.u32 %s4607_s19, 4  ;;  %s3153_s22 = int_to_ptr.vmem [resolvable:$true] %s3152_s22 }
 0x4d8   : > { %s4511_s25 = scalar_lea.vmem %s3153_s22, 32  ;;  %p4518_p12 = scmp.lt.s32.totalorder %s3153_s22, %s3153_s22 }
 0x4d9   : > { %p4512_p5 = scmp.ne.s32.totalorder %s3153_s22, %s4511_s25  ;;  %p4519_p6 = scmp.lt.s32.totalorder %s4511_s25, %s4511_s25 }
 0x4db   : > { %p4513_p1 = pnand %p4512_p5, %p4036_p2  ;;  %p4520_p3 = por %p4519_p6, %p4518_p12 }
 0x4dd   : > { %p4514_p4 = pneg %p4513_p1 }
 0x4df   : > { %p4521_p7 = pnand %p4520_p3, %p4514_p4 }
 0x4e1   : > { %4524 = shalt.err (!%p4521_p7)
}
 0x4e2   : > { %3992 = dma.vmem_to_hbm [thread:$0]  (%p4036_p2), %s3153_s22, 32, %s5206_s9, [#allocation5]  }
 0x4e3   : > { %4572 = dma.done.wait (%p4036_p2), [#allocation5], 32  }
 0x4e4   : > { %4574 = vsyncadd (%p4036_p2), [#allocation5], 4294967264 }
 0x4e5 PF: > { %p24_p8 = scmp.ge.s32.totalorder %s4781_s24, 10   ;;  %s5226_s30 = smov %s4581_s10 }
 0x4e6   : > { %s5227_s10 = smov %s4585_s11  ;;  %s5228_s11 = smov %s4792_s28 }
 0x4e7   : > { %s5229_s12 = smov %s4781_s24  ;;  %26 = sbr.rel (!%p24_p8) target bundleno = 8 (0x8), region = 132 }
 0x4ec   :  { %3165 = vsyncpa [#allocation4], 1 }
 0x4ed   :  { %3167 = vsyncpa [#allocation4 + $0x1], 1 }
 0x4ee   :  { %3168 = vsyncpa [#allocation7], 1 }
 0x4ef   :  { %3169 = vsyncpa [#allocation10], 1 }
 0x4f0   :  { %3170 = vsyncpa [#allocation13], 1 }
 0x4f1   :  { %3171 = vsyncpa [#allocation16], 1 }
 0x4f2   :  { %3172 = vsyncpa [#allocation5], 1 }
 0x4f3   :  { %3174 = vsyncpa [#allocation5 + $0x1], 1 }

</bundles_post_ra>
